<compile_context>
chip_gen: v5e
topology: v5e:2x2
jax: 0.10.0
libtpu: 0.0.40
codegen_flags: <defaults>
</compile_context>

<pallas_src>
import math

import jax
import jax.numpy as jnp
from jax.experimental import pallas as pl
from jax.experimental.pallas import tpu as pltpu

# ---------------------------------------------------------------------------
# Small synthetic "Whisper" configuration (checkpoint dims scaled down).
# ---------------------------------------------------------------------------
HOP_PPG    = 320                     # h_hop_size: ppg frames = audio_len // 320
N_FFT      = 64
HOP_LENGTH = 160                     # STFT hop (half of HOP_PPG, as in Whisper)
N_SAMPLES  = 5120                    # synthetic "30 s" chunk (pad_or_trim target)
N_MELS     = 8
N_FRAMES   = N_SAMPLES // HOP_LENGTH     # 32 mel frames
N_CTX      = N_FRAMES // 2               # 16 encoder positions (conv stride 2)
N_FREQ     = N_FFT // 2 + 1              # 33 rfft bins
D_MODEL    = 32
N_HEAD     = 4
HEAD_DIM   = D_MODEL // N_HEAD
N_LAYERS   = 2
LN_EPS     = 1e-5

# ---- row offsets inside the 32-lane constants slab [C_ROWS, 32] ----
C_C1W   = 0                              # conv1 weight taps: 3 x [8, 32]
C_C2W   = C_C1W + 3 * N_MELS             # conv2 weight taps: 3 x [32, 32]
C_POS   = C_C2W + 3 * D_MODEL            # positional embedding [16, 32]
C_C1B   = C_POS + N_CTX                  # conv1 bias  [1, 32]
C_C2B   = C_C1B + 1                      # conv2 bias  [1, 32]
C_LNPW  = C_C2B + 1                      # ln_post weight [1, 32]
C_LNPB  = C_LNPW + 1                     # ln_post bias   [1, 32]
C_MELFB = C_LNPB + 1                     # mel filterbank [64, 32] (lanes :8 valid)
C_ROWS  = C_MELFB + N_FFT                # 204

# ---- row offsets inside each layer of the 128-lane weight slab ----
R_QKV  = 0                               # [32, 128]  = [wq | wk | wv | 0]
R_WO   = R_QKV + D_MODEL                 # [32, 128]  lanes :32 = wo
R_W1   = R_WO + D_MODEL                  # [32, 128]  mlp up-proj
R_W2   = R_W1 + D_MODEL                  # [128, 128] lanes :32 = mlp down-proj
R_VEC  = R_W2 + 4 * D_MODEL              # [8, 128]   lanes :32 = packed vectors
R_B1   = R_VEC + 8                       # [1, 128]   mlp hidden bias
R_ROWS = 240                             # padded to a multiple of 8

# Row indices inside the per-layer vector pack.
V_ALN_W, V_ALN_B, V_BQ, V_BV, V_BO, V_MLN_W, V_MLN_B, V_B2 = range(8)


# ---------------------------------------------------------------------------
# In-kernel helpers (pure jnp, traced inside the Pallas body).
# ---------------------------------------------------------------------------
def _gelu(x):
    # tanh-approximation GELU (EUP tanh instead of ~12 VALU ops of rational erf).
    # TODO(synk): torch F.gelu uses exact erf; this is the standard tanh approximation.
    c = math.sqrt(2.0 / math.pi)
    return 0.5 * x * (1.0 + jnp.tanh(c * (x + 0.044715 * x * x * x)))


# ---------------------------------------------------------------------------
# The single fused kernel: audio frames -> log-mel -> conv1 -> conv2 -> encoder.
# Everything stays in vregs; only the final [N_CTX, D] tensor is stored.
# ---------------------------------------------------------------------------
def audio2whisper_kernel(frames_ref, dft_ref, const_ref, lay_ref, out_ref):
    D = D_MODEL
    f32 = jnp.float32
    half = N_CTX                                # 16 = number of even / odd frames

    def mm(a, b):
        return jnp.dot(a, b, preferred_element_type=f32)

    # -------- tiny constants built once in registers (compiler splats/folds) --------
    ones_dd = jnp.ones((D, D), f32)             # LayerNorm row-sums via the idle MXU
    r = jax.lax.broadcasted_iota(jnp.int32, (half, half), 0)
    c = jax.lax.broadcasted_iota(jnp.int32, (half, half), 1)
    shift_prev = (r == c + 1).astype(f32)       # (S @ x)[j] = x[j-1], row 0 = zeros
    shift_next = (r + 1 == c).astype(f32)       # (S @ x)[j] = x[j+1], last row = zeros
    lane = jax.lax.broadcasted_iota(jnp.int32, (1, D), 1)
    head_masks = [((lane >= h * HEAD_DIM) & (lane < (h + 1) * HEAD_DIM)).astype(f32)
                  for h in range(N_HEAD)]

    def layer_norm(x, w, b):
        # mean / mean-of-squares as matmuls with ones -> result already lane-broadcast.
        mu = mm(x, ones_dd) * (1.0 / D)
        ex2 = mm(x * x, ones_dd) * (1.0 / D)
        var = ex2 - mu * mu
        return (x - mu) * jax.lax.rsqrt(var + LN_EPS) * w + b

    # ---------------- log-mel spectrogram (Hann window folded into DFT) ----------------
    # frames_ref: [32, 64], rows 0:16 = even frame positions, rows 16:32 = odd positions.
    spec = mm(frames_ref[...], dft_ref[...])                     # [32, 128] = [re | im]
    re = spec[:, :N_FFT]
    im = spec[:, N_FFT:]
    power = re * re + im * im                                    # [32, 64]
    melfb = const_ref[C_MELFB:C_MELFB + N_FFT, :N_MELS]          # [64, 8]
    mel = mm(power, melfb)                                       # [32, 8]
    log_spec = jnp.log10(jnp.maximum(mel, 1e-10))
    log_spec = jnp.maximum(log_spec, jnp.max(log_spec) - 8.0)
    logmel = (log_spec + 4.0) / 4.0                              # [32, 8]

    lm_e = logmel[:half, :]                  # mel frames 0,2,...,30
    lm_o = logmel[half:, :]                  # mel frames 1,3,...,31

    # ---------------- Conv1d(k=3, s=1, p=1) + GELU ----------------
    # Zero padding realized by the zero rows of the shift matrices (no VMEM scratch).
    a0 = const_ref[C_C1W:C_C1W + N_MELS, :]
    a1 = const_ref[C_C1W + N_MELS:C_C1W + 2 * N_MELS, :]
    a2 = const_ref[C_C1W + 2 * N_MELS:C_C1W + 3 * N_MELS, :]
    c1b = const_ref[C_C1B:C_C1B + 1, :]
    lm_o_prev = mm(shift_prev, lm_o)         # logmel[2j-1]  (j=0 -> 0)
    lm_e_next = mm(shift_next, lm_e)         # logmel[2j+2]  (j=15 -> 0)
    h1_e = _gelu(mm(lm_o_prev, a0) + mm(lm_e, a1) + mm(lm_o, a2) + c1b)   # h1[2j]
    h1_o = _gelu(mm(lm_e, a0) + mm(lm_o, a1) + mm(lm_e_next, a2) + c1b)   # h1[2j+1]

    # ---------------- Conv1d(k=3, s=2, p=1) + GELU + pos emb ----------------
    b0 = const_ref[C_C2W:C_C2W + D, :]
    b1w = const_ref[C_C2W + D:C_C2W + 2 * D, :]
    b2w = const_ref[C_C2W + 2 * D:C_C2W + 3 * D, :]
    c2b = const_ref[C_C2B:C_C2B + 1, :]
    pos = const_ref[C_POS:C_POS + N_CTX, :]
    h1_o_prev = mm(shift_prev, h1_o)         # h1[2j-1]  (j=0 -> 0)
    x = _gelu(mm(h1_o_prev, b0) + mm(h1_e, b1w) + mm(h1_o, b2w) + c2b) + pos   # [16, 32]

    # ---------------- transformer encoder blocks (unrolled, L tiny) ----------------
    scale = float(HEAD_DIM) ** -0.25
    for l in range(N_LAYERS):
        base = l * R_ROWS

        def vec(i):
            return lay_ref[base + R_VEC + i:base + R_VEC + i + 1, :D]

        # ---- multi-head self-attention (Whisper: k has no bias, q/k scaled hd^-0.25)
        h = layer_norm(x, vec(V_ALN_W), vec(V_ALN_B))
        qkv = mm(h, lay_ref[base + R_QKV:base + R_QKV + D, :])          # [16, 128]
        q = (qkv[:, :D] + vec(V_BQ)) * scale     # scale hoisted out of the head loop
        k = qkv[:, D:2 * D] * scale
        v = qkv[:, 2 * D:3 * D] + vec(V_BV)

        ctx = jnp.zeros((N_CTX, D), f32)
        for hh in range(N_HEAD):
            mh = head_masks[hh]                                          # [1, 32]
            # masked-channel contraction == per-head scores; no lane slices / concats
            s = jax.lax.dot_general(q * mh, k, (((1,), (1,)), ((), ())),
                                    preferred_element_type=f32)          # [16, 16]
            e = jnp.exp(s - jnp.max(s, axis=-1, keepdims=True))
            p = e * pl.reciprocal(jnp.sum(e, axis=-1, keepdims=True), approx=True)
            ctx = ctx + mm(p, v * mh)            # head output lands in its own lanes
        wo_blk = lay_ref[base + R_WO:base + R_WO + D, :]                 # [32, 128]
        x = x + mm(ctx, wo_blk)[:, :D] + vec(V_BO)

        # ---- MLP
        h2 = layer_norm(x, vec(V_MLN_W), vec(V_MLN_B))
        w1_blk = lay_ref[base + R_W1:base + R_W1 + D, :]                 # [32, 128]
        b1_row = lay_ref[base + R_B1:base + R_B1 + 1, :]                 # [1, 128]
        h2 = _gelu(mm(h2, w1_blk) + b1_row)                              # [16, 128]
        w2_blk = lay_ref[base + R_W2:base + R_W2 + 4 * D, :]             # [128, 128]
        x = x + mm(h2, w2_blk)[:, :D] + vec(V_B2)

    out_ref[...] = layer_norm(x, const_ref[C_LNPW:C_LNPW + 1, :],
                              const_ref[C_LNPB:C_LNPB + 1, :])


# ---------------------------------------------------------------------------
# Constants / synthetic params.
# ---------------------------------------------------------------------------
def make_mel_filters(n_freq, n_mels):
    # Deterministic triangular filterbank (synthetic stand-in for librosa mel filters).
    # TODO(synk): real Whisper uses slaney-normalized librosa mel filters from the checkpoint.
    pts = jnp.linspace(0.0, float(n_freq - 1), n_mels + 2)
    bins = jnp.arange(n_freq, dtype=jnp.float32)
    left, center, right = pts[:-2], pts[1:-1], pts[2:]
    up = (bins[None, :] - left[:, None]) / (center - left)[:, None]
    down = (right[:, None] - bins[None, :]) / (right - center)[:, None]
    return jnp.maximum(0.0, jnp.minimum(up, down))        # [n_mels, n_freq]


def make_dft_constants():
    # Lane-dense [n_fft, 128] constant: [cos | -sin], rfft bins padded to 64 lanes each,
    # with the periodic Hann window folded in (diag(window) @ dft == (x*window) @ dft).
    n = jnp.arange(N_FFT, dtype=jnp.float32)
    f = jnp.arange(N_FREQ, dtype=jnp.float32)
    ang = 2.0 * math.pi * n[:, None] * f[None, :] / N_FFT
    pad = ((0, 0), (0, N_FFT - N_FREQ))
    dft_cat = jnp.concatenate([jnp.pad(jnp.cos(ang), pad),
                               jnp.pad(-jnp.sin(ang), pad)], axis=1)      # [64, 128]
    window = 0.5 * (1.0 - jnp.cos(2.0 * math.pi * n / N_FFT))             # periodic Hann
    return window[:, None] * dft_cat


def sinusoids(length, channels, max_timescale=10000.0):
    log_inc = math.log(max_timescale) / (channels // 2 - 1)
    inv_ts = jnp.exp(-log_inc * jnp.arange(channels // 2, dtype=jnp.float32))
    t = jnp.arange(length, dtype=jnp.float32)[:, None] * inv_ts[None, :]
    return jnp.concatenate([jnp.sin(t), jnp.cos(t)], axis=1)


def pad_or_trim(a):
    n = a.shape[0]
    if n > N_SAMPLES:
        return a[:N_SAMPLES]
    if n < N_SAMPLES:
        return jnp.pad(a, (0, N_SAMPLES - n))
    return a


def init_params(key):
    keys = jax.random.split(key, 16)
    nrm = lambda k, s, sc=0.05: sc * jax.random.normal(k, s, jnp.float32)
    L, D, H4 = N_LAYERS, D_MODEL, 4 * D_MODEL

    # ---- global constants slab [C_ROWS, 32] (conv weights stored as [k, C_in, C_out]) ----
    conv1_w = nrm(keys[0], (3, N_MELS, D))
    conv1_b = nrm(keys[1], (1, D), 0.02)
    conv2_w = nrm(keys[2], (3, D, D))
    conv2_b = nrm(keys[3], (1, D), 0.02)
    melfb = jnp.pad(make_mel_filters(N_FREQ, N_MELS).T,
                    ((0, N_FFT - N_FREQ), (0, D - N_MELS)))   # [64, 32] (lanes :8 valid)
    const32 = jnp.concatenate([
        conv1_w.reshape(3 * N_MELS, D),       # rows 0:24    conv1 taps
        conv2_w.reshape(3 * D, D),            # rows 24:120  conv2 taps
        sinusoids(N_CTX, D),                  # rows 120:136 positional embedding
        conv1_b,                              # row 136
        conv2_b,                              # row 137
        jnp.ones((1, D), jnp.float32),        # row 138  ln_post weight
        jnp.zeros((1, D), jnp.float32),       # row 139  ln_post bias
        melfb,                                # rows 140:204 mel filterbank
    ], axis=0)
    assert const32.shape == (C_ROWS, D)

    # ---- per-layer weight slab, flattened to [L * R_ROWS, 128] ----
    # linear weights stored as [in, out] (torch [out, in] transposed).
    wq = nrm(keys[4], (L, D, D)); wk = nrm(keys[5], (L, D, D))
    wv = nrm(keys[6], (L, D, D)); wo = nrm(keys[7], (L, D, D))
    bq = nrm(keys[8], (L, 1, D), 0.02); bv = nrm(keys[9], (L, 1, D), 0.02)
    bo = nrm(keys[10], (L, 1, D), 0.02); b2 = nrm(keys[11], (L, 1, D), 0.02)
    w1 = nrm(keys[12], (L, D, H4)); b1 = nrm(keys[13], (L, 1, H4), 0.02)
    w2 = nrm(keys[14], (L, H4, D))
    ones = jnp.ones((L, 1, D), jnp.float32)
    zeros = jnp.zeros((L, 1, D), jnp.float32)
    # Packed per-layer vectors: [attn_ln_w, attn_ln_b, bq, bv, bo, mlp_ln_w, mlp_ln_b, b2]
    vecs = jnp.concatenate([ones, zeros, bq, bv, bo, ones, zeros, b2], axis=1)  # [L, 8, D]

    lane_pad = lambda a: jnp.pad(a, ((0, 0), (0, 0), (0, 128 - a.shape[-1])))
    layers = jnp.concatenate([
        lane_pad(jnp.concatenate([wq, wk, wv], axis=-1)),   # rows   0:32   [wq|wk|wv|0]
        lane_pad(wo),                                       # rows  32:64
        w1,                                                 # rows  64:96
        lane_pad(w2),                                       # rows  96:224
        lane_pad(vecs),                                     # rows 224:232
        b1,                                                 # row  232
    ], axis=1)
    layers = jnp.pad(layers, ((0, 0), (0, R_ROWS - layers.shape[1]), (0, 0)))
    layers2d = layers.reshape(L * R_ROWS, 128)

    return {"dft": make_dft_constants(), "const32": const32, "layers": layers2d}


# ---------------------------------------------------------------------------
# Forward: one pallas_call; wrapper only does pad_or_trim + reflect pad + framing.
# ---------------------------------------------------------------------------
def audio2whisper_forward(audio, params):
    """audio: [1, audln] float32 -> [1, audln // 320, D_MODEL] float32."""
    audln = audio.shape[1]
    ppgln = audln // HOP_PPG

    a = pad_or_trim(audio[0])
    # torch.stft(center=True, pad_mode='reflect'); last frame dropped as in Whisper.
    padded = jnp.pad(a, (N_FFT // 2, N_FFT // 2), mode="reflect")
    # hop (160) > n_fft (64): each frame is the first n_fft samples of its hop-sized row.
    frames = padded[: N_FRAMES * HOP_LENGTH].reshape(N_FRAMES, HOP_LENGTH)[:, :N_FFT]
    # Reorder rows even|odd so the stride-2 conv2 needs no strided sublane reads in-kernel.
    frames_eo = jnp.concatenate([frames[0::2], frames[1::2]], axis=0)   # [32, 64]

    vmem = pl.BlockSpec(memory_space=pltpu.MemorySpace.VMEM)
    enc = pl.pallas_call(
        audio2whisper_kernel,
        out_shape=jax.ShapeDtypeStruct((N_CTX, D_MODEL), jnp.float32),
        in_specs=[vmem, vmem, vmem, vmem],
        out_specs=vmem,
    )(frames_eo, params["dft"], params["const32"], params["layers"])

    ppg = enc[:ppgln, :]          # `ppg[:ppgln, ]` in the torch forward
    return ppg[None, :, :]        # `ppg[None, :, :]`


if __name__ == "__main__":
    root = jax.random.PRNGKey(0)
    k_audio, k_params = jax.random.split(root)

    audln = 2560                                  # -> ppgln = 8 frames returned
    audio = 0.1 * jax.random.normal(k_audio, (1, audln), jnp.float32)
    params = init_params(k_params)

    fwd = jax.jit(audio2whisper_forward)
    out = jax.block_until_ready(fwd(audio, params))

    assert out.shape == (1, audln // HOP_PPG, D_MODEL), out.shape
    assert out.dtype == jnp.float32
    assert bool(jnp.all(jnp.isfinite(out)))
    print("KERNEL_OK")
</pallas_src>

<mosaic_0001>
module attributes {stable_mosaic.version = 11 : i64} {
  func.func @audio2whisper_kernel(%arg0: memref<32x64xf32, #tpu.memory_space<vmem>>, %arg1: memref<64x128xf32, #tpu.memory_space<vmem>>, %arg2: memref<204x32xf32, #tpu.memory_space<vmem>>, %arg3: memref<480x128xf32, #tpu.memory_space<vmem>>, %arg4: memref<16x32xf32, #tpu.memory_space<vmem>>) attributes {dimension_semantics = [], scalar_prefetch = 0 : i64, scratch_operands = 0 : i64, tpu.core_type = #tpu.core_type<tc>} {
    %cst = arith.constant 1.000000e+00 : f32
    %0 = vector.broadcast %cst : f32 to vector<32x32xf32>
    %1 = tpu.iota {dimensions = array<i32: 0>} : vector<16x16xi32>
    %2 = tpu.iota {dimensions = array<i32: 1>} : vector<16x16xi32>
    %c1_i32 = arith.constant 1 : i32
    %3 = vector.broadcast %c1_i32 : i32 to vector<16x16xi32>
    %4 = arith.addi %2, %3 : vector<16x16xi32>
    %5 = arith.cmpi eq, %1, %4 : vector<16x16xi32>
    %6 = arith.extui %5 : vector<16x16xi1> to vector<16x16xi32>
    %7 = arith.sitofp %6 : vector<16x16xi32> to vector<16x16xf32>
    %c1_i32_0 = arith.constant 1 : i32
    %8 = vector.broadcast %c1_i32_0 : i32 to vector<16x16xi32>
    %9 = arith.addi %1, %8 : vector<16x16xi32>
    %10 = arith.cmpi eq, %9, %2 : vector<16x16xi32>
    %11 = arith.extui %10 : vector<16x16xi1> to vector<16x16xi32>
    %12 = arith.sitofp %11 : vector<16x16xi32> to vector<16x16xf32>
    %13 = tpu.iota {dimensions = array<i32: 1>} : vector<1x32xi32>
    %c0_i32 = arith.constant 0 : i32
    %14 = vector.broadcast %c0_i32 : i32 to vector<1x32xi32>
    %15 = arith.cmpi sge, %13, %14 : vector<1x32xi32>
    %c8_i32 = arith.constant 8 : i32
    %16 = vector.broadcast %c8_i32 : i32 to vector<1x32xi32>
    %17 = arith.cmpi slt, %13, %16 : vector<1x32xi32>
    %18 = arith.andi %15, %17 : vector<1x32xi1>
    %19 = arith.extui %18 : vector<1x32xi1> to vector<1x32xi32>
    %20 = arith.sitofp %19 : vector<1x32xi32> to vector<1x32xf32>
    %c8_i32_1 = arith.constant 8 : i32
    %21 = vector.broadcast %c8_i32_1 : i32 to vector<1x32xi32>
    %22 = arith.cmpi sge, %13, %21 : vector<1x32xi32>
    %c16_i32 = arith.constant 16 : i32
    %23 = vector.broadcast %c16_i32 : i32 to vector<1x32xi32>
    %24 = arith.cmpi slt, %13, %23 : vector<1x32xi32>
    %25 = arith.andi %22, %24 : vector<1x32xi1>
    %26 = arith.extui %25 : vector<1x32xi1> to vector<1x32xi32>
    %27 = arith.sitofp %26 : vector<1x32xi32> to vector<1x32xf32>
    %c16_i32_2 = arith.constant 16 : i32
    %28 = vector.broadcast %c16_i32_2 : i32 to vector<1x32xi32>
    %29 = arith.cmpi sge, %13, %28 : vector<1x32xi32>
    %c24_i32 = arith.constant 24 : i32
    %30 = vector.broadcast %c24_i32 : i32 to vector<1x32xi32>
    %31 = arith.cmpi slt, %13, %30 : vector<1x32xi32>
    %32 = arith.andi %29, %31 : vector<1x32xi1>
    %33 = arith.extui %32 : vector<1x32xi1> to vector<1x32xi32>
    %34 = arith.sitofp %33 : vector<1x32xi32> to vector<1x32xf32>
    %c24_i32_3 = arith.constant 24 : i32
    %35 = vector.broadcast %c24_i32_3 : i32 to vector<1x32xi32>
    %36 = arith.cmpi sge, %13, %35 : vector<1x32xi32>
    %c32_i32 = arith.constant 32 : i32
    %37 = vector.broadcast %c32_i32 : i32 to vector<1x32xi32>
    %38 = arith.cmpi slt, %13, %37 : vector<1x32xi32>
    %39 = arith.andi %36, %38 : vector<1x32xi1>
    %40 = arith.extui %39 : vector<1x32xi1> to vector<1x32xi32>
    %41 = arith.sitofp %40 : vector<1x32xi32> to vector<1x32xf32>
    %c0 = arith.constant 0 : index
    %c0_4 = arith.constant 0 : index
    %42 = vector.load %arg0[%c0, %c0_4] : memref<32x64xf32, #tpu.memory_space<vmem>>, vector<32x64xf32>
    %c0_5 = arith.constant 0 : index
    %c0_6 = arith.constant 0 : index
    %43 = vector.load %arg1[%c0_5, %c0_6] : memref<64x128xf32, #tpu.memory_space<vmem>>, vector<64x128xf32>
    %cst_7 = arith.constant dense<0.000000e+00> : vector<32x128xf32>
    %44 = tpu.matmul %42, %43, %cst_7 {dimension_numbers = #tpu.dot_dimension_numbers<[1], [0], [0], [1], [0, 0, 1, 1], [], []>} : vector<32x64xf32>, vector<64x128xf32>, vector<32x128xf32> -> vector<32x128xf32>
    %45 = vector.extract_strided_slice %44 {offsets = [0, 0], sizes = [32, 64], strides = [1, 1]} : vector<32x128xf32> to vector<32x64xf32>
    %46 = vector.extract_strided_slice %44 {offsets = [0, 64], sizes = [32, 64], strides = [1, 1]} : vector<32x128xf32> to vector<32x64xf32>
    %47 = arith.mulf %45, %45 : vector<32x64xf32>
    %48 = arith.mulf %46, %46 : vector<32x64xf32>
    %49 = arith.addf %47, %48 : vector<32x64xf32>
    %c140 = arith.constant 140 : index
    %c0_8 = arith.constant 0 : index
    %50 = vector.load %arg2[%c140, %c0_8] : memref<204x32xf32, #tpu.memory_space<vmem>>, vector<64x8xf32>
    %cst_9 = arith.constant dense<0.000000e+00> : vector<32x8xf32>
    %51 = tpu.matmul %49, %50, %cst_9 {dimension_numbers = #tpu.dot_dimension_numbers<[1], [0], [0], [1], [0, 0, 1, 1], [], []>} : vector<32x64xf32>, vector<64x8xf32>, vector<32x8xf32> -> vector<32x8xf32>
    %cst_10 = arith.constant 1.000000e-10 : f32
    %52 = vector.broadcast %cst_10 : f32 to vector<32x8xf32>
    %53 = arith.maximumf %51, %52 : vector<32x8xf32>
    %54 = math.log %53 : vector<32x8xf32>
    %cst_11 = arith.constant 0.434294492 : f32
    %55 = vector.broadcast %cst_11 : f32 to vector<32x8xf32>
    %56 = arith.mulf %54, %55 : vector<32x8xf32>
    %57 = vector.shape_cast %56 : vector<32x8xf32> to vector<1x32x8xf32>
    %cst_12 = arith.constant dense<0xFF800000> : vector<1xf32>
    %58 = vector.multi_reduction <maximumf>, %57, %cst_12 [1, 2] : vector<1x32x8xf32> to vector<1xf32>
    %59 = vector.shape_cast %58 : vector<1xf32> to vector<1x1x1xf32>
    %60 = vector.extract %59[0, 0, 0] : f32 from vector<1x1x1xf32>
    %cst_13 = arith.constant 8.000000e+00 : f32
    %61 = arith.subf %60, %cst_13 : f32
    %62 = vector.broadcast %61 : f32 to vector<32x8xf32>
    %63 = arith.maximumf %56, %62 : vector<32x8xf32>
    %cst_14 = arith.constant 4.000000e+00 : f32
    %64 = vector.broadcast %cst_14 : f32 to vector<32x8xf32>
    %65 = arith.addf %63, %64 : vector<32x8xf32>
    %cst_15 = arith.constant 4.000000e+00 : f32
    %66 = vector.broadcast %cst_15 : f32 to vector<32x8xf32>
    %67 = arith.divf %65, %66 : vector<32x8xf32>
    %68 = vector.extract_strided_slice %67 {offsets = [0, 0], sizes = [16, 8], strides = [1, 1]} : vector<32x8xf32> to vector<16x8xf32>
    %69 = vector.extract_strided_slice %67 {offsets = [16, 0], sizes = [16, 8], strides = [1, 1]} : vector<32x8xf32> to vector<16x8xf32>
    %c0_16 = arith.constant 0 : index
    %c0_17 = arith.constant 0 : index
    %70 = vector.load %arg2[%c0_16, %c0_17] : memref<204x32xf32, #tpu.memory_space<vmem>>, vector<8x32xf32>
    %c8 = arith.constant 8 : index
    %c0_18 = arith.constant 0 : index
    %71 = vector.load %arg2[%c8, %c0_18] : memref<204x32xf32, #tpu.memory_space<vmem>>, vector<8x32xf32>
    %c16 = arith.constant 16 : index
    %c0_19 = arith.constant 0 : index
    %72 = vector.load %arg2[%c16, %c0_19] : memref<204x32xf32, #tpu.memory_space<vmem>>, vector<8x32xf32>
    %c136 = arith.constant 136 : index
    %c0_20 = arith.constant 0 : index
    %73 = vector.load %arg2[%c136, %c0_20] : memref<204x32xf32, #tpu.memory_space<vmem>>, vector<1x32xf32>
    %cst_21 = arith.constant dense<0.000000e+00> : vector<16x8xf32>
    %74 = tpu.matmul %7, %69, %cst_21 {dimension_numbers = #tpu.dot_dimension_numbers<[1], [0], [0], [1], [0, 0, 1, 1], [], []>} : vector<16x16xf32>, vector<16x8xf32>, vector<16x8xf32> -> vector<16x8xf32>
    %cst_22 = arith.constant dense<0.000000e+00> : vector<16x8xf32>
    %75 = tpu.matmul %12, %68, %cst_22 {dimension_numbers = #tpu.dot_dimension_numbers<[1], [0], [0], [1], [0, 0, 1, 1], [], []>} : vector<16x16xf32>, vector<16x8xf32>, vector<16x8xf32> -> vector<16x8xf32>
    %cst_23 = arith.constant dense<0.000000e+00> : vector<16x32xf32>
    %76 = tpu.matmul %74, %70, %cst_23 {dimension_numbers = #tpu.dot_dimension_numbers<[1], [0], [0], [1], [0, 0, 1, 1], [], []>} : vector<16x8xf32>, vector<8x32xf32>, vector<16x32xf32> -> vector<16x32xf32>
    %cst_24 = arith.constant dense<0.000000e+00> : vector<16x32xf32>
    %77 = tpu.matmul %68, %71, %cst_24 {dimension_numbers = #tpu.dot_dimension_numbers<[1], [0], [0], [1], [0, 0, 1, 1], [], []>} : vector<16x8xf32>, vector<8x32xf32>, vector<16x32xf32> -> vector<16x32xf32>
    %78 = arith.addf %76, %77 : vector<16x32xf32>
    %cst_25 = arith.constant dense<0.000000e+00> : vector<16x32xf32>
    %79 = tpu.matmul %69, %72, %cst_25 {dimension_numbers = #tpu.dot_dimension_numbers<[1], [0], [0], [1], [0, 0, 1, 1], [], []>} : vector<16x8xf32>, vector<8x32xf32>, vector<16x32xf32> -> vector<16x32xf32>
    %80 = arith.addf %78, %79 : vector<16x32xf32>
    %81 = vector.broadcast %73 : vector<1x32xf32> to vector<16x32xf32>
    %82 = arith.addf %80, %81 : vector<16x32xf32>
    %cst_26 = arith.constant 5.000000e-01 : f32
    %83 = vector.broadcast %cst_26 : f32 to vector<16x32xf32>
    %84 = arith.mulf %83, %82 : vector<16x32xf32>
    %cst_27 = arith.constant 4.471500e-02 : f32
    %85 = vector.broadcast %cst_27 : f32 to vector<16x32xf32>
    %86 = arith.mulf %85, %82 : vector<16x32xf32>
    %87 = arith.mulf %86, %82 : vector<16x32xf32>
    %88 = arith.mulf %87, %82 : vector<16x32xf32>
    %89 = arith.addf %82, %88 : vector<16x32xf32>
    %cst_28 = arith.constant 0.797884583 : f32
    %90 = vector.broadcast %cst_28 : f32 to vector<16x32xf32>
    %91 = arith.mulf %90, %89 : vector<16x32xf32>
    %92 = math.tanh %91 : vector<16x32xf32>
    %cst_29 = arith.constant 1.000000e+00 : f32
    %93 = vector.broadcast %cst_29 : f32 to vector<16x32xf32>
    %94 = arith.addf %93, %92 : vector<16x32xf32>
    %95 = arith.mulf %84, %94 : vector<16x32xf32>
    %cst_30 = arith.constant dense<0.000000e+00> : vector<16x32xf32>
    %96 = tpu.matmul %68, %70, %cst_30 {dimension_numbers = #tpu.dot_dimension_numbers<[1], [0], [0], [1], [0, 0, 1, 1], [], []>} : vector<16x8xf32>, vector<8x32xf32>, vector<16x32xf32> -> vector<16x32xf32>
    %cst_31 = arith.constant dense<0.000000e+00> : vector<16x32xf32>
    %97 = tpu.matmul %69, %71, %cst_31 {dimension_numbers = #tpu.dot_dimension_numbers<[1], [0], [0], [1], [0, 0, 1, 1], [], []>} : vector<16x8xf32>, vector<8x32xf32>, vector<16x32xf32> -> vector<16x32xf32>
    %98 = arith.addf %96, %97 : vector<16x32xf32>
    %cst_32 = arith.constant dense<0.000000e+00> : vector<16x32xf32>
    %99 = tpu.matmul %75, %72, %cst_32 {dimension_numbers = #tpu.dot_dimension_numbers<[1], [0], [0], [1], [0, 0, 1, 1], [], []>} : vector<16x8xf32>, vector<8x32xf32>, vector<16x32xf32> -> vector<16x32xf32>
    %100 = arith.addf %98, %99 : vector<16x32xf32>
    %101 = vector.broadcast %73 : vector<1x32xf32> to vector<16x32xf32>
    %102 = arith.addf %100, %101 : vector<16x32xf32>
    %cst_33 = arith.constant 5.000000e-01 : f32
    %103 = vector.broadcast %cst_33 : f32 to vector<16x32xf32>
    %104 = arith.mulf %103, %102 : vector<16x32xf32>
    %cst_34 = arith.constant 4.471500e-02 : f32
    %105 = vector.broadcast %cst_34 : f32 to vector<16x32xf32>
    %106 = arith.mulf %105, %102 : vector<16x32xf32>
    %107 = arith.mulf %106, %102 : vector<16x32xf32>
    %108 = arith.mulf %107, %102 : vector<16x32xf32>
    %109 = arith.addf %102, %108 : vector<16x32xf32>
    %cst_35 = arith.constant 0.797884583 : f32
    %110 = vector.broadcast %cst_35 : f32 to vector<16x32xf32>
    %111 = arith.mulf %110, %109 : vector<16x32xf32>
    %112 = math.tanh %111 : vector<16x32xf32>
    %cst_36 = arith.constant 1.000000e+00 : f32
    %113 = vector.broadcast %cst_36 : f32 to vector<16x32xf32>
    %114 = arith.addf %113, %112 : vector<16x32xf32>
    %115 = arith.mulf %104, %114 : vector<16x32xf32>
    %c24 = arith.constant 24 : index
    %c0_37 = arith.constant 0 : index
    %116 = vector.load %arg2[%c24, %c0_37] : memref<204x32xf32, #tpu.memory_space<vmem>>, vector<32x32xf32>
    %c56 = arith.constant 56 : index
    %c0_38 = arith.constant 0 : index
    %117 = vector.load %arg2[%c56, %c0_38] : memref<204x32xf32, #tpu.memory_space<vmem>>, vector<32x32xf32>
    %c88 = arith.constant 88 : index
    %c0_39 = arith.constant 0 : index
    %118 = vector.load %arg2[%c88, %c0_39] : memref<204x32xf32, #tpu.memory_space<vmem>>, vector<32x32xf32>
    %c137 = arith.constant 137 : index
    %c0_40 = arith.constant 0 : index
    %119 = vector.load %arg2[%c137, %c0_40] : memref<204x32xf32, #tpu.memory_space<vmem>>, vector<1x32xf32>
    %c120 = arith.constant 120 : index
    %c0_41 = arith.constant 0 : index
    %120 = vector.load %arg2[%c120, %c0_41] : memref<204x32xf32, #tpu.memory_space<vmem>>, vector<16x32xf32>
    %cst_42 = arith.constant dense<0.000000e+00> : vector<16x32xf32>
    %121 = tpu.matmul %7, %115, %cst_42 {dimension_numbers = #tpu.dot_dimension_numbers<[1], [0], [0], [1], [0, 0, 1, 1], [], []>} : vector<16x16xf32>, vector<16x32xf32>, vector<16x32xf32> -> vector<16x32xf32>
    %cst_43 = arith.constant dense<0.000000e+00> : vector<16x32xf32>
    %122 = tpu.matmul %121, %116, %cst_43 {dimension_numbers = #tpu.dot_dimension_numbers<[1], [0], [0], [1], [0, 0, 1, 1], [], []>} : vector<16x32xf32>, vector<32x32xf32>, vector<16x32xf32> -> vector<16x32xf32>
    %cst_44 = arith.constant dense<0.000000e+00> : vector<16x32xf32>
    %123 = tpu.matmul %95, %117, %cst_44 {dimension_numbers = #tpu.dot_dimension_numbers<[1], [0], [0], [1], [0, 0, 1, 1], [], []>} : vector<16x32xf32>, vector<32x32xf32>, vector<16x32xf32> -> vector<16x32xf32>
    %124 = arith.addf %122, %123 : vector<16x32xf32>
    %cst_45 = arith.constant dense<0.000000e+00> : vector<16x32xf32>
    %125 = tpu.matmul %115, %118, %cst_45 {dimension_numbers = #tpu.dot_dimension_numbers<[1], [0], [0], [1], [0, 0, 1, 1], [], []>} : vector<16x32xf32>, vector<32x32xf32>, vector<16x32xf32> -> vector<16x32xf32>
    %126 = arith.addf %124, %125 : vector<16x32xf32>
    %127 = vector.broadcast %119 : vector<1x32xf32> to vector<16x32xf32>
    %128 = arith.addf %126, %127 : vector<16x32xf32>
    %cst_46 = arith.constant 5.000000e-01 : f32
    %129 = vector.broadcast %cst_46 : f32 to vector<16x32xf32>
    %130 = arith.mulf %129, %128 : vector<16x32xf32>
    %cst_47 = arith.constant 4.471500e-02 : f32
    %131 = vector.broadcast %cst_47 : f32 to vector<16x32xf32>
    %132 = arith.mulf %131, %128 : vector<16x32xf32>
    %133 = arith.mulf %132, %128 : vector<16x32xf32>
    %134 = arith.mulf %133, %128 : vector<16x32xf32>
    %135 = arith.addf %128, %134 : vector<16x32xf32>
    %cst_48 = arith.constant 0.797884583 : f32
    %136 = vector.broadcast %cst_48 : f32 to vector<16x32xf32>
    %137 = arith.mulf %136, %135 : vector<16x32xf32>
    %138 = math.tanh %137 : vector<16x32xf32>
    %cst_49 = arith.constant 1.000000e+00 : f32
    %139 = vector.broadcast %cst_49 : f32 to vector<16x32xf32>
    %140 = arith.addf %139, %138 : vector<16x32xf32>
    %141 = arith.mulf %130, %140 : vector<16x32xf32>
    %142 = arith.addf %141, %120 : vector<16x32xf32>
    %c224 = arith.constant 224 : index
    %c0_50 = arith.constant 0 : index
    %143 = vector.load %arg3[%c224, %c0_50] : memref<480x128xf32, #tpu.memory_space<vmem>>, vector<1x32xf32>
    %c225 = arith.constant 225 : index
    %c0_51 = arith.constant 0 : index
    %144 = vector.load %arg3[%c225, %c0_51] : memref<480x128xf32, #tpu.memory_space<vmem>>, vector<1x32xf32>
    %cst_52 = arith.constant dense<0.000000e+00> : vector<16x32xf32>
    %145 = tpu.matmul %142, %0, %cst_52 {dimension_numbers = #tpu.dot_dimension_numbers<[1], [0], [0], [1], [0, 0, 1, 1], [], []>} : vector<16x32xf32>, vector<32x32xf32>, vector<16x32xf32> -> vector<16x32xf32>
    %cst_53 = arith.constant 3.125000e-02 : f32
    %146 = vector.broadcast %cst_53 : f32 to vector<16x32xf32>
    %147 = arith.mulf %145, %146 : vector<16x32xf32>
    %148 = arith.mulf %142, %142 : vector<16x32xf32>
    %cst_54 = arith.constant dense<0.000000e+00> : vector<16x32xf32>
    %149 = tpu.matmul %148, %0, %cst_54 {dimension_numbers = #tpu.dot_dimension_numbers<[1], [0], [0], [1], [0, 0, 1, 1], [], []>} : vector<16x32xf32>, vector<32x32xf32>, vector<16x32xf32> -> vector<16x32xf32>
    %cst_55 = arith.constant 3.125000e-02 : f32
    %150 = vector.broadcast %cst_55 : f32 to vector<16x32xf32>
    %151 = arith.mulf %149, %150 : vector<16x32xf32>
    %152 = arith.mulf %147, %147 : vector<16x32xf32>
    %153 = arith.subf %151, %152 : vector<16x32xf32>
    %154 = arith.subf %142, %147 : vector<16x32xf32>
    %cst_56 = arith.constant 9.99999974E-6 : f32
    %155 = vector.broadcast %cst_56 : f32 to vector<16x32xf32>
    %156 = arith.addf %153, %155 : vector<16x32xf32>
    %157 = math.rsqrt %156 : vector<16x32xf32>
    %158 = arith.mulf %154, %157 : vector<16x32xf32>
    %159 = vector.broadcast %143 : vector<1x32xf32> to vector<16x32xf32>
    %160 = arith.mulf %158, %159 : vector<16x32xf32>
    %161 = vector.broadcast %144 : vector<1x32xf32> to vector<16x32xf32>
    %162 = arith.addf %160, %161 : vector<16x32xf32>
    %c0_57 = arith.constant 0 : index
    %c0_58 = arith.constant 0 : index
    %163 = vector.load %arg3[%c0_57, %c0_58] : memref<480x128xf32, #tpu.memory_space<vmem>>, vector<32x128xf32>
    %cst_59 = arith.constant dense<0.000000e+00> : vector<16x128xf32>
    %164 = tpu.matmul %162, %163, %cst_59 {dimension_numbers = #tpu.dot_dimension_numbers<[1], [0], [0], [1], [0, 0, 1, 1], [], []>} : vector<16x32xf32>, vector<32x128xf32>, vector<16x128xf32> -> vector<16x128xf32>
    %165 = vector.extract_strided_slice %164 {offsets = [0, 0], sizes = [16, 32], strides = [1, 1]} : vector<16x128xf32> to vector<16x32xf32>
    %c226 = arith.constant 226 : index
    %c0_60 = arith.constant 0 : index
    %166 = vector.load %arg3[%c226, %c0_60] : memref<480x128xf32, #tpu.memory_space<vmem>>, vector<1x32xf32>
    %167 = vector.broadcast %166 : vector<1x32xf32> to vector<16x32xf32>
    %168 = arith.addf %165, %167 : vector<16x32xf32>
    %cst_61 = arith.constant 0.594603539 : f32
    %169 = vector.broadcast %cst_61 : f32 to vector<16x32xf32>
    %170 = arith.mulf %168, %169 : vector<16x32xf32>
    %171 = vector.extract_strided_slice %164 {offsets = [0, 32], sizes = [16, 32], strides = [1, 1]} : vector<16x128xf32> to vector<16x32xf32>
    %cst_62 = arith.constant 0.594603539 : f32
    %172 = vector.broadcast %cst_62 : f32 to vector<16x32xf32>
    %173 = arith.mulf %171, %172 : vector<16x32xf32>
    %174 = vector.extract_strided_slice %164 {offsets = [0, 64], sizes = [16, 32], strides = [1, 1]} : vector<16x128xf32> to vector<16x32xf32>
    %c227 = arith.constant 227 : index
    %c0_63 = arith.constant 0 : index
    %175 = vector.load %arg3[%c227, %c0_63] : memref<480x128xf32, #tpu.memory_space<vmem>>, vector<1x32xf32>
    %176 = vector.broadcast %175 : vector<1x32xf32> to vector<16x32xf32>
    %177 = arith.addf %174, %176 : vector<16x32xf32>
    %cst_64 = arith.constant 0.000000e+00 : f32
    %178 = vector.broadcast %cst_64 : f32 to vector<16x32xf32>
    %179 = vector.broadcast %20 : vector<1x32xf32> to vector<16x32xf32>
    %180 = arith.mulf %170, %179 : vector<16x32xf32>
    %cst_65 = arith.constant dense<0.000000e+00> : vector<16x16xf32>
    %181 = tpu.matmul %180, %173, %cst_65 {dimension_numbers = #tpu.dot_dimension_numbers<[1], [1], [0], [0], [0, 0, 1, 0], [], []>} : vector<16x32xf32>, vector<16x32xf32>, vector<16x16xf32> -> vector<16x16xf32>
    %cst_66 = arith.constant dense<0xFF800000> : vector<16xf32>
    %182 = vector.multi_reduction <maximumf>, %181, %cst_66 [1] : vector<16x16xf32> to vector<16xf32>
    %183 = vector.shape_cast %182 : vector<16xf32> to vector<16x1xf32>
    %184 = vector.broadcast %183 : vector<16x1xf32> to vector<16x16xf32>
    %185 = arith.subf %181, %184 : vector<16x16xf32>
    %186 = math.exp %185 : vector<16x16xf32>
    %cst_67 = arith.constant dense<0.000000e+00> : vector<16xf32>
    %187 = vector.multi_reduction <add>, %186, %cst_67 [1] : vector<16x16xf32> to vector<16xf32>
    %188 = vector.shape_cast %187 : vector<16xf32> to vector<16x1xf32>
    %189 = tpu.reciprocal %188 {approx = true} : vector<16x1xf32> -> vector<16x1xf32>
    %190 = vector.broadcast %189 : vector<16x1xf32> to vector<16x16xf32>
    %191 = arith.mulf %186, %190 : vector<16x16xf32>
    %192 = vector.broadcast %20 : vector<1x32xf32> to vector<16x32xf32>
    %193 = arith.mulf %177, %192 : vector<16x32xf32>
    %cst_68 = arith.constant dense<0.000000e+00> : vector<16x32xf32>
    %194 = tpu.matmul %191, %193, %cst_68 {dimension_numbers = #tpu.dot_dimension_numbers<[1], [0], [0], [1], [0, 0, 1, 1], [], []>} : vector<16x16xf32>, vector<16x32xf32>, vector<16x32xf32> -> vector<16x32xf32>
    %195 = arith.addf %178, %194 : vector<16x32xf32>
    %196 = vector.broadcast %27 : vector<1x32xf32> to vector<16x32xf32>
    %197 = arith.mulf %170, %196 : vector<16x32xf32>
    %cst_69 = arith.constant dense<0.000000e+00> : vector<16x16xf32>
    %198 = tpu.matmul %197, %173, %cst_69 {dimension_numbers = #tpu.dot_dimension_numbers<[1], [1], [0], [0], [0, 0, 1, 0], [], []>} : vector<16x32xf32>, vector<16x32xf32>, vector<16x16xf32> -> vector<16x16xf32>
    %cst_70 = arith.constant dense<0xFF800000> : vector<16xf32>
    %199 = vector.multi_reduction <maximumf>, %198, %cst_70 [1] : vector<16x16xf32> to vector<16xf32>
    %200 = vector.shape_cast %199 : vector<16xf32> to vector<16x1xf32>
    %201 = vector.broadcast %200 : vector<16x1xf32> to vector<16x16xf32>
    %202 = arith.subf %198, %201 : vector<16x16xf32>
    %203 = math.exp %202 : vector<16x16xf32>
    %cst_71 = arith.constant dense<0.000000e+00> : vector<16xf32>
    %204 = vector.multi_reduction <add>, %203, %cst_71 [1] : vector<16x16xf32> to vector<16xf32>
    %205 = vector.shape_cast %204 : vector<16xf32> to vector<16x1xf32>
    %206 = tpu.reciprocal %205 {approx = true} : vector<16x1xf32> -> vector<16x1xf32>
    %207 = vector.broadcast %206 : vector<16x1xf32> to vector<16x16xf32>
    %208 = arith.mulf %203, %207 : vector<16x16xf32>
    %209 = vector.broadcast %27 : vector<1x32xf32> to vector<16x32xf32>
    %210 = arith.mulf %177, %209 : vector<16x32xf32>
    %cst_72 = arith.constant dense<0.000000e+00> : vector<16x32xf32>
    %211 = tpu.matmul %208, %210, %cst_72 {dimension_numbers = #tpu.dot_dimension_numbers<[1], [0], [0], [1], [0, 0, 1, 1], [], []>} : vector<16x16xf32>, vector<16x32xf32>, vector<16x32xf32> -> vector<16x32xf32>
    %212 = arith.addf %195, %211 : vector<16x32xf32>
    %213 = vector.broadcast %34 : vector<1x32xf32> to vector<16x32xf32>
    %214 = arith.mulf %170, %213 : vector<16x32xf32>
    %cst_73 = arith.constant dense<0.000000e+00> : vector<16x16xf32>
    %215 = tpu.matmul %214, %173, %cst_73 {dimension_numbers = #tpu.dot_dimension_numbers<[1], [1], [0], [0], [0, 0, 1, 0], [], []>} : vector<16x32xf32>, vector<16x32xf32>, vector<16x16xf32> -> vector<16x16xf32>
    %cst_74 = arith.constant dense<0xFF800000> : vector<16xf32>
    %216 = vector.multi_reduction <maximumf>, %215, %cst_74 [1] : vector<16x16xf32> to vector<16xf32>
    %217 = vector.shape_cast %216 : vector<16xf32> to vector<16x1xf32>
    %218 = vector.broadcast %217 : vector<16x1xf32> to vector<16x16xf32>
    %219 = arith.subf %215, %218 : vector<16x16xf32>
    %220 = math.exp %219 : vector<16x16xf32>
    %cst_75 = arith.constant dense<0.000000e+00> : vector<16xf32>
    %221 = vector.multi_reduction <add>, %220, %cst_75 [1] : vector<16x16xf32> to vector<16xf32>
    %222 = vector.shape_cast %221 : vector<16xf32> to vector<16x1xf32>
    %223 = tpu.reciprocal %222 {approx = true} : vector<16x1xf32> -> vector<16x1xf32>
    %224 = vector.broadcast %223 : vector<16x1xf32> to vector<16x16xf32>
    %225 = arith.mulf %220, %224 : vector<16x16xf32>
    %226 = vector.broadcast %34 : vector<1x32xf32> to vector<16x32xf32>
    %227 = arith.mulf %177, %226 : vector<16x32xf32>
    %cst_76 = arith.constant dense<0.000000e+00> : vector<16x32xf32>
    %228 = tpu.matmul %225, %227, %cst_76 {dimension_numbers = #tpu.dot_dimension_numbers<[1], [0], [0], [1], [0, 0, 1, 1], [], []>} : vector<16x16xf32>, vector<16x32xf32>, vector<16x32xf32> -> vector<16x32xf32>
    %229 = arith.addf %212, %228 : vector<16x32xf32>
    %230 = vector.broadcast %41 : vector<1x32xf32> to vector<16x32xf32>
    %231 = arith.mulf %170, %230 : vector<16x32xf32>
    %cst_77 = arith.constant dense<0.000000e+00> : vector<16x16xf32>
    %232 = tpu.matmul %231, %173, %cst_77 {dimension_numbers = #tpu.dot_dimension_numbers<[1], [1], [0], [0], [0, 0, 1, 0], [], []>} : vector<16x32xf32>, vector<16x32xf32>, vector<16x16xf32> -> vector<16x16xf32>
    %cst_78 = arith.constant dense<0xFF800000> : vector<16xf32>
    %233 = vector.multi_reduction <maximumf>, %232, %cst_78 [1] : vector<16x16xf32> to vector<16xf32>
    %234 = vector.shape_cast %233 : vector<16xf32> to vector<16x1xf32>
    %235 = vector.broadcast %234 : vector<16x1xf32> to vector<16x16xf32>
    %236 = arith.subf %232, %235 : vector<16x16xf32>
    %237 = math.exp %236 : vector<16x16xf32>
    %cst_79 = arith.constant dense<0.000000e+00> : vector<16xf32>
    %238 = vector.multi_reduction <add>, %237, %cst_79 [1] : vector<16x16xf32> to vector<16xf32>
    %239 = vector.shape_cast %238 : vector<16xf32> to vector<16x1xf32>
    %240 = tpu.reciprocal %239 {approx = true} : vector<16x1xf32> -> vector<16x1xf32>
    %241 = vector.broadcast %240 : vector<16x1xf32> to vector<16x16xf32>
    %242 = arith.mulf %237, %241 : vector<16x16xf32>
    %243 = vector.broadcast %41 : vector<1x32xf32> to vector<16x32xf32>
    %244 = arith.mulf %177, %243 : vector<16x32xf32>
    %cst_80 = arith.constant dense<0.000000e+00> : vector<16x32xf32>
    %245 = tpu.matmul %242, %244, %cst_80 {dimension_numbers = #tpu.dot_dimension_numbers<[1], [0], [0], [1], [0, 0, 1, 1], [], []>} : vector<16x16xf32>, vector<16x32xf32>, vector<16x32xf32> -> vector<16x32xf32>
    %246 = arith.addf %229, %245 : vector<16x32xf32>
    %c32 = arith.constant 32 : index
    %c0_81 = arith.constant 0 : index
    %247 = vector.load %arg3[%c32, %c0_81] : memref<480x128xf32, #tpu.memory_space<vmem>>, vector<32x128xf32>
    %cst_82 = arith.constant dense<0.000000e+00> : vector<16x128xf32>
    %248 = tpu.matmul %246, %247, %cst_82 {dimension_numbers = #tpu.dot_dimension_numbers<[1], [0], [0], [1], [0, 0, 1, 1], [], []>} : vector<16x32xf32>, vector<32x128xf32>, vector<16x128xf32> -> vector<16x128xf32>
    %249 = vector.extract_strided_slice %248 {offsets = [0, 0], sizes = [16, 32], strides = [1, 1]} : vector<16x128xf32> to vector<16x32xf32>
    %250 = arith.addf %142, %249 : vector<16x32xf32>
    %c228 = arith.constant 228 : index
    %c0_83 = arith.constant 0 : index
    %251 = vector.load %arg3[%c228, %c0_83] : memref<480x128xf32, #tpu.memory_space<vmem>>, vector<1x32xf32>
    %252 = vector.broadcast %251 : vector<1x32xf32> to vector<16x32xf32>
    %253 = arith.addf %250, %252 : vector<16x32xf32>
    %c229 = arith.constant 229 : index
    %c0_84 = arith.constant 0 : index
    %254 = vector.load %arg3[%c229, %c0_84] : memref<480x128xf32, #tpu.memory_space<vmem>>, vector<1x32xf32>
    %c230 = arith.constant 230 : index
    %c0_85 = arith.constant 0 : index
    %255 = vector.load %arg3[%c230, %c0_85] : memref<480x128xf32, #tpu.memory_space<vmem>>, vector<1x32xf32>
    %cst_86 = arith.constant dense<0.000000e+00> : vector<16x32xf32>
    %256 = tpu.matmul %253, %0, %cst_86 {dimension_numbers = #tpu.dot_dimension_numbers<[1], [0], [0], [1], [0, 0, 1, 1], [], []>} : vector<16x32xf32>, vector<32x32xf32>, vector<16x32xf32> -> vector<16x32xf32>
    %cst_87 = arith.constant 3.125000e-02 : f32
    %257 = vector.broadcast %cst_87 : f32 to vector<16x32xf32>
    %258 = arith.mulf %256, %257 : vector<16x32xf32>
    %259 = arith.mulf %253, %253 : vector<16x32xf32>
    %cst_88 = arith.constant dense<0.000000e+00> : vector<16x32xf32>
    %260 = tpu.matmul %259, %0, %cst_88 {dimension_numbers = #tpu.dot_dimension_numbers<[1], [0], [0], [1], [0, 0, 1, 1], [], []>} : vector<16x32xf32>, vector<32x32xf32>, vector<16x32xf32> -> vector<16x32xf32>
    %cst_89 = arith.constant 3.125000e-02 : f32
    %261 = vector.broadcast %cst_89 : f32 to vector<16x32xf32>
    %262 = arith.mulf %260, %261 : vector<16x32xf32>
    %263 = arith.mulf %258, %258 : vector<16x32xf32>
    %264 = arith.subf %262, %263 : vector<16x32xf32>
    %265 = arith.subf %253, %258 : vector<16x32xf32>
    %cst_90 = arith.constant 9.99999974E-6 : f32
    %266 = vector.broadcast %cst_90 : f32 to vector<16x32xf32>
    %267 = arith.addf %264, %266 : vector<16x32xf32>
    %268 = math.rsqrt %267 : vector<16x32xf32>
    %269 = arith.mulf %265, %268 : vector<16x32xf32>
    %270 = vector.broadcast %254 : vector<1x32xf32> to vector<16x32xf32>
    %271 = arith.mulf %269, %270 : vector<16x32xf32>
    %272 = vector.broadcast %255 : vector<1x32xf32> to vector<16x32xf32>
    %273 = arith.addf %271, %272 : vector<16x32xf32>
    %c64 = arith.constant 64 : index
    %c0_91 = arith.constant 0 : index
    %274 = vector.load %arg3[%c64, %c0_91] : memref<480x128xf32, #tpu.memory_space<vmem>>, vector<32x128xf32>
    %c232 = arith.constant 232 : index
    %c0_92 = arith.constant 0 : index
    %275 = vector.load %arg3[%c232, %c0_92] : memref<480x128xf32, #tpu.memory_space<vmem>>, vector<1x128xf32>
    %cst_93 = arith.constant dense<0.000000e+00> : vector<16x128xf32>
    %276 = tpu.matmul %273, %274, %cst_93 {dimension_numbers = #tpu.dot_dimension_numbers<[1], [0], [0], [1], [0, 0, 1, 1], [], []>} : vector<16x32xf32>, vector<32x128xf32>, vector<16x128xf32> -> vector<16x128xf32>
    %277 = vector.broadcast %275 : vector<1x128xf32> to vector<16x128xf32>
    %278 = arith.addf %276, %277 : vector<16x128xf32>
    %cst_94 = arith.constant 5.000000e-01 : f32
    %279 = vector.broadcast %cst_94 : f32 to vector<16x128xf32>
    %280 = arith.mulf %279, %278 : vector<16x128xf32>
    %cst_95 = arith.constant 4.471500e-02 : f32
    %281 = vector.broadcast %cst_95 : f32 to vector<16x128xf32>
    %282 = arith.mulf %281, %278 : vector<16x128xf32>
    %283 = arith.mulf %282, %278 : vector<16x128xf32>
    %284 = arith.mulf %283, %278 : vector<16x128xf32>
    %285 = arith.addf %278, %284 : vector<16x128xf32>
    %cst_96 = arith.constant 0.797884583 : f32
    %286 = vector.broadcast %cst_96 : f32 to vector<16x128xf32>
    %287 = arith.mulf %286, %285 : vector<16x128xf32>
    %288 = math.tanh %287 : vector<16x128xf32>
    %cst_97 = arith.constant 1.000000e+00 : f32
    %289 = vector.broadcast %cst_97 : f32 to vector<16x128xf32>
    %290 = arith.addf %289, %288 : vector<16x128xf32>
    %291 = arith.mulf %280, %290 : vector<16x128xf32>
    %c96 = arith.constant 96 : index
    %c0_98 = arith.constant 0 : index
    %292 = vector.load %arg3[%c96, %c0_98] : memref<480x128xf32, #tpu.memory_space<vmem>>, vector<128x128xf32>
    %cst_99 = arith.constant dense<0.000000e+00> : vector<16x128xf32>
    %293 = tpu.matmul %291, %292, %cst_99 {dimension_numbers = #tpu.dot_dimension_numbers<[1], [0], [0], [1], [0, 0, 1, 1], [], []>} : vector<16x128xf32>, vector<128x128xf32>, vector<16x128xf32> -> vector<16x128xf32>
    %294 = vector.extract_strided_slice %293 {offsets = [0, 0], sizes = [16, 32], strides = [1, 1]} : vector<16x128xf32> to vector<16x32xf32>
    %295 = arith.addf %253, %294 : vector<16x32xf32>
    %c231 = arith.constant 231 : index
    %c0_100 = arith.constant 0 : index
    %296 = vector.load %arg3[%c231, %c0_100] : memref<480x128xf32, #tpu.memory_space<vmem>>, vector<1x32xf32>
    %297 = vector.broadcast %296 : vector<1x32xf32> to vector<16x32xf32>
    %298 = arith.addf %295, %297 : vector<16x32xf32>
    %c464 = arith.constant 464 : index
    %c0_101 = arith.constant 0 : index
    %299 = vector.load %arg3[%c464, %c0_101] : memref<480x128xf32, #tpu.memory_space<vmem>>, vector<1x32xf32>
    %c465 = arith.constant 465 : index
    %c0_102 = arith.constant 0 : index
    %300 = vector.load %arg3[%c465, %c0_102] : memref<480x128xf32, #tpu.memory_space<vmem>>, vector<1x32xf32>
    %cst_103 = arith.constant dense<0.000000e+00> : vector<16x32xf32>
    %301 = tpu.matmul %298, %0, %cst_103 {dimension_numbers = #tpu.dot_dimension_numbers<[1], [0], [0], [1], [0, 0, 1, 1], [], []>} : vector<16x32xf32>, vector<32x32xf32>, vector<16x32xf32> -> vector<16x32xf32>
    %cst_104 = arith.constant 3.125000e-02 : f32
    %302 = vector.broadcast %cst_104 : f32 to vector<16x32xf32>
    %303 = arith.mulf %301, %302 : vector<16x32xf32>
    %304 = arith.mulf %298, %298 : vector<16x32xf32>
    %cst_105 = arith.constant dense<0.000000e+00> : vector<16x32xf32>
    %305 = tpu.matmul %304, %0, %cst_105 {dimension_numbers = #tpu.dot_dimension_numbers<[1], [0], [0], [1], [0, 0, 1, 1], [], []>} : vector<16x32xf32>, vector<32x32xf32>, vector<16x32xf32> -> vector<16x32xf32>
    %cst_106 = arith.constant 3.125000e-02 : f32
    %306 = vector.broadcast %cst_106 : f32 to vector<16x32xf32>
    %307 = arith.mulf %305, %306 : vector<16x32xf32>
    %308 = arith.mulf %303, %303 : vector<16x32xf32>
    %309 = arith.subf %307, %308 : vector<16x32xf32>
    %310 = arith.subf %298, %303 : vector<16x32xf32>
    %cst_107 = arith.constant 9.99999974E-6 : f32
    %311 = vector.broadcast %cst_107 : f32 to vector<16x32xf32>
    %312 = arith.addf %309, %311 : vector<16x32xf32>
    %313 = math.rsqrt %312 : vector<16x32xf32>
    %314 = arith.mulf %310, %313 : vector<16x32xf32>
    %315 = vector.broadcast %299 : vector<1x32xf32> to vector<16x32xf32>
    %316 = arith.mulf %314, %315 : vector<16x32xf32>
    %317 = vector.broadcast %300 : vector<1x32xf32> to vector<16x32xf32>
    %318 = arith.addf %316, %317 : vector<16x32xf32>
    %c240 = arith.constant 240 : index
    %c0_108 = arith.constant 0 : index
    %319 = vector.load %arg3[%c240, %c0_108] : memref<480x128xf32, #tpu.memory_space<vmem>>, vector<32x128xf32>
    %cst_109 = arith.constant dense<0.000000e+00> : vector<16x128xf32>
    %320 = tpu.matmul %318, %319, %cst_109 {dimension_numbers = #tpu.dot_dimension_numbers<[1], [0], [0], [1], [0, 0, 1, 1], [], []>} : vector<16x32xf32>, vector<32x128xf32>, vector<16x128xf32> -> vector<16x128xf32>
    %321 = vector.extract_strided_slice %320 {offsets = [0, 0], sizes = [16, 32], strides = [1, 1]} : vector<16x128xf32> to vector<16x32xf32>
    %c466 = arith.constant 466 : index
    %c0_110 = arith.constant 0 : index
    %322 = vector.load %arg3[%c466, %c0_110] : memref<480x128xf32, #tpu.memory_space<vmem>>, vector<1x32xf32>
    %323 = vector.broadcast %322 : vector<1x32xf32> to vector<16x32xf32>
    %324 = arith.addf %321, %323 : vector<16x32xf32>
    %cst_111 = arith.constant 0.594603539 : f32
    %325 = vector.broadcast %cst_111 : f32 to vector<16x32xf32>
    %326 = arith.mulf %324, %325 : vector<16x32xf32>
    %327 = vector.extract_strided_slice %320 {offsets = [0, 32], sizes = [16, 32], strides = [1, 1]} : vector<16x128xf32> to vector<16x32xf32>
    %cst_112 = arith.constant 0.594603539 : f32
    %328 = vector.broadcast %cst_112 : f32 to vector<16x32xf32>
    %329 = arith.mulf %327, %328 : vector<16x32xf32>
    %330 = vector.extract_strided_slice %320 {offsets = [0, 64], sizes = [16, 32], strides = [1, 1]} : vector<16x128xf32> to vector<16x32xf32>
    %c467 = arith.constant 467 : index
    %c0_113 = arith.constant 0 : index
    %331 = vector.load %arg3[%c467, %c0_113] : memref<480x128xf32, #tpu.memory_space<vmem>>, vector<1x32xf32>
    %332 = vector.broadcast %331 : vector<1x32xf32> to vector<16x32xf32>
    %333 = arith.addf %330, %332 : vector<16x32xf32>
    %cst_114 = arith.constant 0.000000e+00 : f32
    %334 = vector.broadcast %cst_114 : f32 to vector<16x32xf32>
    %335 = vector.broadcast %20 : vector<1x32xf32> to vector<16x32xf32>
    %336 = arith.mulf %326, %335 : vector<16x32xf32>
    %cst_115 = arith.constant dense<0.000000e+00> : vector<16x16xf32>
    %337 = tpu.matmul %336, %329, %cst_115 {dimension_numbers = #tpu.dot_dimension_numbers<[1], [1], [0], [0], [0, 0, 1, 0], [], []>} : vector<16x32xf32>, vector<16x32xf32>, vector<16x16xf32> -> vector<16x16xf32>
    %cst_116 = arith.constant dense<0xFF800000> : vector<16xf32>
    %338 = vector.multi_reduction <maximumf>, %337, %cst_116 [1] : vector<16x16xf32> to vector<16xf32>
    %339 = vector.shape_cast %338 : vector<16xf32> to vector<16x1xf32>
    %340 = vector.broadcast %339 : vector<16x1xf32> to vector<16x16xf32>
    %341 = arith.subf %337, %340 : vector<16x16xf32>
    %342 = math.exp %341 : vector<16x16xf32>
    %cst_117 = arith.constant dense<0.000000e+00> : vector<16xf32>
    %343 = vector.multi_reduction <add>, %342, %cst_117 [1] : vector<16x16xf32> to vector<16xf32>
    %344 = vector.shape_cast %343 : vector<16xf32> to vector<16x1xf32>
    %345 = tpu.reciprocal %344 {approx = true} : vector<16x1xf32> -> vector<16x1xf32>
    %346 = vector.broadcast %345 : vector<16x1xf32> to vector<16x16xf32>
    %347 = arith.mulf %342, %346 : vector<16x16xf32>
    %348 = vector.broadcast %20 : vector<1x32xf32> to vector<16x32xf32>
    %349 = arith.mulf %333, %348 : vector<16x32xf32>
    %cst_118 = arith.constant dense<0.000000e+00> : vector<16x32xf32>
    %350 = tpu.matmul %347, %349, %cst_118 {dimension_numbers = #tpu.dot_dimension_numbers<[1], [0], [0], [1], [0, 0, 1, 1], [], []>} : vector<16x16xf32>, vector<16x32xf32>, vector<16x32xf32> -> vector<16x32xf32>
    %351 = arith.addf %334, %350 : vector<16x32xf32>
    %352 = vector.broadcast %27 : vector<1x32xf32> to vector<16x32xf32>
    %353 = arith.mulf %326, %352 : vector<16x32xf32>
    %cst_119 = arith.constant dense<0.000000e+00> : vector<16x16xf32>
    %354 = tpu.matmul %353, %329, %cst_119 {dimension_numbers = #tpu.dot_dimension_numbers<[1], [1], [0], [0], [0, 0, 1, 0], [], []>} : vector<16x32xf32>, vector<16x32xf32>, vector<16x16xf32> -> vector<16x16xf32>
    %cst_120 = arith.constant dense<0xFF800000> : vector<16xf32>
    %355 = vector.multi_reduction <maximumf>, %354, %cst_120 [1] : vector<16x16xf32> to vector<16xf32>
    %356 = vector.shape_cast %355 : vector<16xf32> to vector<16x1xf32>
    %357 = vector.broadcast %356 : vector<16x1xf32> to vector<16x16xf32>
    %358 = arith.subf %354, %357 : vector<16x16xf32>
    %359 = math.exp %358 : vector<16x16xf32>
    %cst_121 = arith.constant dense<0.000000e+00> : vector<16xf32>
    %360 = vector.multi_reduction <add>, %359, %cst_121 [1] : vector<16x16xf32> to vector<16xf32>
    %361 = vector.shape_cast %360 : vector<16xf32> to vector<16x1xf32>
    %362 = tpu.reciprocal %361 {approx = true} : vector<16x1xf32> -> vector<16x1xf32>
    %363 = vector.broadcast %362 : vector<16x1xf32> to vector<16x16xf32>
    %364 = arith.mulf %359, %363 : vector<16x16xf32>
    %365 = vector.broadcast %27 : vector<1x32xf32> to vector<16x32xf32>
    %366 = arith.mulf %333, %365 : vector<16x32xf32>
    %cst_122 = arith.constant dense<0.000000e+00> : vector<16x32xf32>
    %367 = tpu.matmul %364, %366, %cst_122 {dimension_numbers = #tpu.dot_dimension_numbers<[1], [0], [0], [1], [0, 0, 1, 1], [], []>} : vector<16x16xf32>, vector<16x32xf32>, vector<16x32xf32> -> vector<16x32xf32>
    %368 = arith.addf %351, %367 : vector<16x32xf32>
    %369 = vector.broadcast %34 : vector<1x32xf32> to vector<16x32xf32>
    %370 = arith.mulf %326, %369 : vector<16x32xf32>
    %cst_123 = arith.constant dense<0.000000e+00> : vector<16x16xf32>
    %371 = tpu.matmul %370, %329, %cst_123 {dimension_numbers = #tpu.dot_dimension_numbers<[1], [1], [0], [0], [0, 0, 1, 0], [], []>} : vector<16x32xf32>, vector<16x32xf32>, vector<16x16xf32> -> vector<16x16xf32>
    %cst_124 = arith.constant dense<0xFF800000> : vector<16xf32>
    %372 = vector.multi_reduction <maximumf>, %371, %cst_124 [1] : vector<16x16xf32> to vector<16xf32>
    %373 = vector.shape_cast %372 : vector<16xf32> to vector<16x1xf32>
    %374 = vector.broadcast %373 : vector<16x1xf32> to vector<16x16xf32>
    %375 = arith.subf %371, %374 : vector<16x16xf32>
    %376 = math.exp %375 : vector<16x16xf32>
    %cst_125 = arith.constant dense<0.000000e+00> : vector<16xf32>
    %377 = vector.multi_reduction <add>, %376, %cst_125 [1] : vector<16x16xf32> to vector<16xf32>
    %378 = vector.shape_cast %377 : vector<16xf32> to vector<16x1xf32>
    %379 = tpu.reciprocal %378 {approx = true} : vector<16x1xf32> -> vector<16x1xf32>
    %380 = vector.broadcast %379 : vector<16x1xf32> to vector<16x16xf32>
    %381 = arith.mulf %376, %380 : vector<16x16xf32>
    %382 = vector.broadcast %34 : vector<1x32xf32> to vector<16x32xf32>
    %383 = arith.mulf %333, %382 : vector<16x32xf32>
    %cst_126 = arith.constant dense<0.000000e+00> : vector<16x32xf32>
    %384 = tpu.matmul %381, %383, %cst_126 {dimension_numbers = #tpu.dot_dimension_numbers<[1], [0], [0], [1], [0, 0, 1, 1], [], []>} : vector<16x16xf32>, vector<16x32xf32>, vector<16x32xf32> -> vector<16x32xf32>
    %385 = arith.addf %368, %384 : vector<16x32xf32>
    %386 = vector.broadcast %41 : vector<1x32xf32> to vector<16x32xf32>
    %387 = arith.mulf %326, %386 : vector<16x32xf32>
    %cst_127 = arith.constant dense<0.000000e+00> : vector<16x16xf32>
    %388 = tpu.matmul %387, %329, %cst_127 {dimension_numbers = #tpu.dot_dimension_numbers<[1], [1], [0], [0], [0, 0, 1, 0], [], []>} : vector<16x32xf32>, vector<16x32xf32>, vector<16x16xf32> -> vector<16x16xf32>
    %cst_128 = arith.constant dense<0xFF800000> : vector<16xf32>
    %389 = vector.multi_reduction <maximumf>, %388, %cst_128 [1] : vector<16x16xf32> to vector<16xf32>
    %390 = vector.shape_cast %389 : vector<16xf32> to vector<16x1xf32>
    %391 = vector.broadcast %390 : vector<16x1xf32> to vector<16x16xf32>
    %392 = arith.subf %388, %391 : vector<16x16xf32>
    %393 = math.exp %392 : vector<16x16xf32>
    %cst_129 = arith.constant dense<0.000000e+00> : vector<16xf32>
    %394 = vector.multi_reduction <add>, %393, %cst_129 [1] : vector<16x16xf32> to vector<16xf32>
    %395 = vector.shape_cast %394 : vector<16xf32> to vector<16x1xf32>
    %396 = tpu.reciprocal %395 {approx = true} : vector<16x1xf32> -> vector<16x1xf32>
    %397 = vector.broadcast %396 : vector<16x1xf32> to vector<16x16xf32>
    %398 = arith.mulf %393, %397 : vector<16x16xf32>
    %399 = vector.broadcast %41 : vector<1x32xf32> to vector<16x32xf32>
    %400 = arith.mulf %333, %399 : vector<16x32xf32>
    %cst_130 = arith.constant dense<0.000000e+00> : vector<16x32xf32>
    %401 = tpu.matmul %398, %400, %cst_130 {dimension_numbers = #tpu.dot_dimension_numbers<[1], [0], [0], [1], [0, 0, 1, 1], [], []>} : vector<16x16xf32>, vector<16x32xf32>, vector<16x32xf32> -> vector<16x32xf32>
    %402 = arith.addf %385, %401 : vector<16x32xf32>
    %c272 = arith.constant 272 : index
    %c0_131 = arith.constant 0 : index
    %403 = vector.load %arg3[%c272, %c0_131] : memref<480x128xf32, #tpu.memory_space<vmem>>, vector<32x128xf32>
    %cst_132 = arith.constant dense<0.000000e+00> : vector<16x128xf32>
    %404 = tpu.matmul %402, %403, %cst_132 {dimension_numbers = #tpu.dot_dimension_numbers<[1], [0], [0], [1], [0, 0, 1, 1], [], []>} : vector<16x32xf32>, vector<32x128xf32>, vector<16x128xf32> -> vector<16x128xf32>
    %405 = vector.extract_strided_slice %404 {offsets = [0, 0], sizes = [16, 32], strides = [1, 1]} : vector<16x128xf32> to vector<16x32xf32>
    %406 = arith.addf %298, %405 : vector<16x32xf32>
    %c468 = arith.constant 468 : index
    %c0_133 = arith.constant 0 : index
    %407 = vector.load %arg3[%c468, %c0_133] : memref<480x128xf32, #tpu.memory_space<vmem>>, vector<1x32xf32>
    %408 = vector.broadcast %407 : vector<1x32xf32> to vector<16x32xf32>
    %409 = arith.addf %406, %408 : vector<16x32xf32>
    %c469 = arith.constant 469 : index
    %c0_134 = arith.constant 0 : index
    %410 = vector.load %arg3[%c469, %c0_134] : memref<480x128xf32, #tpu.memory_space<vmem>>, vector<1x32xf32>
    %c470 = arith.constant 470 : index
    %c0_135 = arith.constant 0 : index
    %411 = vector.load %arg3[%c470, %c0_135] : memref<480x128xf32, #tpu.memory_space<vmem>>, vector<1x32xf32>
    %cst_136 = arith.constant dense<0.000000e+00> : vector<16x32xf32>
    %412 = tpu.matmul %409, %0, %cst_136 {dimension_numbers = #tpu.dot_dimension_numbers<[1], [0], [0], [1], [0, 0, 1, 1], [], []>} : vector<16x32xf32>, vector<32x32xf32>, vector<16x32xf32> -> vector<16x32xf32>
    %cst_137 = arith.constant 3.125000e-02 : f32
    %413 = vector.broadcast %cst_137 : f32 to vector<16x32xf32>
    %414 = arith.mulf %412, %413 : vector<16x32xf32>
    %415 = arith.mulf %409, %409 : vector<16x32xf32>
    %cst_138 = arith.constant dense<0.000000e+00> : vector<16x32xf32>
    %416 = tpu.matmul %415, %0, %cst_138 {dimension_numbers = #tpu.dot_dimension_numbers<[1], [0], [0], [1], [0, 0, 1, 1], [], []>} : vector<16x32xf32>, vector<32x32xf32>, vector<16x32xf32> -> vector<16x32xf32>
    %cst_139 = arith.constant 3.125000e-02 : f32
    %417 = vector.broadcast %cst_139 : f32 to vector<16x32xf32>
    %418 = arith.mulf %416, %417 : vector<16x32xf32>
    %419 = arith.mulf %414, %414 : vector<16x32xf32>
    %420 = arith.subf %418, %419 : vector<16x32xf32>
    %421 = arith.subf %409, %414 : vector<16x32xf32>
    %cst_140 = arith.constant 9.99999974E-6 : f32
    %422 = vector.broadcast %cst_140 : f32 to vector<16x32xf32>
    %423 = arith.addf %420, %422 : vector<16x32xf32>
    %424 = math.rsqrt %423 : vector<16x32xf32>
    %425 = arith.mulf %421, %424 : vector<16x32xf32>
    %426 = vector.broadcast %410 : vector<1x32xf32> to vector<16x32xf32>
    %427 = arith.mulf %425, %426 : vector<16x32xf32>
    %428 = vector.broadcast %411 : vector<1x32xf32> to vector<16x32xf32>
    %429 = arith.addf %427, %428 : vector<16x32xf32>
    %c304 = arith.constant 304 : index
    %c0_141 = arith.constant 0 : index
    %430 = vector.load %arg3[%c304, %c0_141] : memref<480x128xf32, #tpu.memory_space<vmem>>, vector<32x128xf32>
    %c472 = arith.constant 472 : index
    %c0_142 = arith.constant 0 : index
    %431 = vector.load %arg3[%c472, %c0_142] : memref<480x128xf32, #tpu.memory_space<vmem>>, vector<1x128xf32>
    %cst_143 = arith.constant dense<0.000000e+00> : vector<16x128xf32>
    %432 = tpu.matmul %429, %430, %cst_143 {dimension_numbers = #tpu.dot_dimension_numbers<[1], [0], [0], [1], [0, 0, 1, 1], [], []>} : vector<16x32xf32>, vector<32x128xf32>, vector<16x128xf32> -> vector<16x128xf32>
    %433 = vector.broadcast %431 : vector<1x128xf32> to vector<16x128xf32>
    %434 = arith.addf %432, %433 : vector<16x128xf32>
    %cst_144 = arith.constant 5.000000e-01 : f32
    %435 = vector.broadcast %cst_144 : f32 to vector<16x128xf32>
    %436 = arith.mulf %435, %434 : vector<16x128xf32>
    %cst_145 = arith.constant 4.471500e-02 : f32
    %437 = vector.broadcast %cst_145 : f32 to vector<16x128xf32>
    %438 = arith.mulf %437, %434 : vector<16x128xf32>
    %439 = arith.mulf %438, %434 : vector<16x128xf32>
    %440 = arith.mulf %439, %434 : vector<16x128xf32>
    %441 = arith.addf %434, %440 : vector<16x128xf32>
    %cst_146 = arith.constant 0.797884583 : f32
    %442 = vector.broadcast %cst_146 : f32 to vector<16x128xf32>
    %443 = arith.mulf %442, %441 : vector<16x128xf32>
    %444 = math.tanh %443 : vector<16x128xf32>
    %cst_147 = arith.constant 1.000000e+00 : f32
    %445 = vector.broadcast %cst_147 : f32 to vector<16x128xf32>
    %446 = arith.addf %445, %444 : vector<16x128xf32>
    %447 = arith.mulf %436, %446 : vector<16x128xf32>
    %c336 = arith.constant 336 : index
    %c0_148 = arith.constant 0 : index
    %448 = vector.load %arg3[%c336, %c0_148] : memref<480x128xf32, #tpu.memory_space<vmem>>, vector<128x128xf32>
    %cst_149 = arith.constant dense<0.000000e+00> : vector<16x128xf32>
    %449 = tpu.matmul %447, %448, %cst_149 {dimension_numbers = #tpu.dot_dimension_numbers<[1], [0], [0], [1], [0, 0, 1, 1], [], []>} : vector<16x128xf32>, vector<128x128xf32>, vector<16x128xf32> -> vector<16x128xf32>
    %450 = vector.extract_strided_slice %449 {offsets = [0, 0], sizes = [16, 32], strides = [1, 1]} : vector<16x128xf32> to vector<16x32xf32>
    %451 = arith.addf %409, %450 : vector<16x32xf32>
    %c471 = arith.constant 471 : index
    %c0_150 = arith.constant 0 : index
    %452 = vector.load %arg3[%c471, %c0_150] : memref<480x128xf32, #tpu.memory_space<vmem>>, vector<1x32xf32>
    %453 = vector.broadcast %452 : vector<1x32xf32> to vector<16x32xf32>
    %454 = arith.addf %451, %453 : vector<16x32xf32>
    %c138 = arith.constant 138 : index
    %c0_151 = arith.constant 0 : index
    %455 = vector.load %arg2[%c138, %c0_151] : memref<204x32xf32, #tpu.memory_space<vmem>>, vector<1x32xf32>
    %c139 = arith.constant 139 : index
    %c0_152 = arith.constant 0 : index
    %456 = vector.load %arg2[%c139, %c0_152] : memref<204x32xf32, #tpu.memory_space<vmem>>, vector<1x32xf32>
    %cst_153 = arith.constant dense<0.000000e+00> : vector<16x32xf32>
    %457 = tpu.matmul %454, %0, %cst_153 {dimension_numbers = #tpu.dot_dimension_numbers<[1], [0], [0], [1], [0, 0, 1, 1], [], []>} : vector<16x32xf32>, vector<32x32xf32>, vector<16x32xf32> -> vector<16x32xf32>
    %cst_154 = arith.constant 3.125000e-02 : f32
    %458 = vector.broadcast %cst_154 : f32 to vector<16x32xf32>
    %459 = arith.mulf %457, %458 : vector<16x32xf32>
    %460 = arith.mulf %454, %454 : vector<16x32xf32>
    %cst_155 = arith.constant dense<0.000000e+00> : vector<16x32xf32>
    %461 = tpu.matmul %460, %0, %cst_155 {dimension_numbers = #tpu.dot_dimension_numbers<[1], [0], [0], [1], [0, 0, 1, 1], [], []>} : vector<16x32xf32>, vector<32x32xf32>, vector<16x32xf32> -> vector<16x32xf32>
    %cst_156 = arith.constant 3.125000e-02 : f32
    %462 = vector.broadcast %cst_156 : f32 to vector<16x32xf32>
    %463 = arith.mulf %461, %462 : vector<16x32xf32>
    %464 = arith.mulf %459, %459 : vector<16x32xf32>
    %465 = arith.subf %463, %464 : vector<16x32xf32>
    %466 = arith.subf %454, %459 : vector<16x32xf32>
    %cst_157 = arith.constant 9.99999974E-6 : f32
    %467 = vector.broadcast %cst_157 : f32 to vector<16x32xf32>
    %468 = arith.addf %465, %467 : vector<16x32xf32>
    %469 = math.rsqrt %468 : vector<16x32xf32>
    %470 = arith.mulf %466, %469 : vector<16x32xf32>
    %471 = vector.broadcast %455 : vector<1x32xf32> to vector<16x32xf32>
    %472 = arith.mulf %470, %471 : vector<16x32xf32>
    %473 = vector.broadcast %456 : vector<1x32xf32> to vector<16x32xf32>
    %474 = arith.addf %472, %473 : vector<16x32xf32>
    %c0_158 = arith.constant 0 : index
    %c0_159 = arith.constant 0 : index
    %475 = vector.load %arg4[%c0_158, %c0_159] : memref<16x32xf32, #tpu.memory_space<vmem>>, vector<16x32xf32>
    tpu.vector_store %arg4[%c0_158, %c0_159], %474 {strides = array<i32>} : memref<16x32xf32, #tpu.memory_space<vmem>>, vector<16x32xf32>,
    return
  }
}

</mosaic_0001>

<bundles_post_ra>
// kernel: audio2whisper_forward.1
= control target key start
LH: loop header
LB: loop body
LE: loop exit
PB: predicated region body
PF: predicated region fallthrough
CT: control target
= control target key end

     0   :  { %9 = vsyncpa [#allocation3], 0  ;;  %s2685_s18 = smov [#allocation2]   ;;  %s2686_s20 = smov 128   ;;  %s3313_s0 = inlined_call_operand.vmem [shape: f32[32,64], index: 0, kind: input, shape index: {}]   ;;  %s3314_s1 = inlined_call_operand.vmem [shape: f32[64,128], index: 1, kind: input, shape index: {}]   ;;  %s3315_s2 = inlined_call_operand.vmem [shape: f32[204,32], index: 2, kind: input, shape index: {}]   ;;  %s3316_s3 = inlined_call_operand.hbm [shape: f32[480,128], index: 3, kind: input, shape index: {}]   ;;  %s3317_s4 = inlined_call_operand.vmem [shape: f32[16,32], index: 4, kind: output, shape index: {}]  }
   0x1   :  { %s20_s17 = sshll.u32 %s3316_s3, 4  ;;  %s22_s19 = sshll.u32 %s2685_s18, 4  ;;  %s21_s17 = int_to_ptr.hbm [resolvable:$true] %s20_s17  ;;  %s23_s19 = int_to_ptr.vmem [resolvable:$true] %s22_s19 }
   0x2   :  { %s2687_s21 = smov 8  }
   0x3   :  { %28 = dma.hbm_to_vmem [thread:$0]  %s21_s17, 7680, %s23_s19, [#allocation3], %s2686_s20, %s2686_s20, %s2687_s21  }
   0x4   :  { %2683 = dma.done.wait [#allocation3], 7680  }
   0x5   :  { %2684 = vsyncadd [#allocation3], 4294959616  ;;  %v84_v0 = vld [vmem:[%s3314_s1 + $0x38] sm:$0xff]  ;;  %v83_v1 = vld [vmem:[%s3314_s1 + $0x30] sm:$0xff]  ;;  %vm85_vm0 = vcmask 523264   ;;  %s2688_s3 = smov 64  }
   0x6   :  { %106 = vmatpush.msra.mxu0 %v84_v0  ;;  %v82_v2 = vld [vmem:[%s3314_s1 + $0x28] sm:$0xff]  ;;  %v81_v3 = vld [vmem:[%s3314_s1 + $0x20] sm:$0xff]  ;;  %v80_v4 = vld [vmem:[%s3314_s1 + $0x18] sm:$0xff]  ;;  %vm216_vm1 = vcmask 64512   ;;  %vm258_vm6 = vcmask 130048   ;;  %vm562_vm8 = vcmask 261120  }
   0x7   :  { %v79_v5 = vld [vmem:[%s3314_s1 + $0x10] sm:$0xff]  ;;  %v78_v6 = vld [vmem:[%s3314_s1 + $0x8] sm:$0xff]  ;;  %v77_v7 = vld [vmem:[%s3314_s1] sm:$0xff]  ;;  %s2692_s18 = smov 96  }
   0x8   :  { %107 = vmatpush.msra.mxu0 %v83_v1  ;;  %v73_v8 = vld [vmem:[%s3313_s0] sm:$0xff]  ;;  %v74_v9 = vld [vmem:[%s3313_s0 + $0x8] sm:$0xff]  ;;  %v75_v10 = vld [vmem:[%s3313_s0 + $0x10] sm:$0xff] }
   0x9   :  { %v76_v11 = vld [vmem:[%s3313_s0 + $0x18] sm:$0xff]  ;;  %v158_v12 = vld [vmem:[%s3315_s2 + $0xc4] sm:$0xff]  ;;  %v155_v15 = vld [vmem:[%s3315_s2 + $0xac] sm:$0xff] }
   0xa   :  { %108 = vmatpush.msra.mxu0 %v82_v2  ;;  %v157_v13 = vld [vmem:[%s3315_s2 + $0xbc] sm:$0xff]  ;;  %179 = vmatpush.msra.mxu1 %v158_v12  ;;  %v156_v14 = vld [vmem:[%s3315_s2 + $0xb4] sm:$0xff]  ;;  %v154_v18 = vld [vmem:[%s3315_s2 + $0xa4] sm:$0xff] }
   0xb   :  { %v153_v19 = vld [vmem:[%s3315_s2 + $0x9c] sm:$0xff]  ;;  %v152_v20 = vld [vmem:[%s3315_s2 + $0x94] sm:$0xff]  ;;  %v151_v27 = vld [vmem:[%s3315_s2 + $0x8c] sm:$0xff] }
   0xc   :  { %109 = vmatpush.msra.mxu0 %v81_v3  ;;  %180 = vmatpush.msra.mxu1 %v157_v13 }
   0xe   :  { %110 = vmatpush.msra.mxu0 %v80_v4  ;;  %181 = vmatpush.msra.mxu1 %v156_v14 }
  0x10   :  { %111 = vmatpush.msra.mxu0 %v79_v5  ;;  %182 = vmatpush.msra.mxu1 %v155_v15 }
  0x12   :  { %112 = vmatpush.msra.mxu0 %v78_v6  ;;  %183 = vmatpush.msra.mxu1 %v154_v18  ;;  %v2800_v6 = vld [vmem:[%s3315_s2] sm:$0xff] }
  0x14   :  { %113 = vmatpush.msra.mxu0 %v77_v7  ;;  %184 = vmatpush.msra.mxu1 %v153_v19  ;;  %v2689_v7 = vmov 4.0  }
  0x15   :  { %2352 = vmatmul.msk.f32.vlgmr.msra.gmra.mxu0 %vm85_vm0, %v73_v8 }
  0x16   :  { %185 = vmatpush.msra.mxu1 %v152_v20  ;;  %465 = vmatpush.msrb.mxu0 %v2800_v6 }
  0x18   :  { %186 = vmatpush.msra.mxu1 %v151_v27 }
  0x1d   :  { %2353 = vmatmul.msk.f32.gmra.mxu0 %vm85_vm0, %v74_v9 }
  0x25   :  { %2354 = vmatmul.msk.f32.gmra.mxu0 %vm85_vm0, %v75_v10 }
  0x2d   :  { %2355 = vmatmul.msk.f32.gmra.mxu0 %vm85_vm0, %v76_v11  ;;  %v33_v11 = vlaneseq }
  0x2f   :  { %v34_v13 = vshrl.u32 %v33_v11, 7  ;;  %v2803_v14 = vand.u32 127, %v33_v11 }
  0x31   :  { %v35_v18 = vadd.s32 8, %v34_v13  ;;  %v45_v19 = vadd.s32 1, %v34_v13  ;;  %vm58_vm15 = vcmp.ge.s32.totalorder %v2803_v14, 8 }
  0x33   :  { %vm47_vm5 = vcmp.eq.s32.totalorder %v45_v19, %v2803_v14 }
  0x92   :  { %v115_v16 = vpop.f32.mrf.mxu0 }
  0x93   :  { %v127_v17 = vmul.f32 %v115_v16, %v115_v16 }
  0x95   :  { %135 = vrot.lane.b32.xlu0 %v127_v17, %s2688_s3 }
  0x9a   :  { %v118_v21 = vpop.f32.mrf.mxu0 }
  0x9b   :  { %v128_v22 = vmul.f32 %v118_v21, %v118_v21 }
  0x9d   :  { %137 = vrot.lane.b32.xlu0 %v128_v22, %s2688_s3 }
  0xa2   :  { %v121_v23 = vpop.f32.mrf.mxu0 }
  0xa3   :  { %v129_v24 = vmul.f32 %v121_v23, %v121_v23 }
  0xa5   :  { %139 = vrot.lane.b32.xlu1 %v129_v24, %s2688_s3 }
  0xaa   :  { %v124_v25 = vpop.f32.mrf.mxu0 }
  0xab   :  { %v130_v26 = vmul.f32 %v124_v25, %v124_v25 }
  0xad   :  { %141 = vrot.lane.b32.xlu1 %v130_v26, %s2688_s3 }
 0x107   :  { %v136_v28 = vpop.permute.xlu0 %135 }
 0x108   :  { %v147_v29 = vadd.f32 %v136_v28, %v127_v17  ;;  %v38_v17 = vadd.s32 1, %v2803_v14 }
 0x10a   :  { %2356 = vmatmul.msk.f32.vlgmr.msra.gmra.mxu1 %vm85_vm0, %v147_v29  ;;  %vm39_vm3 = vcmp.eq.s32.totalorder %v34_v13, %v38_v17  ;;  %vm40_vm4 = vcmp.eq.s32.totalorder %v35_v18, %v38_v17 }
 0x10f   :  { %v138_v30 = vpop.permute.xlu0 %137 }
 0x110   :  { %v148_v31 = vadd.f32 %v138_v30, %v128_v22 }
 0x112   :  { %2357 = vmatmul.msk.f32.gmra.mxu1 %vm85_vm0, %v148_v31 }
 0x117   :  { %v140_v32 = vpop.permute.xlu1 %139 }
 0x118   :  { %v149_v33 = vadd.f32 %v140_v32, %v129_v24 }
 0x11a   :  { %2358 = vmatmul.msk.f32.gmra.mxu1 %vm85_vm0, %v149_v33  ;;  %v2690_v33 = vmov 0.0  }
 0x11f   :  { %v142_v34 = vpop.permute.xlu1 %141 }
 0x120   :  { %v150_v35 = vadd.f32 %v142_v34, %v130_v26  ;;  %v2808_v34 = vsel %vm39_vm3, 1.0, %v2690_v33  ;;  %vm63_vm3 = vcmp.ge.s32.totalorder %v2803_v14, 16 }
 0x122   :  { %2359 = vmatmul.msk.f32.gmra.mxu1 %vm85_vm0, %v150_v35  ;;  %v2812_v35 = vsel %vm40_vm4, 1.0, %v2690_v33  ;;  %vm59_vm0 = vcmp.lt.s32.totalorder %v2803_v14, 16  ;;  %vm64_vm4 = vcmp.lt.s32.totalorder %v2803_v14, 24 }
 0x187   :  { %v188_v36 = vpop.f32.mrf.mxu1 }
 0x188   :  { %v200_v39 = vmax.f32 %v188_v36, 1e-10  ;;  %v2346_v36 = vsel %vm47_vm5, 1.0, %v2690_v33  ;;  %vm65_vm5 = vmand %vm63_vm3, %vm64_vm4 }
 0x18f   :  { %v191_v37 = vpop.f32.mrf.mxu1 }
 0x190   :  { %v201_v38 = vmax.f32 %v191_v37, 1e-10  ;;  %v255_v37 = vld [vmem:[%s3315_s2 + $0x8] sm:$0xff] }
 0x192   :  { %2545 = vlog2.f32 %v201_v38  ;;  %v46_v38 = vadd.s32 1, %v35_v18 }
 0x193   :  { %2547 = vlog2.f32 %v200_v39  ;;  %v256_v39 = vld [vmem:[%s3315_s2 + $0x10] sm:$0xff] }
 0x194   :  { %vm48_vm7 = vcmp.eq.s32.totalorder %v46_v38, %v2803_v14 }
 0x197   :  { %v194_v40 = vpop.f32.mrf.mxu1 }
 0x198   :  { %v202_v41 = vmax.f32 %v194_v40, 1e-10  ;;  %v2546_v43 = vpop.eup %2545  ;;  %v2347_v40 = vsel %vm48_vm7, 1.0, %v2690_v33  ;;  %vm68_vm7 = vcmp.ge.s32.totalorder %v2803_v14, 24 }
 0x199   :  { %v2548_v45 = vpop.eup %2547  ;;  %v207_v47 = vmul.f32 0.6931472, %v2546_v43 }
 0x19a   :  { %2549 = vlog2.f32 %v202_v41  ;;  %v205_v48 = vmul.f32 0.6931472, %v2548_v45 }
 0x19b   :  { %v213_v50 = vmul.f32 0.4342945, %v207_v47 }
 0x19c   :  { %v212_v52 = vmul.f32 0.4342945, %v205_v48  ;;  %v530_v48 = vld [vmem:[%s3315_s2 + $0x48] sm:$0xff] }
 0x19d   :  { %v218_v56 = vsel %vm216_vm1, %v213_v50, -inf }
 0x19e   :  { %v217_v57 = vsel %vm216_vm1, %v212_v52, -inf }
 0x19f   :  { %v197_v42 = vpop.f32.mrf.mxu1  ;;  %v221_v60 = vmax.f32 %v217_v57, %v218_v56  ;;  %v535_v57 = vld [vmem:[%s3315_s2 + $0x70] sm:$0xff] }
 0x1a0   :  { %v203_v44 = vmax.f32 %v197_v42, 1e-10  ;;  %v2550_v46 = vpop.eup %2549 }
 0x1a1   :  { %v209_v49 = vmul.f32 0.6931472, %v2550_v46  ;;  %v531_v46 = vld [vmem:[%s3315_s2 + $0x50] sm:$0xff] }
 0x1a2   :  { %2551 = vlog2.f32 %v203_v44 }
 0x1a3   :  { %v214_v53 = vmul.f32 0.4342945, %v209_v49  ;;  %2553 = vrcp.f32 %v2689_v7  ;;  %v529_v49 = vld [vmem:[%s3315_s2 + $0x40] sm:$0xff] }
 0x1a5   :  { %v219_v58 = vsel %vm216_vm1, %v214_v53, -inf }
 0x1a8   :  { %v2552_v51 = vpop.eup %2551 }
 0x1a9   :  { %v211_v54 = vmul.f32 0.6931472, %v2552_v51  ;;  %v2554_v8 = vpop.eup %2553 }
 0x1aa   :  { %v244_v9 = vmul.f32 4.0, %v2554_v8  ;;  %vm248_vm2 = vweird.f32 %v2554_v8 }
 0x1ab   :  { %v215_v55 = vmul.f32 0.4342945, %v211_v54  ;;  %v2523_v54 = vld [vmem:[%s3315_s2 + $0x88] ss:$0 sm:$0xff] }
 0x1ac   :  { %v245_v10 = vsub.f32 1.0, %v244_v9 }
 0x1ad   :  { %v220_v59 = vsel %vm216_vm1, %v215_v55, -inf }
 0x1ae   :  { %v222_v61 = vmax.f32 %v219_v58, %v220_v59  ;;  %v246_v12 = vmul.f32 %v2554_v8, %v245_v10  ;;  %v534_v59 = vld [vmem:[%s3315_s2 + $0x68] sm:$0xff] }
 0x1b0   :  { %v223_v62 = vmax.f32 %v221_v60, %v222_v61  ;;  %v247_v15 = vadd.f32 %v2554_v8, %v246_v12 }
 0x1b2   :  { %224 = vmax.xlane.f32.xlu2 %v223_v62  ;;  %v249_v24 = vsel %vm248_vm2, %v2554_v8, %v247_v15  ;;  %vm54_vm2 = vcmp.lt.s32.totalorder %v2803_v14, 8 }
 0x225   :  { %v225_v63 = vpop.xlane.xlu2 %224 }
 0x226   :  { %v226_v0 = vrot.slane %v225_v63, 4 }
 0x228   :  { %v227_v1 = vmax.f32 %v225_v63, %v226_v0  ;;  %v533_v63 = vld [vmem:[%s3315_s2 + $0x60] sm:$0xff]  ;;  %v532_v0 = vld [vmem:[%s3315_s2 + $0x58] sm:$0xff] }
 0x22a   :  { %v228_v2 = vrot.slane %v227_v1, 2 }
 0x22c   :  { %v229_v3 = vmax.f32 %v227_v1, %v228_v2 }
 0x22e   :  { %v230_v4 = vrot.slane %v229_v3, 1 }
 0x230   :  { %v231_v5 = vmax.f32 %v229_v3, %v230_v4 }
 0x232   :  { %2468 = vpush %v231_v5 }
 0x263   :  { %s2469_s9 = spop %2468 }
 0x264   :  { %s2360_s10 = sadd.f32 -8.0, %s2469_s9 }
 0x266   :  { %v234_v16 = vstv %s2360_s10 }
 0x267   :  { %v235_v20 = vmax.f32 %v212_v52, %v234_v16  ;;  %v236_v21 = vmax.f32 %v213_v50, %v234_v16  ;;  %v237_v22 = vmax.f32 %v214_v53, %v234_v16  ;;  %v238_v23 = vmax.f32 %v215_v55, %v234_v16  ;;  %v528_v50 = vld [vmem:[%s3315_s2 + $0x38] sm:$0xff] }
 0x269   :  { %v239_v25 = vadd.f32 4.0, %v235_v20  ;;  %v240_v26 = vadd.f32 4.0, %v236_v21  ;;  %v241_v27 = vadd.f32 4.0, %v237_v22  ;;  %v242_v28 = vadd.f32 4.0, %v238_v23 }
 0x26b   :  { %v250_v29 = vmul.f32 %v249_v24, %v239_v25  ;;  %v253_v30 = vmul.f32 %v249_v24, %v242_v28  ;;  %v251_v31 = vmul.f32 %v249_v24, %v240_v26  ;;  %v252_v32 = vmul.f32 %v249_v24, %v241_v27 }
 0x26d   :  { %279 = vmatpush.msrb.mxu1 %v253_v30  ;;  %2465 = vmatpush.msra.mxu2 %v253_v30 }
 0x26e   :  { %308 = vmatpush.msra.mxu3 %v251_v31  ;;  %2373 = vmatmul.msk.f32.vlgmr.msrb.gmra.mxu0 %vm216_vm1, %v250_v29 }
 0x26f   :  { %280 = vmatpush.msrb.mxu1 %v252_v32  ;;  %2466 = vmatpush.msra.mxu2 %v252_v32 }
 0x270   :  { %309 = vmatpush.msra.mxu3 %v250_v29  ;;  %2361 = vmatmul.msk.f32.vlgmr.msrb.gmra.mxu1 %vm258_vm6, %v2808_v34 }
 0x271   :  { %2362 = vmatmul.msk.f32.vlgmr.msra.gmra.mxu2 %vm258_vm6, %v2812_v35  ;;  %2363 = vmatmul.msk.f32.vlgmr.msra.gmra.mxu3 %vm258_vm6, %v2346_v36 }
 0x272   :  { %338 = vmatpush.msrb.mxu2 %v255_v37  ;;  %367 = vmatpush.msrb.mxu3 %v2800_v6 }
 0x273   :  { %494 = vmatpush.msra.mxu1 %v256_v39 }
 0x274   :  { %396 = vmatpush.msra.mxu2 %v256_v39  ;;  %442 = vmatpush.msra.mxu3 %v255_v37 }
 0x275   :  { %639 = vmatpush.msrb.mxu1 %v535_v57 }
 0x277   :  { %640 = vmatpush.msrb.mxu1 %v534_v59 }
 0x279   :  { %2365 = vmatmul.msk.f32.vlgmr.msrb.gmra.mxu2 %vm216_vm1, %v250_v29  ;;  %2364 = vmatmul.msk.f32.gmra.mxu3 %vm258_vm6, %v2347_v40 }
 0x27a   :  { %641 = vmatpush.msrb.mxu1 %v533_v63 }
 0x27c   :  { %642 = vmatpush.msrb.mxu1 %v532_v0 }
 0x281   :  { %2366 = vmatmul.msk.f32.gmra.mxu2 %vm216_vm1, %v251_v31 }
 0x289   :  { %2369 = vmatmul.msk.f32.vlgmr.msra.gmra.mxu2 %vm216_vm1, %v252_v32 }
 0x291   :  { %2370 = vmatmul.msk.f32.gmra.mxu2 %vm216_vm1, %v253_v30 }
 0x2ed   :  { %v282_v41 = vpop.f32.mrf.mxu1 }
 0x2ee   :  { %2367 = vmatmul.msk.f32.vlgmr.msrb.gmra.mxu3 %vm216_vm1, %v282_v41 }
 0x2ef   :  { %2467 = vmatpush.msrb.mxu3 %v2800_v6  ;;  %v467_v6 = vpop.f32.mrf.mxu0 }
 0x2f4   :  { %v311_v42 = vpop.f32.mrf.mxu3  ;;  %v285_v43 = vpop.f32.mrf.mxu2 }
 0x2f5   :  { %2375 = vmatmul.msk.f32.vlgmr.msra.gmra.mxu1 %vm216_vm1, %v311_v42 }
 0x2f6   :  { %2368 = vmatmul.msk.f32.gmra.mxu3 %vm216_vm1, %v285_v43 }
 0x2fc   :  { %v314_v44 = vpop.f32.mrf.mxu3  ;;  %v340_v45 = vpop.f32.mrf.mxu2 }
 0x2fd   :  { %2376 = vmatmul.msk.f32.gmra.mxu1 %vm216_vm1, %v314_v44 }
 0x2fe   :  { %2371 = vmatmul.msk.f32.vlgmr.msra.gmra.mxu3 %vm216_vm1, %v252_v32 }
 0x2ff   :  { %581 = vmatpush.msra.mxu3 %v531_v46 }
 0x301   :  { %582 = vmatpush.msra.mxu3 %v530_v48 }
 0x303   :  { %583 = vmatpush.msra.mxu3 %v529_v49 }
 0x304   :  { %v343_v47 = vpop.f32.mrf.mxu2 }
 0x305   :  { %584 = vmatpush.msra.mxu3 %v528_v50 }
 0x306   :  { %2372 = vmatmul.msk.f32.gmra.mxu3 %vm216_vm1, %v253_v30 }
 0x30c   :  { %v398_v51 = vpop.f32.mrf.mxu2 }
 0x30e   :  { %2374 = vmatmul.msk.f32.vlgmr.msrb.gmra.mxu3 %vm216_vm1, %v251_v31  ;;  %vm60_vm1 = vmand %vm58_vm15, %vm59_vm0 }
 0x314   :  { %v401_v1 = vpop.f32.mrf.mxu2 }
 0x371   :  { %v369_v52 = vpop.f32.mrf.mxu3 }
 0x372   :  { %v370_v53 = vadd.f32 %v369_v52, %v340_v45  ;;  %v496_v10 = vpop.f32.mrf.mxu1 }
 0x374   :  { %v404_v55 = vadd.f32 %v398_v51, %v370_v53 }
 0x376   :  { %v407_v56 = vadd.f32 %v2523_v54, %v404_v55  ;;  %v526_v55 = vld [vmem:[%s3315_s2 + $0x28] sm:$0xff] }
 0x378   :  { %v411_v58 = vmul.f32 0.044715, %v407_v56  ;;  %v409_v22 = vmul.f32 0.5, %v407_v56 }
 0x379   :  { %v372_v60 = vpop.f32.mrf.mxu3 }
 0x37a   :  { %v413_v61 = vmul.f32 %v411_v58, %v407_v56  ;;  %v373_v62 = vadd.f32 %v372_v60, %v343_v47  ;;  %v499_v31 = vpop.f32.mrf.mxu1  ;;  %v2691_v58 = vmov 1.0  }
 0x37b   :  { %728 = vmatpush.msrb.mxu3 %v2691_v58 }
 0x37c   :  { %v415_v2 = vmul.f32 %v413_v61, %v407_v56  ;;  %v405_v3 = vadd.f32 %v401_v1, %v373_v62  ;;  %v2524_v62 = vld [vmem:[%s3315_s2 + $0x89] ss:$0 sm:$0xff] }
 0x37d   :  { %729 = vmatpush.msrb.mxu3 %v2691_v58 }
 0x37e   :  { %v408_v4 = vadd.f32 %v2523_v54, %v405_v3  ;;  %v417_v5 = vadd.f32 %v415_v2, %v407_v56  ;;  %v525_v56 = vld [vmem:[%s3315_s2 + $0x20] sm:$0xff] }
 0x37f   :  { %730 = vmatpush.msrb.mxu3 %v2691_v58 }
 0x380   :  { %v419_v7 = vmul.f32 0.7978846, %v417_v5  ;;  %v412_v8 = vmul.f32 0.044715, %v408_v4  ;;  %v410_v32 = vmul.f32 0.5, %v408_v4 }
 0x381   :  { %v444_v9 = vpop.f32.mrf.mxu3  ;;  %731 = vmatpush.msrb.mxu3 %v2691_v58 }
 0x382   :  { %v468_v11 = vadd.f32 %v467_v6, %v444_v9  ;;  %2555 = vtanh.f32 %v419_v7  ;;  %v414_v12 = vmul.f32 %v412_v8, %v408_v4 }
 0x384   :  { %v502_v13 = vadd.f32 %v496_v10, %v468_v11  ;;  %v416_v15 = vmul.f32 %v414_v12, %v408_v4 }
 0x386   :  { %v504_v16 = vadd.f32 %v2523_v54, %v502_v13  ;;  %v418_v17 = vadd.f32 %v416_v15, %v408_v4 }
 0x388   :  { %v2556_v18 = vpop.eup %2555  ;;  %v508_v19 = vmul.f32 0.044715, %v504_v16  ;;  %v420_v20 = vmul.f32 0.7978846, %v418_v17  ;;  %v506_v43 = vmul.f32 0.5, %v504_v16 }
 0x389   :  { %v447_v21 = vpop.f32.mrf.mxu3  ;;  %v423_v23 = vadd.f32 1.0, %v2556_v18 }
 0x38a   :  { %v510_v24 = vmul.f32 %v508_v19, %v504_v16  ;;  %2557 = vtanh.f32 %v420_v20 }
 0x38b   :  { %v425_v25 = vmul.f32 %v423_v23, %v409_v22  ;;  %v537_v22 = vld [vmem:[%s3315_s2 + $0x78] sm:$0xff] }
 0x38c   :  { %v512_v26 = vmul.f32 %v510_v24, %v504_v16 }
 0x38d   :  { %2379 = vmatmul.msk.f32.vlgmr.msra.gmra.mxu3 %vm562_vm8, %v425_v25 }
 0x38e   :  { %v514_v27 = vadd.f32 %v512_v26, %v504_v16 }
 0x390   :  { %v2558_v28 = vpop.eup %2557  ;;  %v516_v29 = vmul.f32 0.7978846, %v514_v27 }
 0x391   :  { %v470_v30 = vpop.f32.mrf.mxu3  ;;  %v424_v36 = vadd.f32 1.0, %v2558_v28 }
 0x392   :  { %v471_v37 = vadd.f32 %v470_v30, %v447_v21  ;;  %2559 = vtanh.f32 %v516_v29  ;;  %v538_v29 = vld [vmem:[%s3315_s2 + $0x80] sm:$0xff] }
 0x393   :  { %v426_v38 = vmul.f32 %v424_v36, %v410_v32  ;;  %v780_v36 = vld [vmem:[#allocation2 + $0x18] sm:$0xff] }
 0x394   :  { %v503_v39 = vadd.f32 %v499_v31, %v471_v37  ;;  %v779_v37 = vld [vmem:[#allocation2 + $0x10] sm:$0xff] }
 0x395   :  { %2380 = vmatmul.msk.f32.gmra.mxu3 %vm562_vm8, %v426_v38  ;;  %v778_v38 = vld [vmem:[#allocation2 + $0x8] sm:$0xff] }
 0x396   :  { %v505_v40 = vadd.f32 %v2523_v54, %v503_v39  ;;  %v527_v54 = vld [vmem:[%s3315_s2 + $0x30] sm:$0xff] }
 0x397   :  { %610 = vmatpush.msra.mxu0 %v527_v54 }
 0x398   :  { %v2560_v41 = vpop.eup %2559  ;;  %v509_v42 = vmul.f32 0.044715, %v505_v40  ;;  %v507_v51 = vmul.f32 0.5, %v505_v40 }
 0x399   :  { %v520_v44 = vadd.f32 1.0, %v2560_v41  ;;  %611 = vmatpush.msra.mxu0 %v526_v55 }
 0x39a   :  { %v511_v45 = vmul.f32 %v509_v42, %v505_v40 }
 0x39b   :  { %v522_v46 = vmul.f32 %v520_v44, %v506_v43  ;;  %612 = vmatpush.msra.mxu0 %v525_v56 }
 0x39c   :  { %v513_v47 = vmul.f32 %v511_v45, %v505_v40 }
 0x39d   :  { %2383 = vmatmul.msk.f32.vlgmr.msrb.gmra.mxu1 %vm562_vm8, %v522_v46 }
 0x39e   :  { %v515_v48 = vadd.f32 %v513_v47, %v505_v40  ;;  %v777_v40 = vld [vmem:[#allocation2] sm:$0xff] }
 0x3a0   :  { %v517_v49 = vmul.f32 0.7978846, %v515_v48 }
 0x3a2   :  { %2561 = vtanh.f32 %v517_v49 }
 0x3a8   :  { %v2562_v50 = vpop.eup %2561 }
 0x3a9   :  { %v521_v52 = vadd.f32 1.0, %v2562_v50 }
 0x3ab   :  { %v523_v53 = vmul.f32 %v521_v52, %v507_v51 }
 0x3ad   :  { %553 = vmatpush.msrb.mxu2 %v523_v53  ;;  %2384 = vmatmul.msk.f32.gmra.mxu1 %vm562_vm8, %v523_v53 }
 0x3af   :  { %554 = vmatpush.msrb.mxu2 %v522_v46 }
 0x3b0   :  { %2377 = vmatmul.msk.f32.vlgmr.msrb.gmra.mxu2 %vm258_vm6, %v2808_v34  ;;  %v524_v34 = vld [vmem:[%s3315_s2 + $0x18] sm:$0xff] }
 0x3b1   :  { %613 = vmatpush.msra.mxu0 %v524_v34  ;;  %695 = vmatpush.msra.mxu2 %v2691_v58 }
 0x3b3   :  { %696 = vmatpush.msra.mxu2 %v2691_v58  ;;  %799 = vmatpush.msrb.mxu0 %v780_v36 }
 0x3b5   :  { %697 = vmatpush.msra.mxu2 %v2691_v58  ;;  %800 = vmatpush.msrb.mxu0 %v779_v37  ;;  %v2975_v37 = vsel %vm65_vm5, 1.0, %v2690_v33 }
 0x3b7   :  { %698 = vmatpush.msra.mxu2 %v2691_v58  ;;  %801 = vmatpush.msrb.mxu0 %v778_v38 }
 0x3b8   :  { %2378 = vmatmul.msk.f32.gmra.mxu2 %vm258_vm6, %v2812_v35 }
 0x3b9   :  { %802 = vmatpush.msrb.mxu0 %v777_v40 }
 0x410   :  { %v586_v59 = vpop.f32.mrf.mxu3 }
 0x418   :  { %v589_v3 = vpop.f32.mrf.mxu3 }
 0x41a   :  { %v644_v63 = vpop.f32.mrf.mxu1 }
 0x42a   :  { %v647_v7 = vpop.f32.mrf.mxu1 }
 0x433   :  { %v556_v35 = vpop.f32.mrf.mxu2 }
 0x434   :  { %2381 = vmatmul.msk.f32.vlgmr.msra.gmra.mxu0 %vm562_vm8, %v556_v35 }
 0x43b   :  { %v559_v57 = vpop.f32.mrf.mxu2 }
 0x43c   :  { %2382 = vmatmul.msk.f32.gmra.mxu0 %vm562_vm8, %v559_v57 }
 0x4b1   :  { %v615_v60 = vpop.f32.mrf.mxu0 }
 0x4b2   :  { %v616_v61 = vadd.f32 %v615_v60, %v586_v59 }
 0x4b4   :  { %v650_v0 = vadd.f32 %v644_v63, %v616_v61 }
 0x4b6   :  { %v653_v1 = vadd.f32 %v2524_v62, %v650_v0 }
 0x4b8   :  { %v657_v2 = vmul.f32 0.044715, %v653_v1  ;;  %v655_v20 = vmul.f32 0.5, %v653_v1 }
 0x4b9   :  { %v618_v4 = vpop.f32.mrf.mxu0 }
 0x4ba   :  { %v659_v5 = vmul.f32 %v657_v2, %v653_v1  ;;  %v619_v6 = vadd.f32 %v618_v4, %v589_v3  ;;  %v2526_v2 = vld [vmem:[#allocation2 + $0xe1] ss:$0 sm:$0xff] }
 0x4bc   :  { %v661_v8 = vmul.f32 %v659_v5, %v653_v1  ;;  %v651_v9 = vadd.f32 %v647_v7, %v619_v6 }
 0x4be   :  { %v663_v10 = vadd.f32 %v661_v8, %v653_v1  ;;  %v654_v11 = vadd.f32 %v2524_v62, %v651_v9  ;;  %v2525_v62 = vld [vmem:[#allocation2 + $0xe0] ss:$0 sm:$0xff] }
 0x4c0   :  { %v665_v12 = vmul.f32 0.7978846, %v663_v10  ;;  %v658_v13 = vmul.f32 0.044715, %v654_v11  ;;  %v656_v27 = vmul.f32 0.5, %v654_v11 }
 0x4c2   :  { %v660_v15 = vmul.f32 %v658_v13, %v654_v11  ;;  %2563 = vtanh.f32 %v665_v12 }
 0x4c4   :  { %v662_v16 = vmul.f32 %v660_v15, %v654_v11 }
 0x4c6   :  { %v664_v17 = vadd.f32 %v662_v16, %v654_v11 }
 0x4c8   :  { %v2564_v18 = vpop.eup %2563  ;;  %v666_v19 = vmul.f32 0.7978846, %v664_v17 }
 0x4c9   :  { %v669_v21 = vadd.f32 1.0, %v2564_v18  ;;  %v2528_v18 = vld [vmem:[#allocation2 + $0xe3] ss:$0 sm:$0xff] }
 0x4ca   :  { %2565 = vtanh.f32 %v666_v19  ;;  %v2932_v19 = vsel %vm60_vm1, 1.0, %v2690_v33 }
 0x4cb   :  { %v671_v23 = vmul.f32 %v669_v21, %v655_v20  ;;  %v2527_v21 = vld [vmem:[#allocation2 + $0xe2] ss:$0 sm:$0xff] }
 0x4cd   :  { %v2905_v24 = vadd.f32 %v671_v23, %v537_v22 }
 0x4cf   :  { %2385 = vmatmul.msk.f32.vlgmr.msra.gmra.mxu2 %vm562_vm8, %v2905_v24  ;;  %v708_v25 = vmul.f32 %v2905_v24, %v2905_v24 }
 0x4d0   :  { %v2566_v26 = vpop.eup %2565 }
 0x4d1   :  { %2387 = vmatmul.msk.f32.vlgmr.msrb.gmra.mxu3 %vm562_vm8, %v708_v25  ;;  %v670_v28 = vadd.f32 1.0, %v2566_v26  ;;  %v2946_v25 = vsel %vm54_vm2, 1.0, %v2690_v33 }
 0x4d3   :  { %v672_v30 = vmul.f32 %v670_v28, %v656_v27 }
 0x4d5   :  { %v2915_v31 = vadd.f32 %v672_v30, %v538_v29 }
 0x4d7   :  { %2386 = vmatmul.msk.f32.gmra.mxu2 %vm562_vm8, %v2915_v31  ;;  %v709_v32 = vmul.f32 %v2915_v31, %v2915_v31 }
 0x4d9   :  { %2388 = vmatmul.msk.f32.gmra.mxu3 %vm562_vm8, %v709_v32 }
 0x552   :  { %v700_v39 = vpop.f32.mrf.mxu2 }
 0x553   :  { %v706_v41 = vmul.f32 0.03125, %v700_v39 }
 0x554   :  { %v733_v42 = vpop.f32.mrf.mxu3 }
 0x555   :  { %v741_v43 = vmul.f32 %v706_v41, %v706_v41  ;;  %v739_v44 = vmul.f32 0.03125, %v733_v42  ;;  %v745_v61 = vsub.f32 %v2905_v24, %v706_v41 }
 0x557   :  { %v743_v45 = vsub.f32 %v739_v44, %v741_v43 }
 0x559   :  { %v747_v46 = vadd.f32 1e-05, %v743_v45 }
 0x55a   :  { %v703_v47 = vpop.f32.mrf.mxu2 }
 0x55b   :  { %2567 = vrsqrt.f32 %v747_v46  ;;  %v707_v48 = vmul.f32 0.03125, %v703_v47  ;;  %vm755_vm10 = vweird.f32 %v747_v46 }
 0x55c   :  { %v736_v49 = vpop.f32.mrf.mxu3 }
 0x55d   :  { %v742_v50 = vmul.f32 %v707_v48, %v707_v48  ;;  %v740_v51 = vmul.f32 0.03125, %v736_v49  ;;  %v746_v8 = vsub.f32 %v2915_v31, %v707_v48 }
 0x55f   :  { %v744_v52 = vsub.f32 %v740_v51, %v742_v50 }
 0x561   :  { %v2568_v53 = vpop.eup %2567  ;;  %v748_v54 = vadd.f32 1e-05, %v744_v52 }
 0x562   :  { %v750_v55 = vmul.f32 %v2568_v53, %v747_v46  ;;  %vm756_vm9 = vweird.f32 %v2568_v53 }
 0x563   :  { %2569 = vrsqrt.f32 %v748_v54  ;;  %vm757_vm11 = vmor %vm755_vm10, %vm756_vm9  ;;  %vm765_vm13 = vweird.f32 %v748_v54  ;;  %vm69_vm9 = vcmp.lt.s32.totalorder %v2803_v14, 32 }
 0x564   :  { %v751_v56 = vmul.f32 %v2568_v53, %v750_v55  ;;  %vm70_vm10 = vmand %vm68_vm7, %vm69_vm9 }
 0x565   :  { %v3031_v14 = vsel %vm70_vm10, 1.0, %v2690_v33 }
 0x566   :  { %v752_v34 = vmul.f32 0.5, %v751_v56 }
 0x568   :  { %v753_v35 = vsub.f32 1.5, %v752_v34 }
 0x569   :  { %v2570_v57 = vpop.eup %2569 }
 0x56a   :  { %v754_v59 = vmul.f32 %v2568_v53, %v753_v35  ;;  %v760_v60 = vmul.f32 %v2570_v57, %v748_v54  ;;  %vm766_vm12 = vweird.f32 %v2570_v57 }
 0x56b   :  { %vm767_vm14 = vmor %vm765_vm13, %vm766_vm12 }
 0x56c   :  { %v758_v63 = vsel %vm757_vm11, %v2568_v53, %v754_v59  ;;  %v761_v0 = vmul.f32 %v2570_v57, %v760_v60 }
 0x56d   :  { %v769_v1 = vmul.f32 %v758_v63, %v745_v61 }
 0x56e   :  { %v762_v3 = vmul.f32 0.5, %v761_v0 }
 0x56f   :  { %v772_v4 = vmul.f32 %v2525_v62, %v769_v1 }
 0x570   :  { %v763_v5 = vsub.f32 1.5, %v762_v3 }
 0x571   :  { %v775_v6 = vadd.f32 %v2526_v2, %v772_v4 }
 0x572   :  { %v764_v7 = vmul.f32 %v2570_v57, %v763_v5 }
 0x573   :  { %2389 = vmatmul.msk.f32.vlgmr.msrb.gmra.mxu0 %vm562_vm8, %v775_v6 }
 0x574   :  { %v768_v9 = vsel %vm767_vm14, %v2570_v57, %v764_v7  ;;  %v2483_v7 = vpack.i.bf16 %v2975_v37, %v2946_v25 }
 0x575   :  { %v770_v10 = vmul.f32 %v768_v9, %v746_v8 }
 0x577   :  { %v773_v11 = vmul.f32 %v2525_v62, %v770_v10 }
 0x579   :  { %v776_v12 = vadd.f32 %v2526_v2, %v773_v11 }
 0x57b   :  { %2390 = vmatmul.msk.f32.gmra.mxu0 %vm562_vm8, %v776_v12 }
 0x5f0   :  { %v804_v13 = vpop.f32.mrf.mxu0 }
 0x5f1   :  { %v816_v15 = vmul.f32 0.59460354, %v804_v13  ;;  %v812_v22 = vadd.f32 %v2527_v21, %v804_v13 }
 0x5f3   :  { %830 = vrot.lane.b32.xlu0 %v816_v15, %s2692_s18  ;;  %v2943_v23 = vmul.f32 0.59460354, %v812_v22 }
 0x5f5   :  { %v826_v28 = vmul.f32 %v2946_v25, %v2943_v23  ;;  %v895_v29 = vmul.f32 %v2932_v19, %v2943_v23  ;;  %v1028_v38 = vmul.f32 %v2975_v37, %v2943_v23 }
 0x5f8   :  { %v807_v16 = vpop.f32.mrf.mxu0 }
 0x5f9   :  { %v817_v17 = vmul.f32 0.59460354, %v807_v16  ;;  %v813_v27 = vadd.f32 %v2527_v21, %v807_v16 }
 0x5fb   :  { %832 = vrot.lane.b32.xlu2 %v817_v17, %s2692_s18  ;;  %v2962_v30 = vmul.f32 0.59460354, %v813_v27 }
 0x5fd   :  { %v827_v32 = vmul.f32 %v2946_v25, %v2962_v30  ;;  %v896_v36 = vmul.f32 %v2932_v19, %v2962_v30  ;;  %v1029_v39 = vmul.f32 %v2975_v37, %v2962_v30 }
 0x603   :  { %821 = vrot.lane.b32.xlu2 %v2528_v18, %s2688_s3 }
 0x60b   :  { %949 = vrot.lane.b32.xlu2 %v2932_v19, %s2688_s3 }
 0x655   :  { %v2936_v20 = vpop.permute.xlu2 %832 }
 0x656   :  { %2391 = vmatpush.xpose.msk.msra.mxu1 %vm562_vm8, %v2936_v20  ;;  %2395 = vmatpush.xpose.msk.msrb.mxu2 %vm562_vm8, %v2936_v20 }
 0x65d   :  { %v822_v42 = vpop.permute.xlu2 %821 }
 0x65e   :  { %v2987_v46 = vadd.f32 %v822_v42, %v804_v13  ;;  %v2989_v47 = vadd.f32 %v822_v42, %v807_v16 }
 0x665   :  { %v2948_v26 = vpop.permute.xlu0 %830  ;;  %v2985_v45 = vpop.permute.xlu2 %949 }
 0x666   :  { %2392 = vmatpush.xpose.msk.msra.mxu1 %vm562_vm8, %v2948_v26  ;;  %2396 = vmatpush.xpose.msk.msrb.mxu2 %vm562_vm8, %v2948_v26  ;;  %v952_v48 = vmul.f32 %v2985_v45, %v2987_v46  ;;  %v953_v49 = vmul.f32 %v2985_v45, %v2989_v47 }
 0x668   :  { %v2478_v50 = vpack.i.bf16 %v952_v48, %v953_v49 }
 0x669   :  { %2393 = vmatmul.msk.f32.vlgmr.msra.gmra.mxu1 %vm562_vm8, %v826_v28  ;;  %2397 = vmatmul.msk.f32.vlgmr.msrb.gmra.mxu2 %vm562_vm8, %v895_v29  ;;  %v1126_v28 = vmul.f32 %v3031_v14, %v2943_v23 }
 0x66a   :  { %2403 = vmatpush.xpose.msk.msrb.mxu1 %vm562_vm8, %v2936_v20 }
 0x66e   :  { %2404 = vmatpush.xpose.msk.msrb.mxu1 %vm562_vm8, %v2948_v26 }
 0x671   :  { %2394 = vmatmul.msk.f32.gmra.mxu1 %vm562_vm8, %v827_v32  ;;  %2398 = vmatmul.msk.f32.gmra.mxu2 %vm562_vm8, %v896_v36 }
 0x679   :  { %2405 = vmatmul.msk.f32.vlgmr.msrb.gmra.mxu1 %vm562_vm8, %v1028_v38  ;;  %v1127_v38 = vmul.f32 %v3031_v14, %v2962_v30 }
 0x681   :  { %2406 = vmatmul.msk.f32.gmra.mxu1 %vm562_vm8, %v1029_v39 }
 0x6e6   :  { %v861_v51 = vpop.f32.mrf.mxu1 }
 0x6e7   :  { %v867_v5 = vsel %vm258_vm6, %v861_v51, -inf }
 0x6ec   :  { %v920_v40 = vpop.f32.mrf.mxu2 }
 0x6ed   :  { %v926_v41 = vsel %vm258_vm6, %v920_v40, -inf }
 0x6ee   :  { %927 = vmax.xlane.f32.xlu1 %v926_v41  ;;  %v2996_v52 = vpop.f32.mrf.mxu1 }
 0x6ef   :  { %v870_v6 = vsel %vm258_vm6, %v2996_v52, -inf }
 0x6f4   :  { %v923_v43 = vpop.f32.mrf.mxu2 }
 0x6f5   :  { %v929_v44 = vsel %vm258_vm6, %v923_v43, -inf }
 0x6f6   :  { %930 = vmax.xlane.f32.xlu0 %v929_v44  ;;  %v2998_v53 = vpop.f32.mrf.mxu1 }
 0x6f7   :  { %v1059_v54 = vsel %vm258_vm6, %v2998_v53, -inf }
 0x6fe   :  { %v3003_v62 = vpop.f32.mrf.mxu1 }
 0x6ff   :  { %v1062_v1 = vsel %vm258_vm6, %v3003_v62, -inf }
 0x707   :  { %2479 = vrot.lane.b32.xlu1 %v2478_v50, %s2688_s3 }
 0x731   :  { %1060 = vmax.xlane.f32.xlu1 %v1059_v54 }
 0x761   :  { %v928_v55 = vpop.xlane.xlu1 %927 }
 0x762   :  { %v932_v56 = vsub.f32 %v920_v40, %v928_v55 }
 0x764   :  { %v934_v34 = vmul.f32 1.442695, %v932_v56 }
 0x766   :  { %2571 = vpow2.f32 %v934_v34 }
 0x769   :  { %v931_v35 = vpop.xlane.xlu0 %930 }
 0x76a   :  { %v933_v57 = vsub.f32 %v923_v43, %v931_v35 }
 0x76c   :  { %v2572_v59 = vpop.eup %2571  ;;  %v936_v60 = vmul.f32 1.442695, %v933_v57 }
 0x76d   :  { %v938_v61 = vsel %vm258_vm6, %v2572_v59, 0.0 }
 0x76e   :  { %2573 = vpow2.f32 %v936_v60  ;;  %939 = vadd.xlane.f32.xlu2 %v938_v61 }
 0x774   :  { %v2574_v63 = vpop.eup %2573 }
 0x775   :  { %v941_v0 = vsel %vm258_vm6, %v2574_v63, 0.0 }
 0x776   :  { %942 = vadd.xlane.f32.xlu0 %v941_v0  ;;  %1063 = vmax.xlane.f32.xlu2 %v1062_v1 }
 0x779   :  { %v2480_v2 = vpop.permute.xlu1 %2479 }
 0x77a   :  { %v2481_v3 = vunpack.i.l.bf16 %v2480_v2  ;;  %v2482_v4 = vunpack.i.h.bf16 %v2480_v2 }
 0x77c   :  { %982 = vmatpush.msra.mxu3 %v2481_v3 }
 0x77e   :  { %983 = vmatpush.msra.mxu3 %v2482_v4  ;;  %868 = vmax.xlane.f32.xlu0 %v867_v5 }
 0x780   :  { %2409 = vmatpush.xpose.msk.msrb.mxu3 %vm562_vm8, %v2936_v20 }
 0x784   :  { %2410 = vmatpush.xpose.msk.msrb.mxu3 %vm562_vm8, %v2948_v26 }
 0x786   :  { %871 = vmax.xlane.f32.xlu0 %v870_v6 }
 0x78e   :  { %2484 = vrot.lane.b32.xlu2 %v2483_v7, %s2688_s3 }
 0x7a4   :  { %v1061_v55 = vpop.xlane.xlu1 %1060 }
 0x7a5   :  { %v1065_v56 = vsub.f32 %v2998_v53, %v1061_v55  ;;  %v1224_v55 = vld [vmem:[#allocation2 + $0x20] sm:$0xff] }
 0x7a7   :  { %v1067_v57 = vmul.f32 1.442695, %v1065_v56 }
 0x7e1   :  { %v940_v8 = vpop.xlane.xlu2 %939 }
 0x7e2   :  { %2575 = vrcp.f32 %v940_v8 }
 0x7e8   :  { %v2576_v9 = vpop.eup %2575 }
 0x7e9   :  { %v946_v10 = vmul.f32 %v2576_v9, %v2572_v59  ;;  %v943_v11 = vpop.xlane.xlu0 %942  ;;  %v1064_v12 = vpop.xlane.xlu2 %1063 }
 0x7ea   :  { %2577 = vrcp.f32 %v943_v11  ;;  %v1066_v30 = vsub.f32 %v3003_v62, %v1064_v12 }
 0x7eb   :  { %2399 = vmatmul.msk.f32.vlgmr.msra.gmra.mxu3 %vm258_vm6, %v946_v10 }
 0x7ec   :  { %1316 = vmatpush.msra.mxu3 %v2691_v58  ;;  %v1069_v44 = vmul.f32 1.442695, %v1066_v30 }
 0x7ee   :  { %1317 = vmatpush.msra.mxu3 %v2691_v58 }
 0x7f0   :  { %v2578_v13 = vpop.eup %2577  ;;  %1318 = vmatpush.msra.mxu3 %v2691_v58 }
 0x7f1   :  { %v869_v15 = vpop.xlane.xlu0 %868  ;;  %v2485_v16 = vpop.permute.xlu2 %2484  ;;  %v947_v17 = vmul.f32 %v2578_v13, %v2574_v63 }
 0x7f2   :  { %v873_v18 = vsub.f32 %v861_v51, %v869_v15  ;;  %v3024_v20 = vunpack.i.l.bf16 %v2485_v16  ;;  %1319 = vmatpush.msra.mxu3 %v2691_v58  ;;  %v3048_v40 = vunpack.i.h.bf16 %v2485_v16 }
 0x7f3   :  { %2400 = vmatmul.msk.f32.gmra.mxu3 %vm258_vm6, %v947_v17 }
 0x7f4   :  { %v875_v21 = vmul.f32 1.442695, %v873_v18  ;;  %v894_v22 = vmul.f32 %v3024_v20, %v2989_v47  ;;  %v893_v41 = vmul.f32 %v3024_v20, %v2987_v46  ;;  %v1086_v42 = vmul.f32 %v3048_v40, %v2989_v47 }
 0x7f5   :  { %v1085_v9 = vmul.f32 %v3048_v40, %v2987_v46 }
 0x7f6   :  { %2579 = vpow2.f32 %v875_v21  ;;  %v2488_v26 = vpack.i.bf16 %v894_v22, %v3031_v14  ;;  %v2493_v43 = vpack.i.bf16 %v1086_v42, %v893_v41 }
 0x7f8   :  { %2489 = vrot.lane.b32.xlu0 %v2488_v26, %s2688_s3 }
 0x7f9   :  { %v872_v27 = vpop.xlane.xlu0 %871 }
 0x7fa   :  { %v874_v29 = vsub.f32 %v2996_v52, %v872_v27 }
 0x7fb   :  { %2411 = vmatmul.msk.f32.vlgmr.msrb.gmra.mxu3 %vm562_vm8, %v1126_v28 }
 0x7fc   :  { %v2580_v32 = vpop.eup %2579  ;;  %v877_v36 = vmul.f32 1.442695, %v874_v29  ;;  %1516 = vmatpush.msrb.mxu3 %v2691_v58 }
 0x7fd   :  { %v879_v33 = vsel %vm258_vm6, %v2580_v32, 0.0 }
 0x7fe   :  { %2581 = vpow2.f32 %v877_v36  ;;  %880 = vadd.xlane.f32.xlu2 %v879_v33  ;;  %1517 = vmatpush.msrb.mxu3 %v2691_v58 }
 0x7ff   :  { %2583 = vpow2.f32 %v1069_v44  ;;  %v1227_v44 = vld [vmem:[#allocation2 + $0x38] sm:$0xff] }
 0x800   :  { %1518 = vmatpush.msrb.mxu3 %v2691_v58  ;;  %2585 = vpow2.f32 %v1067_v57  ;;  %1246 = vmatpush.msra.mxu1 %v1227_v44 }
 0x802   :  { %1519 = vmatpush.msrb.mxu3 %v2691_v58 }
 0x803   :  { %2412 = vmatmul.msk.f32.gmra.mxu3 %vm562_vm8, %v1127_v38 }
 0x804   :  { %v2582_v23 = vpop.eup %2581 }
 0x805   :  { %v882_v39 = vsel %vm258_vm6, %v2582_v23, 0.0  ;;  %v3056_v48 = vpop.eup %2583 }
 0x806   :  { %883 = vadd.xlane.f32.xlu1 %v882_v39  ;;  %v1074_v49 = vsel %vm258_vm6, %v3056_v48, 0.0  ;;  %v2586_v63 = vpop.eup %2585 }
 0x807   :  { %v1071_v0 = vsel %vm258_vm6, %v2586_v63, 0.0 }
 0x81f   :  { %2494 = vrot.lane.b32.xlu1 %v2493_v43, %s2688_s3 }
 0x849   :  { %1075 = vadd.xlane.f32.xlu1 %v1074_v49 }
 0x86a   :  { %v2490_v50 = vpop.permute.xlu0 %2489 }
 0x86b   :  { %v2492_v51 = vunpack.i.h.bf16 %v2490_v50  ;;  %v3069_v6 = vunpack.i.l.bf16 %v2490_v50 }
 0x86d   :  { %1019 = vmatpush.msra.mxu0 %v2492_v51  ;;  %v1184_v8 = vmul.f32 %v3069_v6, %v2989_v47  ;;  %v1225_v51 = vld [vmem:[#allocation2 + $0x28] sm:$0xff] }
 0x86e   :  { %v3060_v52 = vpop.f32.mrf.mxu3 }
 0x86f   :  { %v2498_v10 = vpack.i.bf16 %v1184_v8, %v1085_v9  ;;  %v1368_v9 = vld [vmem:[#allocation2 + $0x58] sm:$0xff] }
 0x871   :  { %v881_v60 = vpop.xlane.xlu2 %880 }
 0x872   :  { %2587 = vrcp.f32 %v881_v60 }
 0x876   :  { %v3062_v54 = vpop.f32.mrf.mxu3 }
 0x878   :  { %v2588_v1 = vpop.eup %2587 }
 0x879   :  { %v884_v62 = vpop.xlane.xlu1 %883  ;;  %v887_v4 = vmul.f32 %v2588_v1, %v2580_v32 }
 0x87a   :  { %2589 = vrcp.f32 %v884_v62 }
 0x87e   :  { %v1151_v34 = vpop.f32.mrf.mxu3 }
 0x87f   :  { %v1157_v35 = vsel %vm258_vm6, %v1151_v34, -inf }
 0x880   :  { %1158 = vmax.xlane.f32.xlu0 %v1157_v35  ;;  %v2590_v5 = vpop.eup %2589 }
 0x881   :  { %v888_v7 = vmul.f32 %v2590_v5, %v2582_v23  ;;  %v1183_v23 = vmul.f32 %v3069_v6, %v2987_v46 }
 0x886   :  { %v1154_v59 = vpop.f32.mrf.mxu3 }
 0x887   :  { %v1160_v61 = vsel %vm258_vm6, %v1154_v59, -inf }
 0x888   :  { %1161 = vmax.xlane.f32.xlu0 %v1160_v61 }
 0x890   :  { %1072 = vadd.xlane.f32.xlu0 %v1071_v0 }
 0x891   :  { %v2495_v2 = vpop.permute.xlu1 %2494 }
 0x892   :  { %v2497_v53 = vunpack.i.h.bf16 %v2495_v2  ;;  %v2496_v3 = vunpack.i.l.bf16 %v2495_v2 }
 0x894   :  { %1020 = vmatpush.msra.mxu0 %v2496_v3  ;;  %1115 = vmatpush.msra.mxu2 %v2497_v53  ;;  %v2529_v53 = vld [vmem:[#allocation2 + $0xe4] ss:$0 sm:$0xff] }
 0x895   :  { %2401 = vmatmul.msk.f32.vlgmr.msra.gmra.mxu0 %vm258_vm6, %v887_v4 }
 0x89d   :  { %2402 = vmatmul.msk.f32.gmra.mxu0 %vm258_vm6, %v888_v7 }
 0x8a4   :  { %2499 = vrot.lane.b32.xlu0 %v2498_v10, %s2688_s3  ;;  %v1367_v10 = vld [vmem:[#allocation2 + $0x50] sm:$0xff] }
 0x8bc   :  { %v1076_v27 = vpop.xlane.xlu1 %1075 }
 0x8f3   :  { %v1159_v11 = vpop.xlane.xlu0 %1158 }
 0x8f4   :  { %v1163_v12 = vsub.f32 %v1151_v34, %v1159_v11  ;;  %v1366_v11 = vld [vmem:[#allocation2 + $0x48] sm:$0xff] }
 0x8f6   :  { %v1165_v13 = vmul.f32 1.442695, %v1163_v12 }
 0x8f8   :  { %2591 = vpow2.f32 %v1165_v13  ;;  %v1365_v13 = vld [vmem:[#allocation2 + $0x40] sm:$0xff] }
 0x8fb   :  { %v1162_v15 = vpop.xlane.xlu0 %1161 }
 0x8fc   :  { %v1164_v16 = vsub.f32 %v1154_v59, %v1162_v15 }
 0x8fe   :  { %v2592_v17 = vpop.eup %2591  ;;  %v1167_v18 = vmul.f32 1.442695, %v1164_v16 }
 0x8ff   :  { %v1169_v21 = vsel %vm258_vm6, %v2592_v17, 0.0 }
 0x900   :  { %2593 = vpow2.f32 %v1167_v18  ;;  %1170 = vadd.xlane.f32.xlu2 %v1169_v21 }
 0x903   :  { %v1073_v26 = vpop.xlane.xlu0 %1072 }
 0x904   :  { %2595 = vrcp.f32 %v1073_v26  ;;  %v1433_v26 = vld [vmem:[#allocation2 + $0xd8] sm:$0xff] }
 0x905   :  { %2597 = vrcp.f32 %v1076_v27  ;;  %v1432_v27 = vld [vmem:[#allocation2 + $0xd0] sm:$0xff] }
 0x906   :  { %v2594_v22 = vpop.eup %2593 }
 0x907   :  { %v1172_v47 = vsel %vm258_vm6, %v2594_v22, 0.0 }
 0x908   :  { %1173 = vadd.xlane.f32.xlu2 %v1172_v47 }
 0x90a   :  { %v2596_v28 = vpop.eup %2595 }
 0x90b   :  { %v1079_v33 = vmul.f32 %v2596_v28, %v2586_v63  ;;  %v2598_v38 = vpop.eup %2597 }
 0x90c   :  { %v1080_v39 = vmul.f32 %v2598_v38, %v3056_v48  ;;  %v1226_v48 = vld [vmem:[#allocation2 + $0x30] sm:$0xff]  ;;  %v1430_v38 = vld [vmem:[#allocation2 + $0xc0] sm:$0xff] }
 0x90d   :  { %1247 = vmatpush.msra.mxu1 %v1226_v48 }
 0x90f   :  { %1248 = vmatpush.msra.mxu1 %v1225_v51 }
 0x911   :  { %1249 = vmatpush.msra.mxu1 %v1224_v55 }
 0x912   :  { %v1022_v56 = vpop.f32.mrf.mxu0 }
 0x913   :  { %v1023_v57 = vadd.f32 %v1022_v56, %v3060_v52  ;;  %1434 = vmatpush.msrb.mxu1 %v1433_v26 }
 0x915   :  { %1435 = vmatpush.msrb.mxu1 %v1432_v27 }
 0x916   :  { %v2500_v29 = vpop.permute.xlu0 %2499 }
 0x917   :  { %v2502_v32 = vunpack.i.h.bf16 %v2500_v29  ;;  %v2501_v36 = vunpack.i.l.bf16 %v2500_v29 }
 0x919   :  { %1116 = vmatpush.msra.mxu2 %v2501_v36  ;;  %1213 = vmatpush.msrb.mxu0 %v2502_v32  ;;  %v1431_v36 = vld [vmem:[#allocation2 + $0xc8] sm:$0xff] }
 0x91a   :  { %2407 = vmatmul.msk.f32.vlgmr.msra.gmra.mxu2 %vm258_vm6, %v1079_v33  ;;  %v1025_v34 = vpop.f32.mrf.mxu0  ;;  %1436 = vmatpush.msrb.mxu1 %v1431_v36 }
 0x91b   :  { %1283 = vmatpush.msrb.mxu2 %v2691_v58  ;;  %v1026_v63 = vadd.f32 %v1025_v34, %v3062_v54  ;;  %v2531_v34 = vld [vmem:[#allocation2 + $0xe6] ss:$0 sm:$0xff] }
 0x91c   :  { %1437 = vmatpush.msrb.mxu1 %v1430_v38 }
 0x91d   :  { %1284 = vmatpush.msrb.mxu2 %v2691_v58 }
 0x91f   :  { %1285 = vmatpush.msrb.mxu2 %v2691_v58 }
 0x920   :  { %1187 = vrot.lane.b32.xlu2 %v1183_v23, %s2688_s3 }
 0x921   :  { %1286 = vmatpush.msrb.mxu2 %v2691_v58 }
 0x922   :  { %2408 = vmatmul.msk.f32.gmra.mxu2 %vm258_vm6, %v1080_v39 }
 0x923   :  { %1483 = vmatpush.msra.mxu2 %v2691_v58 }
 0x925   :  { %1484 = vmatpush.msra.mxu2 %v2691_v58 }
 0x927   :  { %1485 = vmatpush.msra.mxu2 %v2691_v58 }
 0x929   :  { %1486 = vmatpush.msra.mxu2 %v2691_v58 }
 0x973   :  { %v1171_v41 = vpop.xlane.xlu2 %1170 }
 0x974   :  { %2599 = vrcp.f32 %v1171_v41 }
 0x97a   :  { %v2600_v42 = vpop.eup %2599 }
 0x97b   :  { %v1174_v46 = vpop.xlane.xlu2 %1173  ;;  %v1177_v43 = vmul.f32 %v2600_v42, %v2592_v17 }
 0x97c   :  { %2601 = vrcp.f32 %v1174_v46 }
 0x982   :  { %v2602_v49 = vpop.eup %2601 }
 0x983   :  { %v1188_v30 = vpop.permute.xlu2 %1187  ;;  %v1178_v50 = vmul.f32 %v2602_v49, %v2594_v22 }
 0x984   :  { %1214 = vmatpush.msrb.mxu0 %v1188_v30 }
 0x985   :  { %2413 = vmatmul.msk.f32.vlgmr.msrb.gmra.mxu0 %vm258_vm6, %v1177_v43 }
 0x986   :  { %1389 = vmatpush.msra.mxu0 %v1368_v9  ;;  %v1422_v9 = vld [vmem:[#allocation2 + $0x80] sm:$0xff] }
 0x988   :  { %1390 = vmatpush.msra.mxu0 %v1367_v10  ;;  %v1421_v10 = vld [vmem:[#allocation2 + $0x78] sm:$0xff] }
 0x98a   :  { %1391 = vmatpush.msra.mxu0 %v1366_v11  ;;  %v1420_v11 = vld [vmem:[#allocation2 + $0x70] sm:$0xff] }
 0x98c   :  { %1392 = vmatpush.msra.mxu0 %v1365_v13  ;;  %v1418_v13 = vld [vmem:[#allocation2 + $0x60] sm:$0xff] }
 0x98d   :  { %2414 = vmatmul.msk.f32.gmra.mxu0 %vm258_vm6, %v1178_v50  ;;  %v2530_v50 = vld [vmem:[#allocation2 + $0xe5] ss:$0 sm:$0xff] }
 0x99d   :  { %v1118_v35 = vpop.f32.mrf.mxu2 }
 0x99e   :  { %v1124_v59 = vadd.f32 %v1118_v35, %v1023_v57 }
 0x9a5   :  { %v1121_v62 = vpop.f32.mrf.mxu2 }
 0x9a6   :  { %v1125_v0 = vadd.f32 %v1121_v62, %v1026_v63 }
 0xa02   :  { %v1216_v60 = vpop.f32.mrf.mxu0 }
 0xa03   :  { %v1222_v61 = vadd.f32 %v1216_v60, %v1124_v59 }
 0xa05   :  { %2415 = vmatmul.msk.f32.vlgmr.msra.gmra.mxu1 %vm562_vm8, %v1222_v61 }
 0xa0a   :  { %v1219_v1 = vpop.f32.mrf.mxu0 }
 0xa0b   :  { %v1223_v2 = vadd.f32 %v1219_v1, %v1125_v0 }
 0xa0d   :  { %2416 = vmatmul.msk.f32.gmra.mxu1 %vm562_vm8, %v1223_v2 }
 0xa82   :  { %v1251_v3 = vpop.f32.mrf.mxu1 }
 0xa83   :  { %v1257_v4 = vadd.f32 %v1251_v3, %v2905_v24  ;;  %v1428_v3 = vld [vmem:[#allocation2 + $0xb0] sm:$0xff] }
 0xa85   :  { %v3100_v5 = vadd.f32 %v2529_v53, %v1257_v4  ;;  %v1427_v4 = vld [vmem:[#allocation2 + $0xa8] sm:$0xff] }
 0xa87   :  { %v1296_v52 = vmul.f32 %v3100_v5, %v3100_v5  ;;  %2417 = vmatmul.msk.f32.vlgmr.msrb.gmra.mxu2 %vm562_vm8, %v3100_v5 }
 0xa89   :  { %2419 = vmatmul.msk.f32.vlgmr.msra.gmra.mxu3 %vm562_vm8, %v1296_v52  ;;  %v1426_v52 = vld [vmem:[#allocation2 + $0xa0] sm:$0xff] }
 0xa8a   :  { %v1254_v54 = vpop.f32.mrf.mxu1 }
 0xa8b   :  { %v1258_v7 = vadd.f32 %v1254_v54, %v2915_v31  ;;  %v1425_v54 = vld [vmem:[#allocation2 + $0x98] sm:$0xff] }
 0xa8d   :  { %v3108_v8 = vadd.f32 %v2529_v53, %v1258_v7  ;;  %v1429_v53 = vld [vmem:[#allocation2 + $0xb8] sm:$0xff]  ;;  %v1424_v7 = vld [vmem:[#allocation2 + $0x90] sm:$0xff] }
 0xa8e   :  { %1438 = vmatpush.msrb.mxu1 %v1429_v53 }
 0xa8f   :  { %2418 = vmatmul.msk.f32.gmra.mxu2 %vm562_vm8, %v3108_v8  ;;  %v1297_v24 = vmul.f32 %v3108_v8, %v3108_v8 }
 0xa90   :  { %1439 = vmatpush.msrb.mxu1 %v1428_v3 }
 0xa91   :  { %2420 = vmatmul.msk.f32.gmra.mxu3 %vm562_vm8, %v1297_v24  ;;  %v1423_v24 = vld [vmem:[#allocation2 + $0x88] sm:$0xff] }
 0xa92   :  { %1440 = vmatpush.msrb.mxu1 %v1427_v4 }
 0xa94   :  { %1441 = vmatpush.msrb.mxu1 %v1426_v52 }
 0xa96   :  { %1442 = vmatpush.msrb.mxu1 %v1425_v54 }
 0xa98   :  { %1443 = vmatpush.msrb.mxu1 %v1424_v7 }
 0xa9a   :  { %1444 = vmatpush.msrb.mxu1 %v1423_v24 }
 0xa9c   :  { %1445 = vmatpush.msrb.mxu1 %v1422_v9 }
 0xa9e   :  { %1446 = vmatpush.msrb.mxu1 %v1421_v10 }
 0xaa0   :  { %1447 = vmatpush.msrb.mxu1 %v1420_v11 }
 0xb0a   :  { %v1288_v12 = vpop.f32.mrf.mxu2 }
 0xb0b   :  { %v1294_v15 = vmul.f32 0.03125, %v1288_v12  ;;  %v1419_v12 = vld [vmem:[#allocation2 + $0x68] sm:$0xff] }
 0xb0c   :  { %v1321_v31 = vpop.f32.mrf.mxu3  ;;  %1448 = vmatpush.msrb.mxu1 %v1419_v12 }
 0xb0d   :  { %v1329_v16 = vmul.f32 %v1294_v15, %v1294_v15  ;;  %v1327_v17 = vmul.f32 0.03125, %v1321_v31  ;;  %v1333_v49 = vsub.f32 %v3100_v5, %v1294_v15  ;;  %v2532_v15 = vld [vmem:[#allocation2 + $0xe8] ss:$0 sm:$0xff] }
 0xb0e   :  { %1449 = vmatpush.msrb.mxu1 %v1418_v13 }
 0xb0f   :  { %v1331_v18 = vsub.f32 %v1327_v17, %v1329_v16 }
 0xb11   :  { %v1335_v21 = vadd.f32 1e-05, %v1331_v18 }
 0xb12   :  { %v1291_v22 = vpop.f32.mrf.mxu2 }
 0xb13   :  { %2603 = vrsqrt.f32 %v1335_v21  ;;  %v1295_v47 = vmul.f32 0.03125, %v1291_v22  ;;  %vm1343_vm12 = vweird.f32 %v1335_v21 }
 0xb14   :  { %v1324_v28 = vpop.f32.mrf.mxu3 }
 0xb15   :  { %v1330_v29 = vmul.f32 %v1295_v47, %v1295_v47  ;;  %v1328_v32 = vmul.f32 0.03125, %v1324_v28  ;;  %v1334_v62 = vsub.f32 %v3108_v8, %v1295_v47 }
 0xb17   :  { %v1332_v33 = vsub.f32 %v1328_v32, %v1330_v29 }
 0xb19   :  { %v2604_v23 = vpop.eup %2603  ;;  %v1336_v39 = vadd.f32 1e-05, %v1332_v33 }
 0xb1a   :  { %v1338_v41 = vmul.f32 %v2604_v23, %v1335_v21  ;;  %vm1344_vm11 = vweird.f32 %v2604_v23 }
 0xb1b   :  { %2605 = vrsqrt.f32 %v1336_v39  ;;  %vm1345_vm13 = vmor %vm1343_vm12, %vm1344_vm11  ;;  %vm1353_vm15 = vweird.f32 %v1336_v39 }
 0xb1c   :  { %v1339_v46 = vmul.f32 %v2604_v23, %v1338_v41 }
 0xb1e   :  { %v1340_v42 = vmul.f32 0.5, %v1339_v46 }
 0xb20   :  { %v1341_v43 = vsub.f32 1.5, %v1340_v42 }
 0xb21   :  { %v2606_v30 = vpop.eup %2605 }
 0xb22   :  { %v1342_v44 = vmul.f32 %v2604_v23, %v1341_v43  ;;  %v1348_v48 = vmul.f32 %v2606_v30, %v1336_v39  ;;  %vm1354_vm14 = vweird.f32 %v2606_v30 }
 0xb23   :  { %vm1355_vm0 = vmor %vm1353_vm15, %vm1354_vm14 }
 0xb24   :  { %v1346_v51 = vsel %vm1345_vm13, %v2604_v23, %v1342_v44  ;;  %v1349_v55 = vmul.f32 %v2606_v30, %v1348_v48  ;;  %v2533_v44 = vld [vmem:[#allocation2 + $0xe7] ss:$0 sm:$0xff] }
 0xb25   :  { %v1357_v56 = vmul.f32 %v1346_v51, %v1333_v49 }
 0xb26   :  { %v1350_v35 = vmul.f32 0.5, %v1349_v55 }
 0xb27   :  { %v1360_v57 = vmul.f32 %v2530_v50, %v1357_v56 }
 0xb28   :  { %v1351_v59 = vsub.f32 1.5, %v1350_v35  ;;  %v1568_v35 = vld [vmem:[#allocation2 + $0x108] sm:$0xff] }
 0xb29   :  { %v1363_v60 = vadd.f32 %v2531_v34, %v1360_v57  ;;  %1587 = vmatpush.msrb.mxu0 %v1568_v35  ;;  %v1567_v57 = vld [vmem:[#allocation2 + $0x100] sm:$0xff] }
 0xb2a   :  { %v1352_v61 = vmul.f32 %v2606_v30, %v1351_v59  ;;  %v1566_v59 = vld [vmem:[#allocation2 + $0xf8] sm:$0xff] }
 0xb2b   :  { %2421 = vmatmul.msk.f32.vlgmr.msra.gmra.mxu0 %vm562_vm8, %v1363_v60 }
 0xb2c   :  { %v1356_v63 = vsel %vm1355_vm0, %v2606_v30, %v1352_v61  ;;  %1588 = vmatpush.msrb.mxu0 %v1567_v57  ;;  %v1565_v61 = vld [vmem:[#allocation2 + $0xf0] sm:$0xff] }
 0xb2d   :  { %v1358_v0 = vmul.f32 %v1356_v63, %v1334_v62 }
 0xb2e   :  { %1589 = vmatpush.msrb.mxu0 %v1566_v59 }
 0xb2f   :  { %v1361_v1 = vmul.f32 %v2530_v50, %v1358_v0 }
 0xb30   :  { %1590 = vmatpush.msrb.mxu0 %v1565_v61 }
 0xb31   :  { %v1364_v2 = vadd.f32 %v2531_v34, %v1361_v1 }
 0xb33   :  { %2422 = vmatmul.msk.f32.gmra.mxu0 %vm562_vm8, %v1364_v2 }
 0xba8   :  { %v1394_v31 = vpop.f32.mrf.mxu0 }
 0xba9   :  { %v1395_v16 = vadd.f32 %v2532_v15, %v1394_v31 }
 0xbab   :  { %v1402_v17 = vmul.f32 0.044715, %v1395_v16  ;;  %v1400_v23 = vmul.f32 0.5, %v1395_v16 }
 0xbad   :  { %v1404_v18 = vmul.f32 %v1402_v17, %v1395_v16 }
 0xbaf   :  { %v1406_v21 = vmul.f32 %v1404_v18, %v1395_v16  ;;  %v2534_v18 = vld [vmem:[#allocation2 + $0x1d0] ss:$0 sm:$0xff] }
 0xbb0   :  { %v1397_v22 = vpop.f32.mrf.mxu0 }
 0xbb1   :  { %v1398_v47 = vadd.f32 %v2532_v15, %v1397_v22  ;;  %v1408_v26 = vadd.f32 %v1406_v21, %v1395_v16 }
 0xbb3   :  { %v1410_v27 = vmul.f32 0.7978846, %v1408_v26  ;;  %v1403_v28 = vmul.f32 0.044715, %v1398_v47  ;;  %v1401_v42 = vmul.f32 0.5, %v1398_v47 }
 0xbb4   :  { %v2535_v26 = vld [vmem:[#allocation2 + $0x1d1] ss:$0 sm:$0xff] }
 0xbb5   :  { %2607 = vtanh.f32 %v1410_v27  ;;  %v1405_v29 = vmul.f32 %v1403_v28, %v1398_v47 }
 0xbb7   :  { %v1407_v32 = vmul.f32 %v1405_v29, %v1398_v47 }
 0xbb9   :  { %v1409_v36 = vadd.f32 %v1407_v32, %v1398_v47 }
 0xbbb   :  { %v2608_v33 = vpop.eup %2607  ;;  %v1411_v38 = vmul.f32 0.7978846, %v1409_v36 }
 0xbbc   :  { %v1414_v39 = vadd.f32 1.0, %v2608_v33 }
 0xbbd   :  { %2609 = vtanh.f32 %v1411_v38 }
 0xbbe   :  { %v1416_v41 = vmul.f32 %v1414_v39, %v1400_v23 }
 0xbc0   :  { %1450 = vmatmul.f32.vlgmr.msrb.gmra.mxu1 %v1416_v41 }
 0xbc3   :  { %v2610_v46 = vpop.eup %2609 }
 0xbc4   :  { %v1415_v43 = vadd.f32 1.0, %v2610_v46 }
 0xbc6   :  { %v1417_v30 = vmul.f32 %v1415_v43, %v1401_v42 }
 0xbc8   :  { %1453 = vmatmul.f32.gmra.mxu1 %v1417_v30 }
 0xc3d   :  { %v1451_v48 = vpop.f32.mrf.mxu1 }
 0xc3e   :  { %v1457_v49 = vadd.f32 %v1451_v48, %v3100_v5  ;;  %v2536_v48 = vld [vmem:[#allocation2 + $0x1d2] ss:$0 sm:$0xff] }
 0xc40   :  { %v3120_v50 = vadd.f32 %v2533_v44, %v1457_v49 }
 0xc42   :  { %v1496_v51 = vmul.f32 %v3120_v50, %v3120_v50  ;;  %2423 = vmatmul.msk.f32.vlgmr.msra.gmra.mxu2 %vm562_vm8, %v3120_v50 }
 0xc44   :  { %2425 = vmatmul.msk.f32.vlgmr.msrb.gmra.mxu3 %vm562_vm8, %v1496_v51 }
 0xc45   :  { %v1454_v55 = vpop.f32.mrf.mxu1 }
 0xc46   :  { %v1458_v56 = vadd.f32 %v1454_v55, %v3108_v8 }
 0xc48   :  { %v3128_v34 = vadd.f32 %v2533_v44, %v1458_v56  ;;  %v2537_v44 = vld [vmem:[#allocation2 + $0x1d3] ss:$0 sm:$0xff] }
 0xc4a   :  { %2424 = vmatmul.msk.f32.gmra.mxu2 %vm562_vm8, %v3128_v34  ;;  %v1497_v5 = vmul.f32 %v3128_v34, %v3128_v34 }
 0xc4c   :  { %2426 = vmatmul.msk.f32.gmra.mxu3 %vm562_vm8, %v1497_v5 }
 0xcc5   :  { %v1488_v60 = vpop.f32.mrf.mxu2 }
 0xcc6   :  { %v1494_v62 = vmul.f32 0.03125, %v1488_v60 }
 0xcc7   :  { %v1521_v8 = vpop.f32.mrf.mxu3 }
 0xcc8   :  { %v1529_v63 = vmul.f32 %v1494_v62, %v1494_v62  ;;  %v1527_v0 = vmul.f32 0.03125, %v1521_v8  ;;  %v1533_v17 = vsub.f32 %v3120_v50, %v1494_v62 }
 0xcca   :  { %v1531_v1 = vsub.f32 %v1527_v0, %v1529_v63 }
 0xccc   :  { %v1535_v2 = vadd.f32 1e-05, %v1531_v1 }
 0xccd   :  { %v1491_v53 = vpop.f32.mrf.mxu2 }
 0xcce   :  { %2611 = vrsqrt.f32 %v1535_v2  ;;  %v1495_v3 = vmul.f32 0.03125, %v1491_v53  ;;  %vm1543_vm2 = vweird.f32 %v1535_v2 }
 0xccf   :  { %v1524_v4 = vpop.f32.mrf.mxu3 }
 0xcd0   :  { %v1530_v52 = vmul.f32 %v1495_v3, %v1495_v3  ;;  %v1528_v54 = vmul.f32 0.03125, %v1524_v4  ;;  %v1534_v33 = vsub.f32 %v3128_v34, %v1495_v3 }
 0xcd2   :  { %v1532_v7 = vsub.f32 %v1528_v54, %v1530_v52 }
 0xcd4   :  { %v2612_v24 = vpop.eup %2611  ;;  %v1536_v9 = vadd.f32 1e-05, %v1532_v7 }
 0xcd5   :  { %v1538_v10 = vmul.f32 %v2612_v24, %v1535_v2  ;;  %vm1544_vm1 = vweird.f32 %v2612_v24 }
 0xcd6   :  { %2613 = vrsqrt.f32 %v1536_v9  ;;  %vm1545_vm3 = vmor %vm1543_vm2, %vm1544_vm1  ;;  %vm1553_vm5 = vweird.f32 %v1536_v9 }
 0xcd7   :  { %v1539_v11 = vmul.f32 %v2612_v24, %v1538_v10 }
 0xcd9   :  { %v1540_v12 = vmul.f32 0.5, %v1539_v11 }
 0xcdb   :  { %v1541_v13 = vsub.f32 1.5, %v1540_v12 }
 0xcdc   :  { %v2614_v15 = vpop.eup %2613 }
 0xcdd   :  { %v1542_v31 = vmul.f32 %v2612_v24, %v1541_v13  ;;  %v1548_v16 = vmul.f32 %v2614_v15, %v1536_v9  ;;  %vm1554_vm4 = vweird.f32 %v2614_v15 }
 0xcde   :  { %vm1555_vm7 = vmor %vm1553_vm5, %vm1554_vm4 }
 0xcdf   :  { %v1546_v21 = vsel %vm1545_vm3, %v2612_v24, %v1542_v31  ;;  %v1549_v22 = vmul.f32 %v2614_v15, %v1548_v16 }
 0xce0   :  { %v1557_v47 = vmul.f32 %v1546_v21, %v1533_v17 }
 0xce1   :  { %v1550_v27 = vmul.f32 0.5, %v1549_v22 }
 0xce2   :  { %v1560_v28 = vmul.f32 %v2534_v18, %v1557_v47 }
 0xce3   :  { %v1551_v29 = vsub.f32 1.5, %v1550_v27 }
 0xce4   :  { %v1563_v32 = vadd.f32 %v2535_v26, %v1560_v28 }
 0xce5   :  { %v1552_v36 = vmul.f32 %v2614_v15, %v1551_v29 }
 0xce6   :  { %2427 = vmatmul.msk.f32.vlgmr.msrb.gmra.mxu0 %vm562_vm8, %v1563_v32 }
 0xce7   :  { %v1556_v38 = vsel %vm1555_vm7, %v2614_v15, %v1552_v36 }
 0xce8   :  { %v1558_v23 = vmul.f32 %v1556_v38, %v1534_v33 }
 0xcea   :  { %v1561_v39 = vmul.f32 %v2534_v18, %v1558_v23 }
 0xcec   :  { %v1564_v41 = vadd.f32 %v2535_v26, %v1561_v39 }
 0xcee   :  { %2428 = vmatmul.msk.f32.gmra.mxu0 %vm562_vm8, %v1564_v41 }
 0xd63   :  { %v1592_v46 = vpop.f32.mrf.mxu0 }
 0xd64   :  { %v1604_v30 = vmul.f32 0.59460354, %v1592_v46  ;;  %v1600_v51 = vadd.f32 %v2536_v48, %v1592_v46 }
 0xd66   :  { %v3144_v55 = vmul.f32 0.59460354, %v1600_v51 }
 0xd68   :  { %v1614_v35 = vmul.f32 %v2946_v25, %v3144_v55  ;;  %v1679_v57 = vmul.f32 %v2932_v19, %v3144_v55 }
 0xd6b   :  { %v1595_v42 = vpop.f32.mrf.mxu0 }
 0xd6c   :  { %v1605_v43 = vmul.f32 0.59460354, %v1595_v42  ;;  %v1601_v5 = vadd.f32 %v2536_v48, %v1595_v42 }
 0xd6e   :  { %1620 = vrot.lane.b32.xlu0 %v1605_v43, %s2692_s18  ;;  %v3155_v59 = vmul.f32 0.59460354, %v1601_v5 }
 0xd70   :  { %v1615_v8 = vmul.f32 %v2946_v25, %v3155_v59  ;;  %v1680_v63 = vmul.f32 %v2932_v19, %v3155_v59  ;;  %v1809_v7 = vmul.f32 %v2975_v37, %v3155_v59 }
 0xd76   :  { %1618 = vrot.lane.b32.xlu0 %v1604_v30, %s2692_s18 }
 0xd7e   :  { %1609 = vrot.lane.b32.xlu0 %v2537_v44, %s2688_s3 }
 0xde0   :  { %v1621_v49 = vpop.permute.xlu0 %1620 }
 0xde1   :  { %2429 = vmatpush.xpose.msk.msrb.mxu2 %vm562_vm8, %v1621_v49  ;;  %2433 = vmatpush.xpose.msk.msra.mxu3 %vm562_vm8, %v1621_v49 }
 0xde8   :  { %v1619_v56 = vpop.permute.xlu0 %1618 }
 0xde9   :  { %2430 = vmatpush.xpose.msk.msrb.mxu2 %vm562_vm8, %v1619_v56  ;;  %2434 = vmatpush.xpose.msk.msra.mxu3 %vm562_vm8, %v1619_v56 }
 0xdec   :  { %2431 = vmatmul.msk.f32.vlgmr.msrb.gmra.mxu2 %vm562_vm8, %v1614_v35  ;;  %2435 = vmatmul.msk.f32.vlgmr.msra.gmra.mxu3 %vm562_vm8, %v1679_v57  ;;  %v1903_v35 = vmul.f32 %v3031_v14, %v3155_v59 }
 0xded   :  { %2441 = vmatpush.xpose.msk.msra.mxu2 %vm562_vm8, %v1621_v49 }
 0xdf0   :  { %v1610_v60 = vpop.permute.xlu0 %1609 }
 0xdf1   :  { %2442 = vmatpush.xpose.msk.msra.mxu2 %vm562_vm8, %v1619_v56  ;;  %v1612_v61 = vadd.f32 %v1610_v60, %v1592_v46  ;;  %v1613_v62 = vadd.f32 %v1610_v60, %v1595_v42 }
 0xdf3   :  { %v1732_v0 = vmul.f32 %v1612_v61, %v2985_v45  ;;  %v1733_v1 = vmul.f32 %v1613_v62, %v2985_v45  ;;  %v3165_v2 = vmul.f32 %v3024_v20, %v1612_v61  ;;  %v3168_v53 = vmul.f32 %v3024_v20, %v1613_v62 }
 0xdf4   :  { %2432 = vmatmul.msk.f32.gmra.mxu2 %vm562_vm8, %v1615_v8  ;;  %2436 = vmatmul.msk.f32.gmra.mxu3 %vm562_vm8, %v1680_v63  ;;  %v3173_v3 = vmul.f32 %v3048_v40, %v1612_v61  ;;  %v3176_v25 = vmul.f32 %v3048_v40, %v1613_v62  ;;  %v3179_v19 = vmul.f32 %v3069_v6, %v1612_v61 }
 0xdf5   :  { %v2503_v45 = vpack.i.bf16 %v1732_v0, %v1733_v1  ;;  %v2508_v4 = vpack.i.bf16 %v3165_v2, %v3168_v53  ;;  %v3184_v20 = vmul.f32 %v3069_v6, %v1613_v62  ;;  %v1808_v40 = vmul.f32 %v2975_v37, %v3144_v55 }
 0xdf6   :  { %v2513_v52 = vpack.i.bf16 %v3173_v3, %v3176_v25 }
 0xdf7   :  { %2504 = vrot.lane.b32.xlu0 %v2503_v45, %s2688_s3  ;;  %v2518_v54 = vpack.i.bf16 %v3179_v19, %v3184_v20 }
 0xdfc   :  { %2443 = vmatmul.msk.f32.vlgmr.msra.gmra.mxu2 %vm562_vm8, %v1808_v40 }
 0xe04   :  { %2444 = vmatmul.msk.f32.gmra.mxu2 %vm562_vm8, %v1809_v7 }
 0xe69   :  { %v2505_v6 = vpop.permute.xlu0 %2504 }
 0xe6a   :  { %v2506_v24 = vunpack.i.l.bf16 %v2505_v6  ;;  %v2507_v9 = vunpack.i.h.bf16 %v2505_v6 }
 0xe6c   :  { %1762 = vmatpush.msra.mxu0 %v2506_v24 }
 0xe6e   :  { %1763 = vmatpush.msra.mxu0 %v2507_v9 }
 0xe6f   :  { %v3197_v10 = vpop.f32.mrf.mxu2  ;;  %v1704_v11 = vpop.f32.mrf.mxu3 }
 0xe70   :  { %2447 = vmatpush.xpose.msk.msrb.mxu0 %vm562_vm8, %v1621_v49  ;;  %v1710_v12 = vsel %vm258_vm6, %v1704_v11, -inf  ;;  %v1655_v13 = vsel %vm258_vm6, %v3197_v10, -inf  ;;  %v1902_v49 = vmul.f32 %v3031_v14, %v3144_v55 }
 0xe71   :  { %1711 = vmax.xlane.f32.xlu1 %v1710_v12  ;;  %1656 = vmax.xlane.f32.xlu0 %v1655_v13 }
 0xe74   :  { %2448 = vmatpush.xpose.msk.msrb.mxu0 %vm562_vm8, %v1619_v56 }
 0xe77   :  { %v1707_v37 = vpop.f32.mrf.mxu3  ;;  %v1652_v29 = vpop.f32.mrf.mxu2 }
 0xe78   :  { %v1713_v15 = vsel %vm258_vm6, %v1707_v37, -inf  ;;  %v1658_v32 = vsel %vm258_vm6, %v1652_v29, -inf }
 0xe79   :  { %1714 = vmax.xlane.f32.xlu2 %v1713_v15 }
 0xe7f   :  { %v1833_v36 = vpop.f32.mrf.mxu2 }
 0xe80   :  { %v1839_v33 = vsel %vm258_vm6, %v1833_v36, -inf }
 0xe87   :  { %v1836_v38 = vpop.f32.mrf.mxu2 }
 0xe88   :  { %v1842_v23 = vsel %vm258_vm6, %v1836_v38, -inf }
 0xee4   :  { %v1712_v31 = vpop.xlane.xlu1 %1711  ;;  %v1657_v14 = vpop.xlane.xlu0 %1656 }
 0xee5   :  { %v1716_v16 = vsub.f32 %v1704_v11, %v1712_v31  ;;  %v1661_v59 = vsub.f32 %v3197_v10, %v1657_v14 }
 0xee7   :  { %v1718_v17 = vmul.f32 1.442695, %v1716_v16  ;;  %v1663_v1 = vmul.f32 1.442695, %v1661_v59 }
 0xee9   :  { %2615 = vpow2.f32 %v1718_v17 }
 0xeec   :  { %v1715_v18 = vpop.xlane.xlu2 %1714 }
 0xeed   :  { %v1717_v21 = vsub.f32 %v1707_v37, %v1715_v18 }
 0xeef   :  { %v2616_v22 = vpop.eup %2615  ;;  %v1720_v47 = vmul.f32 1.442695, %v1717_v21 }
 0xef0   :  { %v1722_v26 = vsel %vm258_vm6, %v2616_v22, 0.0 }
 0xef1   :  { %2617 = vpow2.f32 %v1720_v47  ;;  %1723 = vadd.xlane.f32.xlu1 %v1722_v26 }
 0xef7   :  { %v2618_v27 = vpop.eup %2617 }
 0xef8   :  { %v1725_v28 = vsel %vm258_vm6, %v2618_v27, 0.0 }
 0xef9   :  { %1726 = vadd.xlane.f32.xlu1 %v1725_v28 }
 0xf01   :  { %1659 = vmax.xlane.f32.xlu1 %v1658_v32 }
 0xf09   :  { %1840 = vmax.xlane.f32.xlu1 %v1839_v33 }
 0xf11   :  { %1843 = vmax.xlane.f32.xlu1 %v1842_v23 }
 0xf64   :  { %v1724_v39 = vpop.xlane.xlu1 %1723 }
 0xf65   :  { %2619 = vrcp.f32 %v1724_v39 }
 0xf6b   :  { %v2620_v41 = vpop.eup %2619 }
 0xf6c   :  { %v1730_v46 = vmul.f32 %v2620_v41, %v2616_v22  ;;  %v1727_v42 = vpop.xlane.xlu1 %1726 }
 0xf6d   :  { %2621 = vrcp.f32 %v1727_v42 }
 0xf6e   :  { %2437 = vmatmul.msk.f32.vlgmr.msra.gmra.mxu0 %vm258_vm6, %v1730_v46 }
 0xf6f   :  { %2088 = vmatpush.msra.mxu0 %v2691_v58 }
 0xf71   :  { %2089 = vmatpush.msra.mxu0 %v2691_v58 }
 0xf73   :  { %v2622_v43 = vpop.eup %2621  ;;  %2090 = vmatpush.msra.mxu0 %v2691_v58 }
 0xf74   :  { %v1660_v30 = vpop.xlane.xlu1 %1659  ;;  %v1731_v44 = vmul.f32 %v2622_v43, %v2618_v27 }
 0xf75   :  { %2091 = vmatpush.msra.mxu0 %v2691_v58  ;;  %v1662_v45 = vsub.f32 %v1652_v29, %v1660_v30 }
 0xf76   :  { %2438 = vmatmul.msk.f32.gmra.mxu0 %vm258_vm6, %v1731_v44 }
 0xf77   :  { %v1665_v6 = vmul.f32 1.442695, %v1662_v45 }
 0xf7c   :  { %v1841_v48 = vpop.xlane.xlu1 %1840 }
 0xf7d   :  { %v1845_v51 = vsub.f32 %v1833_v36, %v1841_v48 }
 0xf7e   :  { %2449 = vmatmul.msk.f32.vlgmr.msrb.gmra.mxu0 %vm562_vm8, %v1902_v49  ;;  %v1999_v49 = vld [vmem:[#allocation2 + $0x128] sm:$0xff] }
 0xf7f   :  { %v1847_v56 = vmul.f32 1.442695, %v1845_v51  ;;  %2288 = vmatpush.msrb.mxu0 %v2691_v58  ;;  %v1998_v51 = vld [vmem:[#allocation2 + $0x120] sm:$0xff]  ;;  %2018 = vmatpush.msrb.mxu2 %v1999_v49 }
 0xf81   :  { %2623 = vpow2.f32 %v1847_v56  ;;  %2289 = vmatpush.msrb.mxu0 %v2691_v58  ;;  %2019 = vmatpush.msrb.mxu2 %v1998_v51 }
 0xf83   :  { %2290 = vmatpush.msrb.mxu0 %v2691_v58 }
 0xf84   :  { %v1844_v5 = vpop.xlane.xlu1 %1843 }
 0xf85   :  { %v1846_v57 = vsub.f32 %v1836_v38, %v1844_v5  ;;  %2291 = vmatpush.msrb.mxu0 %v2691_v58 }
 0xf86   :  { %2450 = vmatmul.msk.f32.gmra.mxu0 %vm562_vm8, %v1903_v35  ;;  %v1997_v35 = vld [vmem:[#allocation2 + $0x118] sm:$0xff] }
 0xf87   :  { %v2624_v55 = vpop.eup %2623  ;;  %v1849_v60 = vmul.f32 1.442695, %v1846_v57  ;;  %2020 = vmatpush.msrb.mxu2 %v1997_v35 }
 0xf88   :  { %v1851_v61 = vsel %vm258_vm6, %v2624_v55, 0.0 }
 0xf89   :  { %2625 = vpow2.f32 %v1849_v60  ;;  %1852 = vadd.xlane.f32.xlu0 %v1851_v61 }
 0xf8a   :  { %2627 = vpow2.f32 %v1663_v1 }
 0xf8b   :  { %2629 = vpow2.f32 %v1665_v6  ;;  %v2538_v6 = vld [vmem:[#allocation2 + $0x1d4] ss:$0 sm:$0xff] }
 0xf8f   :  { %v3227_v62 = vpop.eup %2625 }
 0xf90   :  { %v1854_v8 = vsel %vm258_vm6, %v3227_v62, 0.0  ;;  %v2628_v24 = vpop.eup %2627 }
 0xf91   :  { %1855 = vadd.xlane.f32.xlu0 %v1854_v8  ;;  %v1667_v11 = vsel %vm258_vm6, %v2628_v24, 0.0  ;;  %v2630_v10 = vpop.eup %2629 }
 0xf92   :  { %v1670_v13 = vsel %vm258_vm6, %v2630_v10, 0.0 }
 0xfeb   :  { %v3231_v63 = vpop.f32.mrf.mxu0 }
 0xff3   :  { %v3234_v0 = vpop.f32.mrf.mxu0 }
 0xffb   :  { %v1927_v40 = vpop.f32.mrf.mxu0 }
 0xffc   :  { %v1933_v7 = vsel %vm258_vm6, %v1927_v40, -inf }
 0xffd   :  { %1934 = vmax.xlane.f32.xlu2 %v1933_v7 }
0x1003   :  { %v1930_v9 = vpop.f32.mrf.mxu0 }
0x1004   :  { %v1936_v12 = vsel %vm258_vm6, %v1930_v9, -inf }
0x1005   :  { %1668 = vadd.xlane.f32.xlu2 %v1667_v11  ;;  %1937 = vmax.xlane.f32.xlu1 %v1936_v12 }
0x100d   :  { %1671 = vadd.xlane.f32.xlu2 %v1670_v13  ;;  %v2140_v13 = vld [vmem:[#allocation2 + $0x148] sm:$0xff] }
0x101e   :  { %2509 = vrot.lane.b32.xlu1 %v2508_v4, %s2688_s3  ;;  %v1853_v4 = vpop.xlane.xlu0 %1852 }
0x1025   :  { %2514 = vrot.lane.b32.xlu2 %v2513_v52, %s2688_s3 }
0x1026   :  { %2519 = vrot.lane.b32.xlu1 %v2518_v54, %s2688_s3  ;;  %v1856_v20 = vpop.xlane.xlu0 %1855 }
0x1070   :  { %v1935_v37 = vpop.xlane.xlu2 %1934 }
0x1071   :  { %v1939_v15 = vsub.f32 %v1927_v40, %v1935_v37  ;;  %v2139_v37 = vld [vmem:[#allocation2 + $0x140] sm:$0xff] }
0x1073   :  { %v1941_v31 = vmul.f32 1.442695, %v1939_v15 }
0x1075   :  { %2631 = vpow2.f32 %v1941_v31  ;;  %v2138_v31 = vld [vmem:[#allocation2 + $0x138] sm:$0xff] }
0x1078   :  { %v1669_v16 = vpop.xlane.xlu2 %1668  ;;  %v1938_v17 = vpop.xlane.xlu1 %1937 }
0x1079   :  { %v1940_v18 = vsub.f32 %v1930_v9, %v1938_v17 }
0x107b   :  { %v2632_v21 = vpop.eup %2631  ;;  %v1943_v2 = vmul.f32 1.442695, %v1940_v18 }
0x107c   :  { %v1945_v53 = vsel %vm258_vm6, %v2632_v21, 0.0 }
0x107d   :  { %2633 = vpow2.f32 %v1943_v2  ;;  %1946 = vadd.xlane.f32.xlu0 %v1945_v53 }
0x107e   :  { %2635 = vrcp.f32 %v1853_v4 }
0x107f   :  { %2637 = vrcp.f32 %v1856_v20  ;;  %v2204_v20 = vld [vmem:[#allocation2 + $0x1c0] sm:$0xff] }
0x1080   :  { %v1672_v3 = vpop.xlane.xlu2 %1671  ;;  %2639 = vrcp.f32 %v1669_v16 }
0x1081   :  { %2641 = vrcp.f32 %v1672_v3 }
0x1083   :  { %v2634_v25 = vpop.eup %2633 }
0x1084   :  { %v1948_v19 = vsel %vm258_vm6, %v2634_v25, 0.0  ;;  %v2636_v54 = vpop.eup %2635 }
0x1085   :  { %1949 = vadd.xlane.f32.xlu0 %v1948_v19  ;;  %v1859_v26 = vmul.f32 %v2636_v54, %v2624_v55  ;;  %v2638_v27 = vpop.eup %2637  ;;  %v2205_v19 = vld [vmem:[#allocation2 + $0x1c8] sm:$0xff] }
0x1086   :  { %v2640_v29 = vpop.eup %2639  ;;  %v1860_v38 = vmul.f32 %v2638_v27, %v3227_v62 }
0x1087   :  { %v1675_v33 = vmul.f32 %v2640_v29, %v2628_v24  ;;  %v2642_v39 = vpop.eup %2641 }
0x1088   :  { %v2515_v52 = vpop.permute.xlu2 %2514  ;;  %v1676_v42 = vmul.f32 %v2642_v39, %v2630_v10 }
0x1089   :  { %v2516_v22 = vunpack.i.l.bf16 %v2515_v52  ;;  %v2517_v47 = vunpack.i.h.bf16 %v2515_v52 }
0x108b   :  { %1891 = vmatpush.msrb.mxu3 %v2516_v22  ;;  %v2203_v22 = vld [vmem:[#allocation2 + $0x1b8] sm:$0xff] }
0x108d   :  { %1892 = vmatpush.msrb.mxu3 %v2517_v47 }
0x108e   :  { %2445 = vmatmul.msk.f32.vlgmr.msrb.gmra.mxu3 %vm258_vm6, %v1859_v26  ;;  %v2202_v26 = vld [vmem:[#allocation2 + $0x1b0] sm:$0xff] }
0x108f   :  { %2055 = vmatpush.msra.mxu3 %v2691_v58 }
0x1090   :  { %v2510_v28 = vpop.permute.xlu1 %2509 }
0x1091   :  { %v2511_v32 = vunpack.i.l.bf16 %v2510_v28  ;;  %2056 = vmatpush.msra.mxu3 %v2691_v58  ;;  %v2512_v36 = vunpack.i.h.bf16 %v2510_v28 }
0x1093   :  { %1799 = vmatpush.msra.mxu1 %v2511_v32  ;;  %2057 = vmatpush.msra.mxu3 %v2691_v58 }
0x1095   :  { %1800 = vmatpush.msra.mxu1 %v2512_v36  ;;  %2058 = vmatpush.msra.mxu3 %v2691_v58 }
0x1096   :  { %2439 = vmatmul.msk.f32.vlgmr.msra.gmra.mxu1 %vm258_vm6, %v1675_v33  ;;  %2446 = vmatmul.msk.f32.gmra.mxu3 %vm258_vm6, %v1860_v38 }
0x1097   :  { %2255 = vmatpush.msrb.mxu3 %v2691_v58 }
0x1098   :  { %v2520_v23 = vpop.permute.xlu1 %2519 }
0x1099   :  { %v2521_v41 = vunpack.i.l.bf16 %v2520_v23  ;;  %2256 = vmatpush.msrb.mxu3 %v2691_v58  ;;  %v2522_v46 = vunpack.i.h.bf16 %v2520_v23 }
0x109b   :  { %1985 = vmatpush.msrb.mxu1 %v2521_v41  ;;  %2257 = vmatpush.msrb.mxu3 %v2691_v58 }
0x109d   :  { %1986 = vmatpush.msrb.mxu1 %v2522_v46  ;;  %2258 = vmatpush.msrb.mxu3 %v2691_v58  ;;  %v1996_v58 = vld [vmem:[#allocation2 + $0x110] sm:$0xff] }
0x109e   :  { %2440 = vmatmul.msk.f32.gmra.mxu1 %vm258_vm6, %v1676_v42  ;;  %2021 = vmatpush.msrb.mxu2 %v1996_v58  ;;  %v2539_v46 = vld [vmem:[#allocation2 + $0x1d5] ss:$0 sm:$0xff] }
0x109f   :  { %2161 = vmatpush.msra.mxu1 %v2140_v13 }
0x10a0   :  { %2206 = vmatpush.msra.mxu2 %v2205_v19 }
0x10a1   :  { %2162 = vmatpush.msra.mxu1 %v2139_v37 }
0x10a2   :  { %2207 = vmatpush.msra.mxu2 %v2204_v20 }
0x10a3   :  { %2163 = vmatpush.msra.mxu1 %v2138_v31 }
0x10a4   :  { %2208 = vmatpush.msra.mxu2 %v2203_v22 }
0x10a6   :  { %2209 = vmatpush.msra.mxu2 %v2202_v26 }
0x10f0   :  { %v1947_v43 = vpop.xlane.xlu0 %1946 }
0x10f1   :  { %2643 = vrcp.f32 %v1947_v43 }
0x10f7   :  { %v2644_v30 = vpop.eup %2643 }
0x10f8   :  { %v1953_v44 = vmul.f32 %v2644_v30, %v2632_v21  ;;  %v1950_v48 = vpop.xlane.xlu0 %1949 }
0x10f9   :  { %2645 = vrcp.f32 %v1950_v48 }
0x10fa   :  { %2451 = vmatmul.msk.f32.vlgmr.msrb.gmra.mxu1 %vm258_vm6, %v1953_v44  ;;  %v2540_v44 = vld [vmem:[#allocation2 + $0x1d6] ss:$0 sm:$0xff] }
0x10ff   :  { %v2646_v56 = vpop.eup %2645 }
0x1100   :  { %v1954_v5 = vmul.f32 %v2646_v56, %v2634_v25 }
0x1102   :  { %2452 = vmatmul.msk.f32.gmra.mxu1 %vm258_vm6, %v1954_v5 }
0x1111   :  { %v1894_v61 = vpop.f32.mrf.mxu3 }
0x1113   :  { %v1802_v57 = vpop.f32.mrf.mxu1 }
0x1114   :  { %v1803_v60 = vadd.f32 %v1802_v57, %v3231_v63 }
0x1116   :  { %v1900_v62 = vadd.f32 %v1894_v61, %v1803_v60  ;;  %v2201_v61 = vld [vmem:[#allocation2 + $0x1a8] sm:$0xff] }
0x1117   :  { %2210 = vmatpush.msra.mxu2 %v2201_v61 }
0x1119   :  { %v1897_v1 = vpop.f32.mrf.mxu3 }
0x111b   :  { %v1805_v55 = vpop.f32.mrf.mxu1 }
0x111c   :  { %v1806_v59 = vadd.f32 %v1805_v55, %v3234_v0 }
0x111e   :  { %v1901_v45 = vadd.f32 %v1897_v1, %v1806_v59  ;;  %v2197_v59 = vld [vmem:[#allocation2 + $0x188] sm:$0xff]  ;;  %v2196_v1 = vld [vmem:[#allocation2 + $0x180] sm:$0xff] }
0x1177   :  { %v1988_v8 = vpop.f32.mrf.mxu1 }
0x1178   :  { %v1994_v14 = vadd.f32 %v1988_v8, %v1900_v62  ;;  %v2200_v62 = vld [vmem:[#allocation2 + $0x1a0] sm:$0xff]  ;;  %v2199_v8 = vld [vmem:[#allocation2 + $0x198] sm:$0xff] }
0x1179   :  { %2211 = vmatpush.msra.mxu2 %v2200_v62 }
0x117a   :  { %2453 = vmatmul.msk.f32.vlgmr.msrb.gmra.mxu2 %vm562_vm8, %v1994_v14  ;;  %v2198_v14 = vld [vmem:[#allocation2 + $0x190] sm:$0xff] }
0x117b   :  { %2212 = vmatpush.msra.mxu2 %v2199_v8 }
0x117d   :  { %2213 = vmatpush.msra.mxu2 %v2198_v14  ;;  %v2543_v14 = vld [vmem:[%s3315_s2 + $0x8a] ss:$0 sm:$0xff] }
0x117f   :  { %v1991_v40 = vpop.f32.mrf.mxu1  ;;  %2214 = vmatpush.msra.mxu2 %v2197_v59 }
0x1180   :  { %v1995_v7 = vadd.f32 %v1991_v40, %v1901_v45  ;;  %v2195_v45 = vld [vmem:[#allocation2 + $0x178] sm:$0xff]  ;;  %v2194_v40 = vld [vmem:[#allocation2 + $0x170] sm:$0xff] }
0x1181   :  { %2215 = vmatpush.msra.mxu2 %v2196_v1 }
0x1182   :  { %2454 = vmatmul.msk.f32.gmra.mxu2 %vm562_vm8, %v1995_v7  ;;  %v2193_v7 = vld [vmem:[#allocation2 + $0x168] sm:$0xff] }
0x1183   :  { %2216 = vmatpush.msra.mxu2 %v2195_v45 }
0x1185   :  { %2217 = vmatpush.msra.mxu2 %v2194_v40  ;;  %v2544_v40 = vld [vmem:[%s3315_s2 + $0x8b] ss:$0 sm:$0xff] }
0x1187   :  { %2218 = vmatpush.msra.mxu2 %v2193_v7 }
0x11fd   :  { %v2023_v24 = vpop.f32.mrf.mxu2 }
0x11fe   :  { %v2029_v9 = vadd.f32 %v2023_v24, %v3120_v50  ;;  %v2191_v24 = vld [vmem:[#allocation2 + $0x158] sm:$0xff] }
0x1200   :  { %v3274_v11 = vadd.f32 %v2538_v6, %v2029_v9  ;;  %v2190_v9 = vld [vmem:[#allocation2 + $0x150] sm:$0xff] }
0x1202   :  { %v2068_v63 = vmul.f32 %v3274_v11, %v3274_v11  ;;  %2455 = vmatmul.msk.f32.vlgmr.msra.gmra.mxu3 %vm562_vm8, %v3274_v11 }
0x1204   :  { %2457 = vmatmul.msk.f32.vlgmr.msra.gmra.mxu0 %vm562_vm8, %v2068_v63  ;;  %v2541_v63 = vld [vmem:[#allocation2 + $0x1d8] ss:$0 sm:$0xff] }
0x1205   :  { %v2026_v0 = vpop.f32.mrf.mxu2 }
0x1206   :  { %v2030_v12 = vadd.f32 %v2026_v0, %v3128_v34  ;;  %v2137_v34 = vld [vmem:[#allocation2 + $0x130] sm:$0xff] }
0x1207   :  { %2164 = vmatpush.msra.mxu1 %v2137_v34 }
0x1208   :  { %v3282_v10 = vadd.f32 %v2538_v6, %v2030_v12  ;;  %v2192_v6 = vld [vmem:[#allocation2 + $0x160] sm:$0xff] }
0x1209   :  { %2219 = vmatpush.msra.mxu2 %v2192_v6 }
0x120a   :  { %2456 = vmatmul.msk.f32.gmra.mxu3 %vm562_vm8, %v3282_v10  ;;  %v2069_v50 = vmul.f32 %v3282_v10, %v3282_v10 }
0x120b   :  { %2220 = vmatpush.msra.mxu2 %v2191_v24 }
0x120c   :  { %2458 = vmatmul.msk.f32.gmra.mxu0 %vm562_vm8, %v2069_v50 }
0x120d   :  { %2221 = vmatpush.msra.mxu2 %v2190_v9 }
0x1281   :  { %v2093_v15 = vpop.f32.mrf.mxu0 }
0x1282   :  { %v2099_v18 = vmul.f32 0.03125, %v2093_v15 }
0x1285   :  { %v2060_v16 = vpop.f32.mrf.mxu3 }
0x1286   :  { %v2066_v17 = vmul.f32 0.03125, %v2060_v16 }
0x1288   :  { %v2101_v21 = vmul.f32 %v2066_v17, %v2066_v17  ;;  %v2105_v41 = vsub.f32 %v3274_v11, %v2066_v17 }
0x1289   :  { %v2096_v4 = vpop.f32.mrf.mxu0 }
0x128a   :  { %v2103_v2 = vsub.f32 %v2099_v18, %v2101_v21  ;;  %v2100_v52 = vmul.f32 0.03125, %v2096_v4 }
0x128c   :  { %v2107_v53 = vadd.f32 1e-05, %v2103_v2 }
0x128d   :  { %v2063_v3 = vpop.f32.mrf.mxu3 }
0x128e   :  { %2647 = vrsqrt.f32 %v2107_v53  ;;  %v2067_v25 = vmul.f32 0.03125, %v2063_v3  ;;  %vm2115_vm9 = vweird.f32 %v2107_v53 }
0x1290   :  { %v2102_v54 = vmul.f32 %v2067_v25, %v2067_v25  ;;  %v2106_v35 = vsub.f32 %v3282_v10, %v2067_v25 }
0x1292   :  { %v2104_v47 = vsub.f32 %v2100_v52, %v2102_v54 }
0x1294   :  { %v2648_v27 = vpop.eup %2647  ;;  %v2108_v28 = vadd.f32 1e-05, %v2104_v47  ;;  %v2542_v47 = vld [vmem:[#allocation2 + $0x1d7] ss:$0 sm:$0xff] }
0x1295   :  { %v2110_v29 = vmul.f32 %v2648_v27, %v2107_v53  ;;  %vm2116_vm6 = vweird.f32 %v2648_v27 }
0x1296   :  { %2649 = vrsqrt.f32 %v2108_v28  ;;  %vm2117_vm10 = vmor %vm2115_vm9, %vm2116_vm6  ;;  %vm2125_vm12 = vweird.f32 %v2108_v28 }
0x1297   :  { %v2111_v32 = vmul.f32 %v2648_v27, %v2110_v29 }
0x1299   :  { %v2112_v36 = vmul.f32 0.5, %v2111_v32 }
0x129b   :  { %v2113_v33 = vsub.f32 1.5, %v2112_v36 }
0x129c   :  { %v2650_v38 = vpop.eup %2649 }
0x129d   :  { %v2114_v23 = vmul.f32 %v2648_v27, %v2113_v33  ;;  %v2120_v39 = vmul.f32 %v2650_v38, %v2108_v28  ;;  %vm2126_vm11 = vweird.f32 %v2650_v38 }
0x129e   :  { %vm2127_vm13 = vmor %vm2125_vm12, %vm2126_vm11 }
0x129f   :  { %v2118_v42 = vsel %vm2117_vm10, %v2648_v27, %v2114_v23  ;;  %v2121_v43 = vmul.f32 %v2650_v38, %v2120_v39 }
0x12a0   :  { %v2129_v30 = vmul.f32 %v2118_v42, %v2105_v41 }
0x12a1   :  { %v2122_v48 = vmul.f32 0.5, %v2121_v43 }
0x12a2   :  { %v2132_v49 = vmul.f32 %v2539_v46, %v2129_v30 }
0x12a3   :  { %v2123_v51 = vsub.f32 1.5, %v2122_v48 }
0x12a4   :  { %v2135_v56 = vadd.f32 %v2540_v44, %v2132_v49 }
0x12a5   :  { %v2124_v5 = vmul.f32 %v2650_v38, %v2123_v51 }
0x12a6   :  { %2459 = vmatmul.msk.f32.vlgmr.msra.gmra.mxu1 %vm562_vm8, %v2135_v56 }
0x12a7   :  { %v2128_v58 = vsel %vm2127_vm13, %v2650_v38, %v2124_v5 }
0x12a8   :  { %v2130_v57 = vmul.f32 %v2128_v58, %v2106_v35 }
0x12aa   :  { %v2133_v55 = vmul.f32 %v2539_v46, %v2130_v57 }
0x12ac   :  { %v2136_v60 = vadd.f32 %v2540_v44, %v2133_v55 }
0x12ae   :  { %2460 = vmatmul.msk.f32.gmra.mxu1 %vm562_vm8, %v2136_v60 }
0x1323   :  { %v2166_v0 = vpop.f32.mrf.mxu1 }
0x1324   :  { %v2167_v12 = vadd.f32 %v2541_v63, %v2166_v0 }
0x1326   :  { %v2174_v50 = vmul.f32 0.044715, %v2167_v12  ;;  %v2172_v3 = vmul.f32 0.5, %v2167_v12 }
0x1328   :  { %v2176_v13 = vmul.f32 %v2174_v50, %v2167_v12 }
0x132a   :  { %v2178_v37 = vmul.f32 %v2176_v13, %v2167_v12 }
0x132b   :  { %v2169_v15 = vpop.f32.mrf.mxu1 }
0x132c   :  { %v2170_v31 = vadd.f32 %v2541_v63, %v2169_v15  ;;  %v2180_v16 = vadd.f32 %v2178_v37, %v2167_v12 }
0x132e   :  { %v2175_v17 = vmul.f32 0.044715, %v2170_v31  ;;  %v2182_v34 = vmul.f32 0.7978846, %v2180_v16  ;;  %v2173_v52 = vmul.f32 0.5, %v2170_v31 }
0x1330   :  { %2651 = vtanh.f32 %v2182_v34  ;;  %v2177_v18 = vmul.f32 %v2175_v17, %v2170_v31 }
0x1332   :  { %v2179_v21 = vmul.f32 %v2177_v18, %v2170_v31 }
0x1334   :  { %v2181_v2 = vadd.f32 %v2179_v21, %v2170_v31 }
0x1336   :  { %v2652_v53 = vpop.eup %2651  ;;  %v2183_v4 = vmul.f32 0.7978846, %v2181_v2 }
0x1337   :  { %v2186_v25 = vadd.f32 1.0, %v2652_v53 }
0x1338   :  { %2653 = vtanh.f32 %v2183_v4 }
0x1339   :  { %v2188_v19 = vmul.f32 %v2186_v25, %v2172_v3 }
0x133b   :  { %2222 = vmatmul.f32.vlgmr.msra.gmra.mxu2 %v2188_v19 }
0x133e   :  { %v2654_v20 = vpop.eup %2653 }
0x133f   :  { %v2187_v54 = vadd.f32 1.0, %v2654_v20 }
0x1341   :  { %v2189_v22 = vmul.f32 %v2187_v54, %v2173_v52 }
0x1343   :  { %2225 = vmatmul.f32.gmra.mxu2 %v2189_v22 }
0x13be   :  { %v2223_v26 = vpop.f32.mrf.mxu2 }
0x13bf   :  { %v2229_v27 = vadd.f32 %v2223_v26, %v3274_v11 }
0x13c1   :  { %v2233_v28 = vadd.f32 %v2542_v47, %v2229_v27 }
0x13c3   :  { %v2268_v29 = vmul.f32 %v2233_v28, %v2233_v28  ;;  %2461 = vmatmul.msk.f32.vlgmr.msrb.gmra.mxu3 %vm562_vm8, %v2233_v28 }
0x13c5   :  { %2463 = vmatmul.msk.f32.vlgmr.msrb.gmra.mxu0 %vm562_vm8, %v2268_v29 }
0x13c6   :  { %v2226_v32 = vpop.f32.mrf.mxu2 }
0x13c7   :  { %v2230_v36 = vadd.f32 %v2226_v32, %v3282_v10 }
0x13c9   :  { %v2234_v33 = vadd.f32 %v2542_v47, %v2230_v36 }
0x13cb   :  { %v2269_v38 = vmul.f32 %v2234_v33, %v2234_v33  ;;  %2462 = vmatmul.msk.f32.gmra.mxu3 %vm562_vm8, %v2234_v33 }
0x13cd   :  { %2464 = vmatmul.msk.f32.gmra.mxu0 %vm562_vm8, %v2269_v38 }
0x1442   :  { %v2293_v23 = vpop.f32.mrf.mxu0 }
0x1443   :  { %v2299_v46 = vmul.f32 0.03125, %v2293_v23 }
0x1446   :  { %v2260_v39 = vpop.f32.mrf.mxu3 }
0x1447   :  { %v2266_v41 = vmul.f32 0.03125, %v2260_v39 }
0x1449   :  { %v2301_v11 = vmul.f32 %v2266_v41, %v2266_v41  ;;  %v2305_v8 = vsub.f32 %v2233_v28, %v2266_v41 }
0x144a   :  { %v2296_v30 = vpop.f32.mrf.mxu0 }
0x144b   :  { %v2303_v42 = vsub.f32 %v2299_v46, %v2301_v11  ;;  %v2300_v49 = vmul.f32 0.03125, %v2296_v30 }
0x144d   :  { %v2307_v43 = vadd.f32 1e-05, %v2303_v42 }
0x144e   :  { %v2263_v44 = vpop.f32.mrf.mxu3 }
0x144f   :  { %2655 = vrsqrt.f32 %v2307_v43  ;;  %v2267_v48 = vmul.f32 0.03125, %v2263_v44  ;;  %vm2315_vm15 = vweird.f32 %v2307_v43 }
0x1451   :  { %v2302_v51 = vmul.f32 %v2267_v48, %v2267_v48  ;;  %v2306_v0 = vsub.f32 %v2234_v33, %v2267_v48 }
0x1453   :  { %v2304_v10 = vsub.f32 %v2300_v49, %v2302_v51 }
0x1455   :  { %v2656_v56 = vpop.eup %2655  ;;  %v2308_v5 = vadd.f32 1e-05, %v2304_v10 }
0x1456   :  { %v2310_v35 = vmul.f32 %v2656_v56, %v2307_v43  ;;  %vm2316_vm14 = vweird.f32 %v2656_v56 }
0x1457   :  { %2657 = vrsqrt.f32 %v2308_v5  ;;  %vm2317_vm0 = vmor %vm2315_vm15, %vm2316_vm14  ;;  %vm2325_vm2 = vweird.f32 %v2308_v5 }
0x1458   :  { %v2311_v58 = vmul.f32 %v2656_v56, %v2310_v35 }
0x145a   :  { %v2312_v57 = vmul.f32 0.5, %v2311_v58 }
0x145c   :  { %v2313_v55 = vsub.f32 1.5, %v2312_v57 }
0x145d   :  { %v2658_v60 = vpop.eup %2657 }
0x145e   :  { %v2314_v61 = vmul.f32 %v2656_v56, %v2313_v55  ;;  %v2320_v62 = vmul.f32 %v2658_v60, %v2308_v5  ;;  %vm2326_vm1 = vweird.f32 %v2658_v60 }
0x145f   :  { %vm2327_vm3 = vmor %vm2325_vm2, %vm2326_vm1 }
0x1460   :  { %v2318_v59 = vsel %vm2317_vm0, %v2656_v56, %v2314_v61  ;;  %v2321_v1 = vmul.f32 %v2658_v60, %v2320_v62 }
0x1461   :  { %v2329_v45 = vmul.f32 %v2318_v59, %v2305_v8 }
0x1462   :  { %v2322_v7 = vmul.f32 0.5, %v2321_v1 }
0x1463   :  { %v2332_v6 = vmul.f32 %v2543_v14, %v2329_v45 }
0x1464   :  { %v2323_v24 = vsub.f32 1.5, %v2322_v7 }
0x1465   :  { %v2335_v9 = vadd.f32 %v2544_v40, %v2332_v6 }
0x1466   :  { %v2324_v63 = vmul.f32 %v2658_v60, %v2323_v24 }
0x1467   :  { %2337 = vst.msk [vmem:[%s3317_s4] sm:$0xff] %vm562_vm8, %v2335_v9 }
0x1468   :  { %v2328_v12 = vsel %vm2327_vm3, %v2658_v60, %v2324_v63 }
0x1469   :  { %v2330_v50 = vmul.f32 %v2328_v12, %v2306_v0 }
0x146b   :  { %v2333_v13 = vmul.f32 %v2543_v14, %v2330_v50 }
0x146d   :  { %v2336_v37 = vadd.f32 %v2544_v40, %v2333_v13 }
0x146f   :  { %2338 = vst.msk [vmem:[%s3317_s4 + $0x8] sm:$0xff] %vm562_vm8, %v2336_v37 }
0x1470   :  { %2343 = vsyncpa [#allocation3], 1 }

</bundles_post_ra>
